<compile_context>
chip_gen: v7x
topology: tpu7x:2x2x1
jax: 0.10.0
libtpu: 0.0.40
codegen_flags: <defaults>
</compile_context>

<pallas_src>
import functools

import jax
import jax.numpy as jnp
from jax.experimental import pallas as pl
from jax.experimental.pallas import tpu as pltpu


def _self_attention_kernel(x_ref, wqkv_ref, wp_ref, b_ref, o_ref, acc_ref, *,
                           scale, num_chunks, heads_per_chunk, head_dim,
                           approx_recip):
    """One batch-block per grid step.

    x_ref    : (Bt, N, C)              input dtype
    wqkv_ref : (num_chunks, C, 3*chd)  fused per-chunk QKV weight, columns [Q|K|V]
    wp_ref   : (num_chunks, chd, C)    per-chunk rows of the output projection
    b_ref    : (1, C)                  f32 projection bias
    o_ref    : (Bt, N, C)
    acc_ref  : (Bt*N, C) f32 scratch   output-projection accumulator
    """
    Bt, N, C = x_ref.shape
    hd = head_dim
    ch = heads_per_chunk
    chd = ch * hd
    dtype = x_ref.dtype
    M = Bt * N

    # Shared LHS for every projection (leading-dim merge only; no broadcast copies).
    x2d = x_ref[...].reshape(M, C)

    # Accumulator starts at the broadcast projection bias; each head-chunk adds its
    # slice of the fused "concat heads -> output projection" contraction.
    acc_ref[...] = jnp.broadcast_to(b_ref[...].astype(jnp.float32), (M, C))

    @pl.loop(0, num_chunks)
    def _(c):
        # Fused QKV projection for this chunk of heads: ONE lane-dense matmul
        # (output width 3*chd), f32 accumulation on the MXU.
        qkv = jnp.dot(x2d, wqkv_ref[c],
                      preferred_element_type=jnp.float32)          # (M, 3*chd) f32

        outs = []
        for j in range(ch):  # static unroll inside the chunk (scheduler overlaps EUP/MXU)
            q = (qkv[:, j * hd:(j + 1) * hd] * scale).astype(dtype)
            k = qkv[:, chd + j * hd:chd + (j + 1) * hd].astype(dtype)
            v = qkv[:, 2 * chd + j * hd:2 * chd + (j + 1) * hd].astype(dtype)
            q3 = q.reshape(Bt, N, hd)
            k3 = k.reshape(Bt, N, hd)
            v3 = v.reshape(Bt, N, hd)

            # Scores + numerically stable softmax (f32).
            s = jnp.einsum('bqd,bkd->bqk', q3, k3,
                           preferred_element_type=jnp.float32)      # (Bt, N, N) f32
            s = s - jnp.max(s, axis=-1, keepdims=True)
            p = jnp.exp(s)
            denom = jnp.sum(p, axis=-1, keepdims=True)
            p = p * pl.reciprocal(denom, approx=approx_recip)
            # TODO(synk): attn_drop with rate > 0 not implemented (rate 0.0 -> identity).

            o3 = jnp.einsum('bqk,bkd->bqd', p.astype(dtype), v3,
                            preferred_element_type=jnp.float32)     # (Bt, N, hd) f32
            outs.append(o3.reshape(M, hd).astype(dtype))

        o_chunk = jnp.concatenate(outs, axis=-1) if ch > 1 else outs[0]  # (M, chd)
        # Fused "concat heads + output projection", restricted to this chunk's rows:
        # a full-depth K=chd contraction accumulated in f32.
        acc_ref[...] += jnp.dot(o_chunk, wp_ref[c],
                                preferred_element_type=jnp.float32)      # (M, C) f32

    # TODO(synk): proj_drop with rate > 0 not implemented (rate 0.0 -> identity).
    o_ref[...] = acc_ref[...].reshape(Bt, N, C).astype(o_ref.dtype)


def self_attention(x, wqkv_t, wproj_t, bproj, *, num_heads, qk_scale=None,
                   compute_dtype=None, approx_recip=True):
    """Multi-head self-attention forward.

    x       : (B, N, C)
    wqkv_t  : (C, 3*C)  fused QKV weight, stored (in, out) i.e. torch weight.T
    wproj_t : (C, C)    output projection weight, stored (in, out)
    bproj   : (C,)      output projection bias
    """
    B, N, C = x.shape
    H = num_heads
    assert C % H == 0, "dim must be divisible by heads"
    hd = C // H
    scale = float(qk_scale) if qk_scale is not None else hd ** (-0.5)
    out_dtype = x.dtype

    # Optional bf16 compute (f32 accumulation kept via preferred_element_type).
    if compute_dtype is not None:
        x = x.astype(compute_dtype)
        wqkv_t = wqkv_t.astype(compute_dtype)
        wproj_t = wproj_t.astype(compute_dtype)

    # ---- host-side layout plumbing (trivially small vs. kernel work) ----------
    # Fold batch elements into one grid step for small N (amortize ~0.35us/step).
    Bt = 1
    for cand in range(1, B + 1):
        if B % cand == 0 and cand * N <= 256:
            Bt = cand

    # Head-chunk size: ~256 output lanes per chunk (dense MXU lanes) while keeping
    # one chunk's live f32 scores under ~8 MiB; must divide H.
    max_by_lane = max(1, 256 // hd)
    max_by_mem = max(1, (8 * 1024 * 1024) // max(1, Bt * N * N * 4))
    cap = max(1, min(H, max_by_lane, max_by_mem))
    ch = 1
    for cand in range(1, cap + 1):
        if H % cand == 0:
            ch = cand
    n_chunks = H // ch
    chd = ch * hd

    # Per-chunk weight slabs: chunk c's columns ordered [Q heads | K heads | V heads]
    # (head-major inside each section), plus the matching rows of the output proj.
    wq = wqkv_t[:, 0 * C:1 * C].reshape(C, n_chunks, chd)
    wk = wqkv_t[:, 1 * C:2 * C].reshape(C, n_chunks, chd)
    wv = wqkv_t[:, 2 * C:3 * C].reshape(C, n_chunks, chd)
    wqkv_ch = jnp.concatenate([wq, wk, wv], axis=-1).transpose(1, 0, 2)  # (n_chunks, C, 3*chd)
    wp_ch = wproj_t.reshape(n_chunks, chd, C)                            # (n_chunks, chd, C)
    b2 = bproj.reshape(1, C).astype(jnp.float32)

    kernel = functools.partial(
        _self_attention_kernel, scale=scale, num_chunks=n_chunks,
        heads_per_chunk=ch, head_dim=hd, approx_recip=approx_recip)

    # Generation-aware VMEM budget: ~100 MiB on 128-MiB parts (v5e/v6e), leave
    # ~16 MiB of Mosaic-scratch headroom on 64-MiB parts (v7x).
    try:
        phys_vmem = int(pltpu.get_tpu_info().vmem_capacity_bytes)
    except Exception:
        phys_vmem = 64 * 1024 * 1024
    if phys_vmem >= 128 * 1024 * 1024:
        vmem_limit = 100 * 1024 * 1024
    else:
        vmem_limit = max(32 * 1024 * 1024, phys_vmem - 16 * 1024 * 1024)

    itemsize = jnp.dtype(x.dtype).itemsize
    cost = pl.CostEstimate(
        flops=2 * B * N * C * 3 * C + 4 * B * H * N * N * hd + 2 * B * N * C * C,
        transcendentals=B * H * N * N,
        bytes_accessed=(x.size + wqkv_ch.size + wp_ch.size) * itemsize
                       + b2.size * 4 + B * N * C * itemsize,
    )

    def build(single_buffer_weights):
        wkw = {'pipeline_mode': pl.Buffered(1)} if single_buffer_weights else {}
        return pl.pallas_call(
            kernel,
            out_shape=jax.ShapeDtypeStruct((B, N, C), out_dtype),
            grid_spec=pltpu.PrefetchScalarGridSpec(
                num_scalar_prefetch=0,
                grid=(B // Bt,),
                in_specs=[
                    pl.BlockSpec((Bt, N, C), lambda b: (b, 0, 0)),            # x
                    pl.BlockSpec((n_chunks, C, 3 * chd),
                                 lambda b: (0, 0, 0), **wkw),                 # Wqkv / chunk
                    pl.BlockSpec((n_chunks, chd, C),
                                 lambda b: (0, 0, 0), **wkw),                 # Wproj / chunk
                    pl.BlockSpec((1, C), lambda b: (0, 0), **wkw),            # proj bias
                ],
                out_specs=pl.BlockSpec((Bt, N, C), lambda b: (b, 0, 0)),
                scratch_shapes=[pltpu.VMEM((Bt * N, C), jnp.float32)],
            ),
            compiler_params=pltpu.CompilerParams(
                dimension_semantics=("parallel",),
                vmem_limit_bytes=int(vmem_limit)),
            cost_estimate=cost,
        )

    try:
        return build(True)(x, wqkv_ch, wp_ch, b2)
    except Exception:
        # Fallback for jax versions where single-buffered pipeline_mode on the
        # constant weight blocks is not supported.
        return build(False)(x, wqkv_ch, wp_ch, b2)


def self_attention_ref(x, wqkv_t, wproj_t, bproj, *, num_heads):
    """Pure-JAX reference mirroring the PyTorch forward."""
    B, N, C = x.shape
    hd = C // num_heads
    scale = hd ** (-0.5)
    qkv = (x @ wqkv_t).reshape(B, N, 3, num_heads, hd).transpose(2, 0, 3, 1, 4)
    q, k, v = qkv[0], qkv[1], qkv[2]
    attn = (q @ jnp.swapaxes(k, -2, -1)) * scale
    attn = jax.nn.softmax(attn, axis=-1)
    out = (attn @ v).transpose(0, 2, 1, 3).reshape(B, N, C)
    return out @ wproj_t + bproj


if __name__ == "__main__":
    B, N, C = 2, 8, 32
    heads = 8

    key = jax.random.PRNGKey(0)
    kx, kqkv, kproj, kb = jax.random.split(key, 4)

    x = jax.random.normal(kx, (B, N, C), dtype=jnp.float32)

    # Deterministic parameter init (shapes match nn.Linear(dim, dim*3, bias=False)
    # and nn.Linear(dim, dim)); stored pre-transposed as (in, out).
    bound = 1.0 / (C ** 0.5)
    wqkv_t = jax.random.uniform(kqkv, (C, 3 * C), jnp.float32,
                                minval=-bound, maxval=bound)
    wproj_t = jax.random.uniform(kproj, (C, C), jnp.float32,
                                 minval=-bound, maxval=bound)
    bproj = jax.random.uniform(kb, (C,), jnp.float32,
                               minval=-bound, maxval=bound)

    out = self_attention(x, wqkv_t, wproj_t, bproj, num_heads=heads)
    out = jax.block_until_ready(out)

    ref = self_attention_ref(x, wqkv_t, wproj_t, bproj, num_heads=heads)
    assert out.shape == (B, N, C)
    # Tolerance accounts for the EUP approximate reciprocal in the softmax denom.
    assert jnp.allclose(out, ref, atol=2e-3, rtol=2e-3), "mismatch vs reference"

    print("KERNEL_OK")
</pallas_src>

<mosaic_0001>
module attributes {stable_mosaic.version = 11 : i64} {
  func.func @_self_attention_kernel(%arg0: i32, %arg1: memref<2x8x32xf32, #tpu.memory_space<vmem>>, %arg2: memref<1x32x96xf32, #tpu.memory_space<vmem>>, %arg3: memref<1x32x32xf32, #tpu.memory_space<vmem>>, %arg4: memref<1x32xf32, #tpu.memory_space<vmem>>, %arg5: memref<2x8x32xf32, #tpu.memory_space<vmem>>, %arg6: memref<16x32xf32, #tpu.memory_space<vmem>>) attributes {dimension_semantics = [#tpu.dimension_semantics<parallel>], iteration_bounds = array<i64: 1>, scalar_prefetch = 0 : i64, scratch_operands = 1 : i64, tpu.core_type = #tpu.core_type<tc>, window_params = [{transform_indices = @transform_0, window_bounds = array<i64: 2, 8, 32>}, {pipeline_mode = #tpu.pipeline_mode<synchronous>, transform_indices = @transform_1, window_bounds = array<i64: 1, 32, 96>}, {pipeline_mode = #tpu.pipeline_mode<synchronous>, transform_indices = @transform_2, window_bounds = array<i64: 1, 32, 32>}, {pipeline_mode = #tpu.pipeline_mode<synchronous>, transform_indices = @transform_3, window_bounds = array<i64: 1, 32>}, {transform_indices = @transform_4, window_bounds = array<i64: 2, 8, 32>}]} {
    %c0 = arith.constant 0 : index
    %c0_0 = arith.constant 0 : index
    %c0_1 = arith.constant 0 : index
    %0 = vector.load %arg1[%c0, %c0_0, %c0_1] : memref<2x8x32xf32, #tpu.memory_space<vmem>>, vector<2x8x32xf32>
    %1 = vector.shape_cast %0 : vector<2x8x32xf32> to vector<16x32xf32>
    %c0_2 = arith.constant 0 : index
    %c0_3 = arith.constant 0 : index
    %2 = vector.load %arg4[%c0_2, %c0_3] : memref<1x32xf32, #tpu.memory_space<vmem>>, vector<1x32xf32>
    %3 = vector.shape_cast %2 : vector<1x32xf32> to vector<1x32xf32>
    %4 = vector.broadcast %3 : vector<1x32xf32> to vector<16x32xf32>
    %c0_4 = arith.constant 0 : index
    %c0_5 = arith.constant 0 : index
    %5 = vector.load %arg6[%c0_4, %c0_5] : memref<16x32xf32, #tpu.memory_space<vmem>>, vector<16x32xf32>
    tpu.vector_store %arg6[%c0_4, %c0_5], %4 {strides = array<i32>} : memref<16x32xf32, #tpu.memory_space<vmem>>, vector<16x32xf32>,
    %c0_i32 = arith.constant 0 : i32
    %c1_i32 = arith.constant 1 : i32
    %6 = arith.muli %c0_i32, %c1_i32 : i32
    %c0_i32_6 = arith.constant 0 : i32
    %7 = arith.addi %c0_i32_6, %6 : i32
    %8 = arith.index_cast %7 : i32 to index
    %c0_7 = arith.constant 0 : index
    %c0_8 = arith.constant 0 : index
    %9 = vector.load %arg2[%8, %c0_7, %c0_8] : memref<1x32x96xf32, #tpu.memory_space<vmem>>, vector<1x32x96xf32>
    %10 = vector.shape_cast %9 : vector<1x32x96xf32> to vector<32x96xf32>
    %cst = arith.constant dense<0.000000e+00> : vector<16x96xf32>
    %11 = tpu.matmul %1, %10, %cst {dimension_numbers = #tpu.dot_dimension_numbers<[1], [0], [0], [1], [0, 0, 1, 1], [], []>} : vector<16x32xf32>, vector<32x96xf32>, vector<16x96xf32> -> vector<16x96xf32>
    %12 = vector.extract_strided_slice %11 {offsets = [0, 0], sizes = [16, 4], strides = [1, 1]} : vector<16x96xf32> to vector<16x4xf32>
    %cst_9 = arith.constant 5.000000e-01 : f32
    %13 = vector.broadcast %cst_9 : f32 to vector<16x4xf32>
    %14 = arith.mulf %12, %13 : vector<16x4xf32>
    %15 = vector.extract_strided_slice %11 {offsets = [0, 32], sizes = [16, 4], strides = [1, 1]} : vector<16x96xf32> to vector<16x4xf32>
    %16 = vector.extract_strided_slice %11 {offsets = [0, 64], sizes = [16, 4], strides = [1, 1]} : vector<16x96xf32> to vector<16x4xf32>
    %17 = vector.shape_cast %14 : vector<16x4xf32> to vector<2x8x4xf32>
    %18 = vector.shape_cast %15 : vector<16x4xf32> to vector<2x8x4xf32>
    %19 = vector.shape_cast %16 : vector<16x4xf32> to vector<2x8x4xf32>
    "tpu.trace_start"() <{level = 10 : i32, message = "bqd,bkd->bqk"}> : () -> ()
    %cst_10 = arith.constant dense<0.000000e+00> : vector<2x8x8xf32>
    %20 = tpu.matmul %17, %18, %cst_10 {dimension_numbers = #tpu.dot_dimension_numbers<[2], [2], [1], [1], [0, 0, 0, 1, 1, 1], [0], [0]>} : vector<2x8x4xf32>, vector<2x8x4xf32>, vector<2x8x8xf32> -> vector<2x8x8xf32>
    "tpu.trace_stop"() : () -> ()
    %cst_11 = arith.constant dense<0xFF800000> : vector<2x8xf32>
    %21 = vector.multi_reduction <maximumf>, %20, %cst_11 [2] : vector<2x8x8xf32> to vector<2x8xf32>
    %22 = vector.shape_cast %21 : vector<2x8xf32> to vector<2x8x1xf32>
    %23 = vector.broadcast %22 : vector<2x8x1xf32> to vector<2x8x8xf32>
    %24 = arith.subf %20, %23 : vector<2x8x8xf32>
    %25 = math.exp %24 : vector<2x8x8xf32>
    %cst_12 = arith.constant dense<0.000000e+00> : vector<2x8xf32>
    %26 = vector.multi_reduction <add>, %25, %cst_12 [2] : vector<2x8x8xf32> to vector<2x8xf32>
    %27 = vector.shape_cast %26 : vector<2x8xf32> to vector<2x8x1xf32>
    %28 = tpu.reciprocal %27 {approx = true} : vector<2x8x1xf32> -> vector<2x8x1xf32>
    %29 = vector.broadcast %28 : vector<2x8x1xf32> to vector<2x8x8xf32>
    %30 = arith.mulf %25, %29 : vector<2x8x8xf32>
    "tpu.trace_start"() <{level = 10 : i32, message = "bqk,bkd->bqd"}> : () -> ()
    %cst_13 = arith.constant dense<0.000000e+00> : vector<2x8x4xf32>
    %31 = tpu.matmul %30, %19, %cst_13 {dimension_numbers = #tpu.dot_dimension_numbers<[2], [1], [1], [2], [0, 0, 0, 1, 1, 2], [0], [0]>} : vector<2x8x8xf32>, vector<2x8x4xf32>, vector<2x8x4xf32> -> vector<2x8x4xf32>
    "tpu.trace_stop"() : () -> ()
    %32 = vector.shape_cast %31 : vector<2x8x4xf32> to vector<16x4xf32>
    %33 = vector.extract_strided_slice %11 {offsets = [0, 4], sizes = [16, 4], strides = [1, 1]} : vector<16x96xf32> to vector<16x4xf32>
    %cst_14 = arith.constant 5.000000e-01 : f32
    %34 = vector.broadcast %cst_14 : f32 to vector<16x4xf32>
    %35 = arith.mulf %33, %34 : vector<16x4xf32>
    %36 = vector.extract_strided_slice %11 {offsets = [0, 36], sizes = [16, 4], strides = [1, 1]} : vector<16x96xf32> to vector<16x4xf32>
    %37 = vector.extract_strided_slice %11 {offsets = [0, 68], sizes = [16, 4], strides = [1, 1]} : vector<16x96xf32> to vector<16x4xf32>
    %38 = vector.shape_cast %35 : vector<16x4xf32> to vector<2x8x4xf32>
    %39 = vector.shape_cast %36 : vector<16x4xf32> to vector<2x8x4xf32>
    %40 = vector.shape_cast %37 : vector<16x4xf32> to vector<2x8x4xf32>
    "tpu.trace_start"() <{level = 10 : i32, message = "bqd,bkd->bqk"}> : () -> ()
    %cst_15 = arith.constant dense<0.000000e+00> : vector<2x8x8xf32>
    %41 = tpu.matmul %38, %39, %cst_15 {dimension_numbers = #tpu.dot_dimension_numbers<[2], [2], [1], [1], [0, 0, 0, 1, 1, 1], [0], [0]>} : vector<2x8x4xf32>, vector<2x8x4xf32>, vector<2x8x8xf32> -> vector<2x8x8xf32>
    "tpu.trace_stop"() : () -> ()
    %cst_16 = arith.constant dense<0xFF800000> : vector<2x8xf32>
    %42 = vector.multi_reduction <maximumf>, %41, %cst_16 [2] : vector<2x8x8xf32> to vector<2x8xf32>
    %43 = vector.shape_cast %42 : vector<2x8xf32> to vector<2x8x1xf32>
    %44 = vector.broadcast %43 : vector<2x8x1xf32> to vector<2x8x8xf32>
    %45 = arith.subf %41, %44 : vector<2x8x8xf32>
    %46 = math.exp %45 : vector<2x8x8xf32>
    %cst_17 = arith.constant dense<0.000000e+00> : vector<2x8xf32>
    %47 = vector.multi_reduction <add>, %46, %cst_17 [2] : vector<2x8x8xf32> to vector<2x8xf32>
    %48 = vector.shape_cast %47 : vector<2x8xf32> to vector<2x8x1xf32>
    %49 = tpu.reciprocal %48 {approx = true} : vector<2x8x1xf32> -> vector<2x8x1xf32>
    %50 = vector.broadcast %49 : vector<2x8x1xf32> to vector<2x8x8xf32>
    %51 = arith.mulf %46, %50 : vector<2x8x8xf32>
    "tpu.trace_start"() <{level = 10 : i32, message = "bqk,bkd->bqd"}> : () -> ()
    %cst_18 = arith.constant dense<0.000000e+00> : vector<2x8x4xf32>
    %52 = tpu.matmul %51, %40, %cst_18 {dimension_numbers = #tpu.dot_dimension_numbers<[2], [1], [1], [2], [0, 0, 0, 1, 1, 2], [0], [0]>} : vector<2x8x8xf32>, vector<2x8x4xf32>, vector<2x8x4xf32> -> vector<2x8x4xf32>
    "tpu.trace_stop"() : () -> ()
    %53 = vector.shape_cast %52 : vector<2x8x4xf32> to vector<16x4xf32>
    %54 = vector.extract_strided_slice %11 {offsets = [0, 8], sizes = [16, 4], strides = [1, 1]} : vector<16x96xf32> to vector<16x4xf32>
    %cst_19 = arith.constant 5.000000e-01 : f32
    %55 = vector.broadcast %cst_19 : f32 to vector<16x4xf32>
    %56 = arith.mulf %54, %55 : vector<16x4xf32>
    %57 = vector.extract_strided_slice %11 {offsets = [0, 40], sizes = [16, 4], strides = [1, 1]} : vector<16x96xf32> to vector<16x4xf32>
    %58 = vector.extract_strided_slice %11 {offsets = [0, 72], sizes = [16, 4], strides = [1, 1]} : vector<16x96xf32> to vector<16x4xf32>
    %59 = vector.shape_cast %56 : vector<16x4xf32> to vector<2x8x4xf32>
    %60 = vector.shape_cast %57 : vector<16x4xf32> to vector<2x8x4xf32>
    %61 = vector.shape_cast %58 : vector<16x4xf32> to vector<2x8x4xf32>
    "tpu.trace_start"() <{level = 10 : i32, message = "bqd,bkd->bqk"}> : () -> ()
    %cst_20 = arith.constant dense<0.000000e+00> : vector<2x8x8xf32>
    %62 = tpu.matmul %59, %60, %cst_20 {dimension_numbers = #tpu.dot_dimension_numbers<[2], [2], [1], [1], [0, 0, 0, 1, 1, 1], [0], [0]>} : vector<2x8x4xf32>, vector<2x8x4xf32>, vector<2x8x8xf32> -> vector<2x8x8xf32>
    "tpu.trace_stop"() : () -> ()
    %cst_21 = arith.constant dense<0xFF800000> : vector<2x8xf32>
    %63 = vector.multi_reduction <maximumf>, %62, %cst_21 [2] : vector<2x8x8xf32> to vector<2x8xf32>
    %64 = vector.shape_cast %63 : vector<2x8xf32> to vector<2x8x1xf32>
    %65 = vector.broadcast %64 : vector<2x8x1xf32> to vector<2x8x8xf32>
    %66 = arith.subf %62, %65 : vector<2x8x8xf32>
    %67 = math.exp %66 : vector<2x8x8xf32>
    %cst_22 = arith.constant dense<0.000000e+00> : vector<2x8xf32>
    %68 = vector.multi_reduction <add>, %67, %cst_22 [2] : vector<2x8x8xf32> to vector<2x8xf32>
    %69 = vector.shape_cast %68 : vector<2x8xf32> to vector<2x8x1xf32>
    %70 = tpu.reciprocal %69 {approx = true} : vector<2x8x1xf32> -> vector<2x8x1xf32>
    %71 = vector.broadcast %70 : vector<2x8x1xf32> to vector<2x8x8xf32>
    %72 = arith.mulf %67, %71 : vector<2x8x8xf32>
    "tpu.trace_start"() <{level = 10 : i32, message = "bqk,bkd->bqd"}> : () -> ()
    %cst_23 = arith.constant dense<0.000000e+00> : vector<2x8x4xf32>
    %73 = tpu.matmul %72, %61, %cst_23 {dimension_numbers = #tpu.dot_dimension_numbers<[2], [1], [1], [2], [0, 0, 0, 1, 1, 2], [0], [0]>} : vector<2x8x8xf32>, vector<2x8x4xf32>, vector<2x8x4xf32> -> vector<2x8x4xf32>
    "tpu.trace_stop"() : () -> ()
    %74 = vector.shape_cast %73 : vector<2x8x4xf32> to vector<16x4xf32>
    %75 = vector.extract_strided_slice %11 {offsets = [0, 12], sizes = [16, 4], strides = [1, 1]} : vector<16x96xf32> to vector<16x4xf32>
    %cst_24 = arith.constant 5.000000e-01 : f32
    %76 = vector.broadcast %cst_24 : f32 to vector<16x4xf32>
    %77 = arith.mulf %75, %76 : vector<16x4xf32>
    %78 = vector.extract_strided_slice %11 {offsets = [0, 44], sizes = [16, 4], strides = [1, 1]} : vector<16x96xf32> to vector<16x4xf32>
    %79 = vector.extract_strided_slice %11 {offsets = [0, 76], sizes = [16, 4], strides = [1, 1]} : vector<16x96xf32> to vector<16x4xf32>
    %80 = vector.shape_cast %77 : vector<16x4xf32> to vector<2x8x4xf32>
    %81 = vector.shape_cast %78 : vector<16x4xf32> to vector<2x8x4xf32>
    %82 = vector.shape_cast %79 : vector<16x4xf32> to vector<2x8x4xf32>
    "tpu.trace_start"() <{level = 10 : i32, message = "bqd,bkd->bqk"}> : () -> ()
    %cst_25 = arith.constant dense<0.000000e+00> : vector<2x8x8xf32>
    %83 = tpu.matmul %80, %81, %cst_25 {dimension_numbers = #tpu.dot_dimension_numbers<[2], [2], [1], [1], [0, 0, 0, 1, 1, 1], [0], [0]>} : vector<2x8x4xf32>, vector<2x8x4xf32>, vector<2x8x8xf32> -> vector<2x8x8xf32>
    "tpu.trace_stop"() : () -> ()
    %cst_26 = arith.constant dense<0xFF800000> : vector<2x8xf32>
    %84 = vector.multi_reduction <maximumf>, %83, %cst_26 [2] : vector<2x8x8xf32> to vector<2x8xf32>
    %85 = vector.shape_cast %84 : vector<2x8xf32> to vector<2x8x1xf32>
    %86 = vector.broadcast %85 : vector<2x8x1xf32> to vector<2x8x8xf32>
    %87 = arith.subf %83, %86 : vector<2x8x8xf32>
    %88 = math.exp %87 : vector<2x8x8xf32>
    %cst_27 = arith.constant dense<0.000000e+00> : vector<2x8xf32>
    %89 = vector.multi_reduction <add>, %88, %cst_27 [2] : vector<2x8x8xf32> to vector<2x8xf32>
    %90 = vector.shape_cast %89 : vector<2x8xf32> to vector<2x8x1xf32>
    %91 = tpu.reciprocal %90 {approx = true} : vector<2x8x1xf32> -> vector<2x8x1xf32>
    %92 = vector.broadcast %91 : vector<2x8x1xf32> to vector<2x8x8xf32>
    %93 = arith.mulf %88, %92 : vector<2x8x8xf32>
    "tpu.trace_start"() <{level = 10 : i32, message = "bqk,bkd->bqd"}> : () -> ()
    %cst_28 = arith.constant dense<0.000000e+00> : vector<2x8x4xf32>
    %94 = tpu.matmul %93, %82, %cst_28 {dimension_numbers = #tpu.dot_dimension_numbers<[2], [1], [1], [2], [0, 0, 0, 1, 1, 2], [0], [0]>} : vector<2x8x8xf32>, vector<2x8x4xf32>, vector<2x8x4xf32> -> vector<2x8x4xf32>
    "tpu.trace_stop"() : () -> ()
    %95 = vector.shape_cast %94 : vector<2x8x4xf32> to vector<16x4xf32>
    %96 = vector.extract_strided_slice %11 {offsets = [0, 16], sizes = [16, 4], strides = [1, 1]} : vector<16x96xf32> to vector<16x4xf32>
    %cst_29 = arith.constant 5.000000e-01 : f32
    %97 = vector.broadcast %cst_29 : f32 to vector<16x4xf32>
    %98 = arith.mulf %96, %97 : vector<16x4xf32>
    %99 = vector.extract_strided_slice %11 {offsets = [0, 48], sizes = [16, 4], strides = [1, 1]} : vector<16x96xf32> to vector<16x4xf32>
    %100 = vector.extract_strided_slice %11 {offsets = [0, 80], sizes = [16, 4], strides = [1, 1]} : vector<16x96xf32> to vector<16x4xf32>
    %101 = vector.shape_cast %98 : vector<16x4xf32> to vector<2x8x4xf32>
    %102 = vector.shape_cast %99 : vector<16x4xf32> to vector<2x8x4xf32>
    %103 = vector.shape_cast %100 : vector<16x4xf32> to vector<2x8x4xf32>
    "tpu.trace_start"() <{level = 10 : i32, message = "bqd,bkd->bqk"}> : () -> ()
    %cst_30 = arith.constant dense<0.000000e+00> : vector<2x8x8xf32>
    %104 = tpu.matmul %101, %102, %cst_30 {dimension_numbers = #tpu.dot_dimension_numbers<[2], [2], [1], [1], [0, 0, 0, 1, 1, 1], [0], [0]>} : vector<2x8x4xf32>, vector<2x8x4xf32>, vector<2x8x8xf32> -> vector<2x8x8xf32>
    "tpu.trace_stop"() : () -> ()
    %cst_31 = arith.constant dense<0xFF800000> : vector<2x8xf32>
    %105 = vector.multi_reduction <maximumf>, %104, %cst_31 [2] : vector<2x8x8xf32> to vector<2x8xf32>
    %106 = vector.shape_cast %105 : vector<2x8xf32> to vector<2x8x1xf32>
    %107 = vector.broadcast %106 : vector<2x8x1xf32> to vector<2x8x8xf32>
    %108 = arith.subf %104, %107 : vector<2x8x8xf32>
    %109 = math.exp %108 : vector<2x8x8xf32>
    %cst_32 = arith.constant dense<0.000000e+00> : vector<2x8xf32>
    %110 = vector.multi_reduction <add>, %109, %cst_32 [2] : vector<2x8x8xf32> to vector<2x8xf32>
    %111 = vector.shape_cast %110 : vector<2x8xf32> to vector<2x8x1xf32>
    %112 = tpu.reciprocal %111 {approx = true} : vector<2x8x1xf32> -> vector<2x8x1xf32>
    %113 = vector.broadcast %112 : vector<2x8x1xf32> to vector<2x8x8xf32>
    %114 = arith.mulf %109, %113 : vector<2x8x8xf32>
    "tpu.trace_start"() <{level = 10 : i32, message = "bqk,bkd->bqd"}> : () -> ()
    %cst_33 = arith.constant dense<0.000000e+00> : vector<2x8x4xf32>
    %115 = tpu.matmul %114, %103, %cst_33 {dimension_numbers = #tpu.dot_dimension_numbers<[2], [1], [1], [2], [0, 0, 0, 1, 1, 2], [0], [0]>} : vector<2x8x8xf32>, vector<2x8x4xf32>, vector<2x8x4xf32> -> vector<2x8x4xf32>
    "tpu.trace_stop"() : () -> ()
    %116 = vector.shape_cast %115 : vector<2x8x4xf32> to vector<16x4xf32>
    %117 = vector.extract_strided_slice %11 {offsets = [0, 20], sizes = [16, 4], strides = [1, 1]} : vector<16x96xf32> to vector<16x4xf32>
    %cst_34 = arith.constant 5.000000e-01 : f32
    %118 = vector.broadcast %cst_34 : f32 to vector<16x4xf32>
    %119 = arith.mulf %117, %118 : vector<16x4xf32>
    %120 = vector.extract_strided_slice %11 {offsets = [0, 52], sizes = [16, 4], strides = [1, 1]} : vector<16x96xf32> to vector<16x4xf32>
    %121 = vector.extract_strided_slice %11 {offsets = [0, 84], sizes = [16, 4], strides = [1, 1]} : vector<16x96xf32> to vector<16x4xf32>
    %122 = vector.shape_cast %119 : vector<16x4xf32> to vector<2x8x4xf32>
    %123 = vector.shape_cast %120 : vector<16x4xf32> to vector<2x8x4xf32>
    %124 = vector.shape_cast %121 : vector<16x4xf32> to vector<2x8x4xf32>
    "tpu.trace_start"() <{level = 10 : i32, message = "bqd,bkd->bqk"}> : () -> ()
    %cst_35 = arith.constant dense<0.000000e+00> : vector<2x8x8xf32>
    %125 = tpu.matmul %122, %123, %cst_35 {dimension_numbers = #tpu.dot_dimension_numbers<[2], [2], [1], [1], [0, 0, 0, 1, 1, 1], [0], [0]>} : vector<2x8x4xf32>, vector<2x8x4xf32>, vector<2x8x8xf32> -> vector<2x8x8xf32>
    "tpu.trace_stop"() : () -> ()
    %cst_36 = arith.constant dense<0xFF800000> : vector<2x8xf32>
    %126 = vector.multi_reduction <maximumf>, %125, %cst_36 [2] : vector<2x8x8xf32> to vector<2x8xf32>
    %127 = vector.shape_cast %126 : vector<2x8xf32> to vector<2x8x1xf32>
    %128 = vector.broadcast %127 : vector<2x8x1xf32> to vector<2x8x8xf32>
    %129 = arith.subf %125, %128 : vector<2x8x8xf32>
    %130 = math.exp %129 : vector<2x8x8xf32>
    %cst_37 = arith.constant dense<0.000000e+00> : vector<2x8xf32>
    %131 = vector.multi_reduction <add>, %130, %cst_37 [2] : vector<2x8x8xf32> to vector<2x8xf32>
    %132 = vector.shape_cast %131 : vector<2x8xf32> to vector<2x8x1xf32>
    %133 = tpu.reciprocal %132 {approx = true} : vector<2x8x1xf32> -> vector<2x8x1xf32>
    %134 = vector.broadcast %133 : vector<2x8x1xf32> to vector<2x8x8xf32>
    %135 = arith.mulf %130, %134 : vector<2x8x8xf32>
    "tpu.trace_start"() <{level = 10 : i32, message = "bqk,bkd->bqd"}> : () -> ()
    %cst_38 = arith.constant dense<0.000000e+00> : vector<2x8x4xf32>
    %136 = tpu.matmul %135, %124, %cst_38 {dimension_numbers = #tpu.dot_dimension_numbers<[2], [1], [1], [2], [0, 0, 0, 1, 1, 2], [0], [0]>} : vector<2x8x8xf32>, vector<2x8x4xf32>, vector<2x8x4xf32> -> vector<2x8x4xf32>
    "tpu.trace_stop"() : () -> ()
    %137 = vector.shape_cast %136 : vector<2x8x4xf32> to vector<16x4xf32>
    %138 = vector.extract_strided_slice %11 {offsets = [0, 24], sizes = [16, 4], strides = [1, 1]} : vector<16x96xf32> to vector<16x4xf32>
    %cst_39 = arith.constant 5.000000e-01 : f32
    %139 = vector.broadcast %cst_39 : f32 to vector<16x4xf32>
    %140 = arith.mulf %138, %139 : vector<16x4xf32>
    %141 = vector.extract_strided_slice %11 {offsets = [0, 56], sizes = [16, 4], strides = [1, 1]} : vector<16x96xf32> to vector<16x4xf32>
    %142 = vector.extract_strided_slice %11 {offsets = [0, 88], sizes = [16, 4], strides = [1, 1]} : vector<16x96xf32> to vector<16x4xf32>
    %143 = vector.shape_cast %140 : vector<16x4xf32> to vector<2x8x4xf32>
    %144 = vector.shape_cast %141 : vector<16x4xf32> to vector<2x8x4xf32>
    %145 = vector.shape_cast %142 : vector<16x4xf32> to vector<2x8x4xf32>
    "tpu.trace_start"() <{level = 10 : i32, message = "bqd,bkd->bqk"}> : () -> ()
    %cst_40 = arith.constant dense<0.000000e+00> : vector<2x8x8xf32>
    %146 = tpu.matmul %143, %144, %cst_40 {dimension_numbers = #tpu.dot_dimension_numbers<[2], [2], [1], [1], [0, 0, 0, 1, 1, 1], [0], [0]>} : vector<2x8x4xf32>, vector<2x8x4xf32>, vector<2x8x8xf32> -> vector<2x8x8xf32>
    "tpu.trace_stop"() : () -> ()
    %cst_41 = arith.constant dense<0xFF800000> : vector<2x8xf32>
    %147 = vector.multi_reduction <maximumf>, %146, %cst_41 [2] : vector<2x8x8xf32> to vector<2x8xf32>
    %148 = vector.shape_cast %147 : vector<2x8xf32> to vector<2x8x1xf32>
    %149 = vector.broadcast %148 : vector<2x8x1xf32> to vector<2x8x8xf32>
    %150 = arith.subf %146, %149 : vector<2x8x8xf32>
    %151 = math.exp %150 : vector<2x8x8xf32>
    %cst_42 = arith.constant dense<0.000000e+00> : vector<2x8xf32>
    %152 = vector.multi_reduction <add>, %151, %cst_42 [2] : vector<2x8x8xf32> to vector<2x8xf32>
    %153 = vector.shape_cast %152 : vector<2x8xf32> to vector<2x8x1xf32>
    %154 = tpu.reciprocal %153 {approx = true} : vector<2x8x1xf32> -> vector<2x8x1xf32>
    %155 = vector.broadcast %154 : vector<2x8x1xf32> to vector<2x8x8xf32>
    %156 = arith.mulf %151, %155 : vector<2x8x8xf32>
    "tpu.trace_start"() <{level = 10 : i32, message = "bqk,bkd->bqd"}> : () -> ()
    %cst_43 = arith.constant dense<0.000000e+00> : vector<2x8x4xf32>
    %157 = tpu.matmul %156, %145, %cst_43 {dimension_numbers = #tpu.dot_dimension_numbers<[2], [1], [1], [2], [0, 0, 0, 1, 1, 2], [0], [0]>} : vector<2x8x8xf32>, vector<2x8x4xf32>, vector<2x8x4xf32> -> vector<2x8x4xf32>
    "tpu.trace_stop"() : () -> ()
    %158 = vector.shape_cast %157 : vector<2x8x4xf32> to vector<16x4xf32>
    %159 = vector.extract_strided_slice %11 {offsets = [0, 28], sizes = [16, 4], strides = [1, 1]} : vector<16x96xf32> to vector<16x4xf32>
    %cst_44 = arith.constant 5.000000e-01 : f32
    %160 = vector.broadcast %cst_44 : f32 to vector<16x4xf32>
    %161 = arith.mulf %159, %160 : vector<16x4xf32>
    %162 = vector.extract_strided_slice %11 {offsets = [0, 60], sizes = [16, 4], strides = [1, 1]} : vector<16x96xf32> to vector<16x4xf32>
    %163 = vector.extract_strided_slice %11 {offsets = [0, 92], sizes = [16, 4], strides = [1, 1]} : vector<16x96xf32> to vector<16x4xf32>
    %164 = vector.shape_cast %161 : vector<16x4xf32> to vector<2x8x4xf32>
    %165 = vector.shape_cast %162 : vector<16x4xf32> to vector<2x8x4xf32>
    %166 = vector.shape_cast %163 : vector<16x4xf32> to vector<2x8x4xf32>
    "tpu.trace_start"() <{level = 10 : i32, message = "bqd,bkd->bqk"}> : () -> ()
    %cst_45 = arith.constant dense<0.000000e+00> : vector<2x8x8xf32>
    %167 = tpu.matmul %164, %165, %cst_45 {dimension_numbers = #tpu.dot_dimension_numbers<[2], [2], [1], [1], [0, 0, 0, 1, 1, 1], [0], [0]>} : vector<2x8x4xf32>, vector<2x8x4xf32>, vector<2x8x8xf32> -> vector<2x8x8xf32>
    "tpu.trace_stop"() : () -> ()
    %cst_46 = arith.constant dense<0xFF800000> : vector<2x8xf32>
    %168 = vector.multi_reduction <maximumf>, %167, %cst_46 [2] : vector<2x8x8xf32> to vector<2x8xf32>
    %169 = vector.shape_cast %168 : vector<2x8xf32> to vector<2x8x1xf32>
    %170 = vector.broadcast %169 : vector<2x8x1xf32> to vector<2x8x8xf32>
    %171 = arith.subf %167, %170 : vector<2x8x8xf32>
    %172 = math.exp %171 : vector<2x8x8xf32>
    %cst_47 = arith.constant dense<0.000000e+00> : vector<2x8xf32>
    %173 = vector.multi_reduction <add>, %172, %cst_47 [2] : vector<2x8x8xf32> to vector<2x8xf32>
    %174 = vector.shape_cast %173 : vector<2x8xf32> to vector<2x8x1xf32>
    %175 = tpu.reciprocal %174 {approx = true} : vector<2x8x1xf32> -> vector<2x8x1xf32>
    %176 = vector.broadcast %175 : vector<2x8x1xf32> to vector<2x8x8xf32>
    %177 = arith.mulf %172, %176 : vector<2x8x8xf32>
    "tpu.trace_start"() <{level = 10 : i32, message = "bqk,bkd->bqd"}> : () -> ()
    %cst_48 = arith.constant dense<0.000000e+00> : vector<2x8x4xf32>
    %178 = tpu.matmul %177, %166, %cst_48 {dimension_numbers = #tpu.dot_dimension_numbers<[2], [1], [1], [2], [0, 0, 0, 1, 1, 2], [0], [0]>} : vector<2x8x8xf32>, vector<2x8x4xf32>, vector<2x8x4xf32> -> vector<2x8x4xf32>
    "tpu.trace_stop"() : () -> ()
    %179 = vector.shape_cast %178 : vector<2x8x4xf32> to vector<16x4xf32>
    %180 = tpu.concatenate %32, %53, %74, %95, %116, %137, %158, %179 in 1 : vector<16x4xf32>, vector<16x4xf32>, vector<16x4xf32>, vector<16x4xf32>, vector<16x4xf32>, vector<16x4xf32>, vector<16x4xf32>, vector<16x4xf32> -> vector<16x32xf32>
    %c0_49 = arith.constant 0 : index
    %c0_50 = arith.constant 0 : index
    %181 = vector.load %arg6[%c0_49, %c0_50] : memref<16x32xf32, #tpu.memory_space<vmem>>, vector<16x32xf32>
    %182 = arith.index_cast %7 : i32 to index
    %c0_51 = arith.constant 0 : index
    %c0_52 = arith.constant 0 : index
    %183 = vector.load %arg3[%182, %c0_51, %c0_52] : memref<1x32x32xf32, #tpu.memory_space<vmem>>, vector<1x32x32xf32>
    %184 = vector.shape_cast %183 : vector<1x32x32xf32> to vector<32x32xf32>
    %cst_53 = arith.constant dense<0.000000e+00> : vector<16x32xf32>
    %185 = tpu.matmul %180, %184, %cst_53 {dimension_numbers = #tpu.dot_dimension_numbers<[1], [0], [0], [1], [0, 0, 1, 1], [], []>} : vector<16x32xf32>, vector<32x32xf32>, vector<16x32xf32> -> vector<16x32xf32>
    %186 = arith.addf %181, %185 : vector<16x32xf32>
    %c0_54 = arith.constant 0 : index
    %c0_55 = arith.constant 0 : index
    %187 = vector.load %arg6[%c0_54, %c0_55] : memref<16x32xf32, #tpu.memory_space<vmem>>, vector<16x32xf32>
    tpu.vector_store %arg6[%c0_54, %c0_55], %186 {strides = array<i32>} : memref<16x32xf32, #tpu.memory_space<vmem>>, vector<16x32xf32>,
    %c1_i32_56 = arith.constant 1 : i32
    %c0_57 = arith.constant 0 : index
    %c0_58 = arith.constant 0 : index
    %188 = vector.load %arg6[%c0_57, %c0_58] : memref<16x32xf32, #tpu.memory_space<vmem>>, vector<16x32xf32>
    %189 = vector.shape_cast %188 : vector<16x32xf32> to vector<2x8x32xf32>
    %c0_59 = arith.constant 0 : index
    %c0_60 = arith.constant 0 : index
    %c0_61 = arith.constant 0 : index
    %190 = vector.load %arg5[%c0_59, %c0_60, %c0_61] : memref<2x8x32xf32, #tpu.memory_space<vmem>>, vector<2x8x32xf32>
    tpu.vector_store %arg5[%c0_59, %c0_60, %c0_61], %189 {strides = array<i32>} : memref<2x8x32xf32, #tpu.memory_space<vmem>>, vector<2x8x32xf32>,
    return
  }
  func.func @transform_0(%arg0: i32) -> (i32, i32, i32) {
    %c0_i32 = arith.constant 0 : i32
    %c0_i32_0 = arith.constant 0 : i32
    %c0_i32_1 = arith.constant 0 : i32
    return %arg0, %c0_i32, %c0_i32_0 : i32, i32, i32
  }
  func.func @transform_1(%arg0: i32) -> (i32, i32, i32) {
    %c0_i32 = arith.constant 0 : i32
    %c0_i32_0 = arith.constant 0 : i32
    %c0_i32_1 = arith.constant 0 : i32
    %c0_i32_2 = arith.constant 0 : i32
    return %c0_i32, %c0_i32_0, %c0_i32_1 : i32, i32, i32
  }
  func.func @transform_2(%arg0: i32) -> (i32, i32, i32) {
    %c0_i32 = arith.constant 0 : i32
    %c0_i32_0 = arith.constant 0 : i32
    %c0_i32_1 = arith.constant 0 : i32
    %c0_i32_2 = arith.constant 0 : i32
    return %c0_i32, %c0_i32_0, %c0_i32_1 : i32, i32, i32
  }
  func.func @transform_3(%arg0: i32) -> (i32, i32) {
    %c0_i32 = arith.constant 0 : i32
    %c0_i32_0 = arith.constant 0 : i32
    %c0_i32_1 = arith.constant 0 : i32
    return %c0_i32, %c0_i32_0 : i32, i32
  }
  func.func @transform_4(%arg0: i32) -> (i32, i32, i32) {
    %c0_i32 = arith.constant 0 : i32
    %c0_i32_0 = arith.constant 0 : i32
    %c0_i32_1 = arith.constant 0 : i32
    return %arg0, %c0_i32, %c0_i32_0 : i32, i32, i32
  }
}

module attributes {stable_mosaic.version = 11 : i64} {
  func.func @_self_attention_kernel(%arg0: i32, %arg1: memref<2x8x32xf32, #tpu.memory_space<vmem>>, %arg2: memref<1x32x96xf32, #tpu.memory_space<vmem>>, %arg3: memref<1x32x32xf32, #tpu.memory_space<vmem>>, %arg4: memref<1x32xf32, #tpu.memory_space<vmem>>, %arg5: memref<2x8x32xf32, #tpu.memory_space<vmem>>, %arg6: memref<16x32xf32, #tpu.memory_space<vmem>>) attributes {dimension_semantics = [#tpu.dimension_semantics<parallel>], iteration_bounds = array<i64: 1>, scalar_prefetch = 0 : i64, scratch_operands = 1 : i64, tpu.core_type = #tpu.core_type<tc>, window_params = [{transform_indices = @transform_0, window_bounds = array<i64: 2, 8, 32>}, {pipeline_mode = #tpu.pipeline_mode<synchronous>, transform_indices = @transform_1, window_bounds = array<i64: 1, 32, 96>}, {pipeline_mode = #tpu.pipeline_mode<synchronous>, transform_indices = @transform_2, window_bounds = array<i64: 1, 32, 32>}, {pipeline_mode = #tpu.pipeline_mode<synchronous>, transform_indices = @transform_3, window_bounds = array<i64: 1, 32>}, {transform_indices = @transform_4, window_bounds = array<i64: 2, 8, 32>}]} {
    %c0 = arith.constant 0 : index
    %c0_0 = arith.constant 0 : index
    %c0_1 = arith.constant 0 : index
    %0 = vector.load %arg1[%c0, %c0_0, %c0_1] : memref<2x8x32xf32, #tpu.memory_space<vmem>>, vector<2x8x32xf32>
    %1 = vector.shape_cast %0 : vector<2x8x32xf32> to vector<16x32xf32>
    %c0_2 = arith.constant 0 : index
    %c0_3 = arith.constant 0 : index
    %2 = vector.load %arg4[%c0_2, %c0_3] : memref<1x32xf32, #tpu.memory_space<vmem>>, vector<1x32xf32>
    %3 = vector.shape_cast %2 : vector<1x32xf32> to vector<1x32xf32>
    %4 = vector.broadcast %3 : vector<1x32xf32> to vector<16x32xf32>
    %c0_4 = arith.constant 0 : index
    %c0_5 = arith.constant 0 : index
    %5 = vector.load %arg6[%c0_4, %c0_5] : memref<16x32xf32, #tpu.memory_space<vmem>>, vector<16x32xf32>
    tpu.vector_store %arg6[%c0_4, %c0_5], %4 {strides = array<i32>} : memref<16x32xf32, #tpu.memory_space<vmem>>, vector<16x32xf32>,
    %c0_i32 = arith.constant 0 : i32
    %c1_i32 = arith.constant 1 : i32
    %6 = arith.muli %c0_i32, %c1_i32 : i32
    %c0_i32_6 = arith.constant 0 : i32
    %7 = arith.addi %c0_i32_6, %6 : i32
    %8 = arith.index_cast %7 : i32 to index
    %c0_7 = arith.constant 0 : index
    %c0_8 = arith.constant 0 : index
    %9 = vector.load %arg2[%8, %c0_7, %c0_8] : memref<1x32x96xf32, #tpu.memory_space<vmem>>, vector<1x32x96xf32>
    %10 = vector.shape_cast %9 : vector<1x32x96xf32> to vector<32x96xf32>
    %cst = arith.constant dense<0.000000e+00> : vector<16x96xf32>
    %11 = tpu.matmul %1, %10, %cst {dimension_numbers = #tpu.dot_dimension_numbers<[1], [0], [0], [1], [0, 0, 1, 1], [], []>} : vector<16x32xf32>, vector<32x96xf32>, vector<16x96xf32> -> vector<16x96xf32>
    %12 = vector.extract_strided_slice %11 {offsets = [0, 0], sizes = [16, 4], strides = [1, 1]} : vector<16x96xf32> to vector<16x4xf32>
    %cst_9 = arith.constant 5.000000e-01 : f32
    %13 = vector.broadcast %cst_9 : f32 to vector<16x4xf32>
    %14 = arith.mulf %12, %13 : vector<16x4xf32>
    %15 = vector.extract_strided_slice %11 {offsets = [0, 32], sizes = [16, 4], strides = [1, 1]} : vector<16x96xf32> to vector<16x4xf32>
    %16 = vector.extract_strided_slice %11 {offsets = [0, 64], sizes = [16, 4], strides = [1, 1]} : vector<16x96xf32> to vector<16x4xf32>
    %17 = vector.shape_cast %14 : vector<16x4xf32> to vector<2x8x4xf32>
    %18 = vector.shape_cast %15 : vector<16x4xf32> to vector<2x8x4xf32>
    %19 = vector.shape_cast %16 : vector<16x4xf32> to vector<2x8x4xf32>
    "tpu.trace_start"() <{level = 10 : i32, message = "bqd,bkd->bqk"}> : () -> ()
    %cst_10 = arith.constant dense<0.000000e+00> : vector<2x8x8xf32>
    %20 = tpu.matmul %17, %18, %cst_10 {dimension_numbers = #tpu.dot_dimension_numbers<[2], [2], [1], [1], [0, 0, 0, 1, 1, 1], [0], [0]>} : vector<2x8x4xf32>, vector<2x8x4xf32>, vector<2x8x8xf32> -> vector<2x8x8xf32>
    "tpu.trace_stop"() : () -> ()
    %cst_11 = arith.constant dense<0xFF800000> : vector<2x8xf32>
    %21 = vector.multi_reduction <maximumf>, %20, %cst_11 [2] : vector<2x8x8xf32> to vector<2x8xf32>
    %22 = vector.shape_cast %21 : vector<2x8xf32> to vector<2x8x1xf32>
    %23 = vector.broadcast %22 : vector<2x8x1xf32> to vector<2x8x8xf32>
    %24 = arith.subf %20, %23 : vector<2x8x8xf32>
    %25 = math.exp %24 : vector<2x8x8xf32>
    %cst_12 = arith.constant dense<0.000000e+00> : vector<2x8xf32>
    %26 = vector.multi_reduction <add>, %25, %cst_12 [2] : vector<2x8x8xf32> to vector<2x8xf32>
    %27 = vector.shape_cast %26 : vector<2x8xf32> to vector<2x8x1xf32>
    %28 = tpu.reciprocal %27 {approx = true} : vector<2x8x1xf32> -> vector<2x8x1xf32>
    %29 = vector.broadcast %28 : vector<2x8x1xf32> to vector<2x8x8xf32>
    %30 = arith.mulf %25, %29 : vector<2x8x8xf32>
    "tpu.trace_start"() <{level = 10 : i32, message = "bqk,bkd->bqd"}> : () -> ()
    %cst_13 = arith.constant dense<0.000000e+00> : vector<2x8x4xf32>
    %31 = tpu.matmul %30, %19, %cst_13 {dimension_numbers = #tpu.dot_dimension_numbers<[2], [1], [1], [2], [0, 0, 0, 1, 1, 2], [0], [0]>} : vector<2x8x8xf32>, vector<2x8x4xf32>, vector<2x8x4xf32> -> vector<2x8x4xf32>
    "tpu.trace_stop"() : () -> ()
    %32 = vector.shape_cast %31 : vector<2x8x4xf32> to vector<16x4xf32>
    %33 = vector.extract_strided_slice %11 {offsets = [0, 4], sizes = [16, 4], strides = [1, 1]} : vector<16x96xf32> to vector<16x4xf32>
    %cst_14 = arith.constant 5.000000e-01 : f32
    %34 = vector.broadcast %cst_14 : f32 to vector<16x4xf32>
    %35 = arith.mulf %33, %34 : vector<16x4xf32>
    %36 = vector.extract_strided_slice %11 {offsets = [0, 36], sizes = [16, 4], strides = [1, 1]} : vector<16x96xf32> to vector<16x4xf32>
    %37 = vector.extract_strided_slice %11 {offsets = [0, 68], sizes = [16, 4], strides = [1, 1]} : vector<16x96xf32> to vector<16x4xf32>
    %38 = vector.shape_cast %35 : vector<16x4xf32> to vector<2x8x4xf32>
    %39 = vector.shape_cast %36 : vector<16x4xf32> to vector<2x8x4xf32>
    %40 = vector.shape_cast %37 : vector<16x4xf32> to vector<2x8x4xf32>
    "tpu.trace_start"() <{level = 10 : i32, message = "bqd,bkd->bqk"}> : () -> ()
    %cst_15 = arith.constant dense<0.000000e+00> : vector<2x8x8xf32>
    %41 = tpu.matmul %38, %39, %cst_15 {dimension_numbers = #tpu.dot_dimension_numbers<[2], [2], [1], [1], [0, 0, 0, 1, 1, 1], [0], [0]>} : vector<2x8x4xf32>, vector<2x8x4xf32>, vector<2x8x8xf32> -> vector<2x8x8xf32>
    "tpu.trace_stop"() : () -> ()
    %cst_16 = arith.constant dense<0xFF800000> : vector<2x8xf32>
    %42 = vector.multi_reduction <maximumf>, %41, %cst_16 [2] : vector<2x8x8xf32> to vector<2x8xf32>
    %43 = vector.shape_cast %42 : vector<2x8xf32> to vector<2x8x1xf32>
    %44 = vector.broadcast %43 : vector<2x8x1xf32> to vector<2x8x8xf32>
    %45 = arith.subf %41, %44 : vector<2x8x8xf32>
    %46 = math.exp %45 : vector<2x8x8xf32>
    %cst_17 = arith.constant dense<0.000000e+00> : vector<2x8xf32>
    %47 = vector.multi_reduction <add>, %46, %cst_17 [2] : vector<2x8x8xf32> to vector<2x8xf32>
    %48 = vector.shape_cast %47 : vector<2x8xf32> to vector<2x8x1xf32>
    %49 = tpu.reciprocal %48 {approx = true} : vector<2x8x1xf32> -> vector<2x8x1xf32>
    %50 = vector.broadcast %49 : vector<2x8x1xf32> to vector<2x8x8xf32>
    %51 = arith.mulf %46, %50 : vector<2x8x8xf32>
    "tpu.trace_start"() <{level = 10 : i32, message = "bqk,bkd->bqd"}> : () -> ()
    %cst_18 = arith.constant dense<0.000000e+00> : vector<2x8x4xf32>
    %52 = tpu.matmul %51, %40, %cst_18 {dimension_numbers = #tpu.dot_dimension_numbers<[2], [1], [1], [2], [0, 0, 0, 1, 1, 2], [0], [0]>} : vector<2x8x8xf32>, vector<2x8x4xf32>, vector<2x8x4xf32> -> vector<2x8x4xf32>
    "tpu.trace_stop"() : () -> ()
    %53 = vector.shape_cast %52 : vector<2x8x4xf32> to vector<16x4xf32>
    %54 = vector.extract_strided_slice %11 {offsets = [0, 8], sizes = [16, 4], strides = [1, 1]} : vector<16x96xf32> to vector<16x4xf32>
    %cst_19 = arith.constant 5.000000e-01 : f32
    %55 = vector.broadcast %cst_19 : f32 to vector<16x4xf32>
    %56 = arith.mulf %54, %55 : vector<16x4xf32>
    %57 = vector.extract_strided_slice %11 {offsets = [0, 40], sizes = [16, 4], strides = [1, 1]} : vector<16x96xf32> to vector<16x4xf32>
    %58 = vector.extract_strided_slice %11 {offsets = [0, 72], sizes = [16, 4], strides = [1, 1]} : vector<16x96xf32> to vector<16x4xf32>
    %59 = vector.shape_cast %56 : vector<16x4xf32> to vector<2x8x4xf32>
    %60 = vector.shape_cast %57 : vector<16x4xf32> to vector<2x8x4xf32>
    %61 = vector.shape_cast %58 : vector<16x4xf32> to vector<2x8x4xf32>
    "tpu.trace_start"() <{level = 10 : i32, message = "bqd,bkd->bqk"}> : () -> ()
    %cst_20 = arith.constant dense<0.000000e+00> : vector<2x8x8xf32>
    %62 = tpu.matmul %59, %60, %cst_20 {dimension_numbers = #tpu.dot_dimension_numbers<[2], [2], [1], [1], [0, 0, 0, 1, 1, 1], [0], [0]>} : vector<2x8x4xf32>, vector<2x8x4xf32>, vector<2x8x8xf32> -> vector<2x8x8xf32>
    "tpu.trace_stop"() : () -> ()
    %cst_21 = arith.constant dense<0xFF800000> : vector<2x8xf32>
    %63 = vector.multi_reduction <maximumf>, %62, %cst_21 [2] : vector<2x8x8xf32> to vector<2x8xf32>
    %64 = vector.shape_cast %63 : vector<2x8xf32> to vector<2x8x1xf32>
    %65 = vector.broadcast %64 : vector<2x8x1xf32> to vector<2x8x8xf32>
    %66 = arith.subf %62, %65 : vector<2x8x8xf32>
    %67 = math.exp %66 : vector<2x8x8xf32>
    %cst_22 = arith.constant dense<0.000000e+00> : vector<2x8xf32>
    %68 = vector.multi_reduction <add>, %67, %cst_22 [2] : vector<2x8x8xf32> to vector<2x8xf32>
    %69 = vector.shape_cast %68 : vector<2x8xf32> to vector<2x8x1xf32>
    %70 = tpu.reciprocal %69 {approx = true} : vector<2x8x1xf32> -> vector<2x8x1xf32>
    %71 = vector.broadcast %70 : vector<2x8x1xf32> to vector<2x8x8xf32>
    %72 = arith.mulf %67, %71 : vector<2x8x8xf32>
    "tpu.trace_start"() <{level = 10 : i32, message = "bqk,bkd->bqd"}> : () -> ()
    %cst_23 = arith.constant dense<0.000000e+00> : vector<2x8x4xf32>
    %73 = tpu.matmul %72, %61, %cst_23 {dimension_numbers = #tpu.dot_dimension_numbers<[2], [1], [1], [2], [0, 0, 0, 1, 1, 2], [0], [0]>} : vector<2x8x8xf32>, vector<2x8x4xf32>, vector<2x8x4xf32> -> vector<2x8x4xf32>
    "tpu.trace_stop"() : () -> ()
    %74 = vector.shape_cast %73 : vector<2x8x4xf32> to vector<16x4xf32>
    %75 = vector.extract_strided_slice %11 {offsets = [0, 12], sizes = [16, 4], strides = [1, 1]} : vector<16x96xf32> to vector<16x4xf32>
    %cst_24 = arith.constant 5.000000e-01 : f32
    %76 = vector.broadcast %cst_24 : f32 to vector<16x4xf32>
    %77 = arith.mulf %75, %76 : vector<16x4xf32>
    %78 = vector.extract_strided_slice %11 {offsets = [0, 44], sizes = [16, 4], strides = [1, 1]} : vector<16x96xf32> to vector<16x4xf32>
    %79 = vector.extract_strided_slice %11 {offsets = [0, 76], sizes = [16, 4], strides = [1, 1]} : vector<16x96xf32> to vector<16x4xf32>
    %80 = vector.shape_cast %77 : vector<16x4xf32> to vector<2x8x4xf32>
    %81 = vector.shape_cast %78 : vector<16x4xf32> to vector<2x8x4xf32>
    %82 = vector.shape_cast %79 : vector<16x4xf32> to vector<2x8x4xf32>
    "tpu.trace_start"() <{level = 10 : i32, message = "bqd,bkd->bqk"}> : () -> ()
    %cst_25 = arith.constant dense<0.000000e+00> : vector<2x8x8xf32>
    %83 = tpu.matmul %80, %81, %cst_25 {dimension_numbers = #tpu.dot_dimension_numbers<[2], [2], [1], [1], [0, 0, 0, 1, 1, 1], [0], [0]>} : vector<2x8x4xf32>, vector<2x8x4xf32>, vector<2x8x8xf32> -> vector<2x8x8xf32>
    "tpu.trace_stop"() : () -> ()
    %cst_26 = arith.constant dense<0xFF800000> : vector<2x8xf32>
    %84 = vector.multi_reduction <maximumf>, %83, %cst_26 [2] : vector<2x8x8xf32> to vector<2x8xf32>
    %85 = vector.shape_cast %84 : vector<2x8xf32> to vector<2x8x1xf32>
    %86 = vector.broadcast %85 : vector<2x8x1xf32> to vector<2x8x8xf32>
    %87 = arith.subf %83, %86 : vector<2x8x8xf32>
    %88 = math.exp %87 : vector<2x8x8xf32>
    %cst_27 = arith.constant dense<0.000000e+00> : vector<2x8xf32>
    %89 = vector.multi_reduction <add>, %88, %cst_27 [2] : vector<2x8x8xf32> to vector<2x8xf32>
    %90 = vector.shape_cast %89 : vector<2x8xf32> to vector<2x8x1xf32>
    %91 = tpu.reciprocal %90 {approx = true} : vector<2x8x1xf32> -> vector<2x8x1xf32>
    %92 = vector.broadcast %91 : vector<2x8x1xf32> to vector<2x8x8xf32>
    %93 = arith.mulf %88, %92 : vector<2x8x8xf32>
    "tpu.trace_start"() <{level = 10 : i32, message = "bqk,bkd->bqd"}> : () -> ()
    %cst_28 = arith.constant dense<0.000000e+00> : vector<2x8x4xf32>
    %94 = tpu.matmul %93, %82, %cst_28 {dimension_numbers = #tpu.dot_dimension_numbers<[2], [1], [1], [2], [0, 0, 0, 1, 1, 2], [0], [0]>} : vector<2x8x8xf32>, vector<2x8x4xf32>, vector<2x8x4xf32> -> vector<2x8x4xf32>
    "tpu.trace_stop"() : () -> ()
    %95 = vector.shape_cast %94 : vector<2x8x4xf32> to vector<16x4xf32>
    %96 = vector.extract_strided_slice %11 {offsets = [0, 16], sizes = [16, 4], strides = [1, 1]} : vector<16x96xf32> to vector<16x4xf32>
    %cst_29 = arith.constant 5.000000e-01 : f32
    %97 = vector.broadcast %cst_29 : f32 to vector<16x4xf32>
    %98 = arith.mulf %96, %97 : vector<16x4xf32>
    %99 = vector.extract_strided_slice %11 {offsets = [0, 48], sizes = [16, 4], strides = [1, 1]} : vector<16x96xf32> to vector<16x4xf32>
    %100 = vector.extract_strided_slice %11 {offsets = [0, 80], sizes = [16, 4], strides = [1, 1]} : vector<16x96xf32> to vector<16x4xf32>
    %101 = vector.shape_cast %98 : vector<16x4xf32> to vector<2x8x4xf32>
    %102 = vector.shape_cast %99 : vector<16x4xf32> to vector<2x8x4xf32>
    %103 = vector.shape_cast %100 : vector<16x4xf32> to vector<2x8x4xf32>
    "tpu.trace_start"() <{level = 10 : i32, message = "bqd,bkd->bqk"}> : () -> ()
    %cst_30 = arith.constant dense<0.000000e+00> : vector<2x8x8xf32>
    %104 = tpu.matmul %101, %102, %cst_30 {dimension_numbers = #tpu.dot_dimension_numbers<[2], [2], [1], [1], [0, 0, 0, 1, 1, 1], [0], [0]>} : vector<2x8x4xf32>, vector<2x8x4xf32>, vector<2x8x8xf32> -> vector<2x8x8xf32>
    "tpu.trace_stop"() : () -> ()
    %cst_31 = arith.constant dense<0xFF800000> : vector<2x8xf32>
    %105 = vector.multi_reduction <maximumf>, %104, %cst_31 [2] : vector<2x8x8xf32> to vector<2x8xf32>
    %106 = vector.shape_cast %105 : vector<2x8xf32> to vector<2x8x1xf32>
    %107 = vector.broadcast %106 : vector<2x8x1xf32> to vector<2x8x8xf32>
    %108 = arith.subf %104, %107 : vector<2x8x8xf32>
    %109 = math.exp %108 : vector<2x8x8xf32>
    %cst_32 = arith.constant dense<0.000000e+00> : vector<2x8xf32>
    %110 = vector.multi_reduction <add>, %109, %cst_32 [2] : vector<2x8x8xf32> to vector<2x8xf32>
    %111 = vector.shape_cast %110 : vector<2x8xf32> to vector<2x8x1xf32>
    %112 = tpu.reciprocal %111 {approx = true} : vector<2x8x1xf32> -> vector<2x8x1xf32>
    %113 = vector.broadcast %112 : vector<2x8x1xf32> to vector<2x8x8xf32>
    %114 = arith.mulf %109, %113 : vector<2x8x8xf32>
    "tpu.trace_start"() <{level = 10 : i32, message = "bqk,bkd->bqd"}> : () -> ()
    %cst_33 = arith.constant dense<0.000000e+00> : vector<2x8x4xf32>
    %115 = tpu.matmul %114, %103, %cst_33 {dimension_numbers = #tpu.dot_dimension_numbers<[2], [1], [1], [2], [0, 0, 0, 1, 1, 2], [0], [0]>} : vector<2x8x8xf32>, vector<2x8x4xf32>, vector<2x8x4xf32> -> vector<2x8x4xf32>
    "tpu.trace_stop"() : () -> ()
    %116 = vector.shape_cast %115 : vector<2x8x4xf32> to vector<16x4xf32>
    %117 = vector.extract_strided_slice %11 {offsets = [0, 20], sizes = [16, 4], strides = [1, 1]} : vector<16x96xf32> to vector<16x4xf32>
    %cst_34 = arith.constant 5.000000e-01 : f32
    %118 = vector.broadcast %cst_34 : f32 to vector<16x4xf32>
    %119 = arith.mulf %117, %118 : vector<16x4xf32>
    %120 = vector.extract_strided_slice %11 {offsets = [0, 52], sizes = [16, 4], strides = [1, 1]} : vector<16x96xf32> to vector<16x4xf32>
    %121 = vector.extract_strided_slice %11 {offsets = [0, 84], sizes = [16, 4], strides = [1, 1]} : vector<16x96xf32> to vector<16x4xf32>
    %122 = vector.shape_cast %119 : vector<16x4xf32> to vector<2x8x4xf32>
    %123 = vector.shape_cast %120 : vector<16x4xf32> to vector<2x8x4xf32>
    %124 = vector.shape_cast %121 : vector<16x4xf32> to vector<2x8x4xf32>
    "tpu.trace_start"() <{level = 10 : i32, message = "bqd,bkd->bqk"}> : () -> ()
    %cst_35 = arith.constant dense<0.000000e+00> : vector<2x8x8xf32>
    %125 = tpu.matmul %122, %123, %cst_35 {dimension_numbers = #tpu.dot_dimension_numbers<[2], [2], [1], [1], [0, 0, 0, 1, 1, 1], [0], [0]>} : vector<2x8x4xf32>, vector<2x8x4xf32>, vector<2x8x8xf32> -> vector<2x8x8xf32>
    "tpu.trace_stop"() : () -> ()
    %cst_36 = arith.constant dense<0xFF800000> : vector<2x8xf32>
    %126 = vector.multi_reduction <maximumf>, %125, %cst_36 [2] : vector<2x8x8xf32> to vector<2x8xf32>
    %127 = vector.shape_cast %126 : vector<2x8xf32> to vector<2x8x1xf32>
    %128 = vector.broadcast %127 : vector<2x8x1xf32> to vector<2x8x8xf32>
    %129 = arith.subf %125, %128 : vector<2x8x8xf32>
    %130 = math.exp %129 : vector<2x8x8xf32>
    %cst_37 = arith.constant dense<0.000000e+00> : vector<2x8xf32>
    %131 = vector.multi_reduction <add>, %130, %cst_37 [2] : vector<2x8x8xf32> to vector<2x8xf32>
    %132 = vector.shape_cast %131 : vector<2x8xf32> to vector<2x8x1xf32>
    %133 = tpu.reciprocal %132 {approx = true} : vector<2x8x1xf32> -> vector<2x8x1xf32>
    %134 = vector.broadcast %133 : vector<2x8x1xf32> to vector<2x8x8xf32>
    %135 = arith.mulf %130, %134 : vector<2x8x8xf32>
    "tpu.trace_start"() <{level = 10 : i32, message = "bqk,bkd->bqd"}> : () -> ()
    %cst_38 = arith.constant dense<0.000000e+00> : vector<2x8x4xf32>
    %136 = tpu.matmul %135, %124, %cst_38 {dimension_numbers = #tpu.dot_dimension_numbers<[2], [1], [1], [2], [0, 0, 0, 1, 1, 2], [0], [0]>} : vector<2x8x8xf32>, vector<2x8x4xf32>, vector<2x8x4xf32> -> vector<2x8x4xf32>
    "tpu.trace_stop"() : () -> ()
    %137 = vector.shape_cast %136 : vector<2x8x4xf32> to vector<16x4xf32>
    %138 = vector.extract_strided_slice %11 {offsets = [0, 24], sizes = [16, 4], strides = [1, 1]} : vector<16x96xf32> to vector<16x4xf32>
    %cst_39 = arith.constant 5.000000e-01 : f32
    %139 = vector.broadcast %cst_39 : f32 to vector<16x4xf32>
    %140 = arith.mulf %138, %139 : vector<16x4xf32>
    %141 = vector.extract_strided_slice %11 {offsets = [0, 56], sizes = [16, 4], strides = [1, 1]} : vector<16x96xf32> to vector<16x4xf32>
    %142 = vector.extract_strided_slice %11 {offsets = [0, 88], sizes = [16, 4], strides = [1, 1]} : vector<16x96xf32> to vector<16x4xf32>
    %143 = vector.shape_cast %140 : vector<16x4xf32> to vector<2x8x4xf32>
    %144 = vector.shape_cast %141 : vector<16x4xf32> to vector<2x8x4xf32>
    %145 = vector.shape_cast %142 : vector<16x4xf32> to vector<2x8x4xf32>
    "tpu.trace_start"() <{level = 10 : i32, message = "bqd,bkd->bqk"}> : () -> ()
    %cst_40 = arith.constant dense<0.000000e+00> : vector<2x8x8xf32>
    %146 = tpu.matmul %143, %144, %cst_40 {dimension_numbers = #tpu.dot_dimension_numbers<[2], [2], [1], [1], [0, 0, 0, 1, 1, 1], [0], [0]>} : vector<2x8x4xf32>, vector<2x8x4xf32>, vector<2x8x8xf32> -> vector<2x8x8xf32>
    "tpu.trace_stop"() : () -> ()
    %cst_41 = arith.constant dense<0xFF800000> : vector<2x8xf32>
    %147 = vector.multi_reduction <maximumf>, %146, %cst_41 [2] : vector<2x8x8xf32> to vector<2x8xf32>
    %148 = vector.shape_cast %147 : vector<2x8xf32> to vector<2x8x1xf32>
    %149 = vector.broadcast %148 : vector<2x8x1xf32> to vector<2x8x8xf32>
    %150 = arith.subf %146, %149 : vector<2x8x8xf32>
    %151 = math.exp %150 : vector<2x8x8xf32>
    %cst_42 = arith.constant dense<0.000000e+00> : vector<2x8xf32>
    %152 = vector.multi_reduction <add>, %151, %cst_42 [2] : vector<2x8x8xf32> to vector<2x8xf32>
    %153 = vector.shape_cast %152 : vector<2x8xf32> to vector<2x8x1xf32>
    %154 = tpu.reciprocal %153 {approx = true} : vector<2x8x1xf32> -> vector<2x8x1xf32>
    %155 = vector.broadcast %154 : vector<2x8x1xf32> to vector<2x8x8xf32>
    %156 = arith.mulf %151, %155 : vector<2x8x8xf32>
    "tpu.trace_start"() <{level = 10 : i32, message = "bqk,bkd->bqd"}> : () -> ()
    %cst_43 = arith.constant dense<0.000000e+00> : vector<2x8x4xf32>
    %157 = tpu.matmul %156, %145, %cst_43 {dimension_numbers = #tpu.dot_dimension_numbers<[2], [1], [1], [2], [0, 0, 0, 1, 1, 2], [0], [0]>} : vector<2x8x8xf32>, vector<2x8x4xf32>, vector<2x8x4xf32> -> vector<2x8x4xf32>
    "tpu.trace_stop"() : () -> ()
    %158 = vector.shape_cast %157 : vector<2x8x4xf32> to vector<16x4xf32>
    %159 = vector.extract_strided_slice %11 {offsets = [0, 28], sizes = [16, 4], strides = [1, 1]} : vector<16x96xf32> to vector<16x4xf32>
    %cst_44 = arith.constant 5.000000e-01 : f32
    %160 = vector.broadcast %cst_44 : f32 to vector<16x4xf32>
    %161 = arith.mulf %159, %160 : vector<16x4xf32>
    %162 = vector.extract_strided_slice %11 {offsets = [0, 60], sizes = [16, 4], strides = [1, 1]} : vector<16x96xf32> to vector<16x4xf32>
    %163 = vector.extract_strided_slice %11 {offsets = [0, 92], sizes = [16, 4], strides = [1, 1]} : vector<16x96xf32> to vector<16x4xf32>
    %164 = vector.shape_cast %161 : vector<16x4xf32> to vector<2x8x4xf32>
    %165 = vector.shape_cast %162 : vector<16x4xf32> to vector<2x8x4xf32>
    %166 = vector.shape_cast %163 : vector<16x4xf32> to vector<2x8x4xf32>
    "tpu.trace_start"() <{level = 10 : i32, message = "bqd,bkd->bqk"}> : () -> ()
    %cst_45 = arith.constant dense<0.000000e+00> : vector<2x8x8xf32>
    %167 = tpu.matmul %164, %165, %cst_45 {dimension_numbers = #tpu.dot_dimension_numbers<[2], [2], [1], [1], [0, 0, 0, 1, 1, 1], [0], [0]>} : vector<2x8x4xf32>, vector<2x8x4xf32>, vector<2x8x8xf32> -> vector<2x8x8xf32>
    "tpu.trace_stop"() : () -> ()
    %cst_46 = arith.constant dense<0xFF800000> : vector<2x8xf32>
    %168 = vector.multi_reduction <maximumf>, %167, %cst_46 [2] : vector<2x8x8xf32> to vector<2x8xf32>
    %169 = vector.shape_cast %168 : vector<2x8xf32> to vector<2x8x1xf32>
    %170 = vector.broadcast %169 : vector<2x8x1xf32> to vector<2x8x8xf32>
    %171 = arith.subf %167, %170 : vector<2x8x8xf32>
    %172 = math.exp %171 : vector<2x8x8xf32>
    %cst_47 = arith.constant dense<0.000000e+00> : vector<2x8xf32>
    %173 = vector.multi_reduction <add>, %172, %cst_47 [2] : vector<2x8x8xf32> to vector<2x8xf32>
    %174 = vector.shape_cast %173 : vector<2x8xf32> to vector<2x8x1xf32>
    %175 = tpu.reciprocal %174 {approx = true} : vector<2x8x1xf32> -> vector<2x8x1xf32>
    %176 = vector.broadcast %175 : vector<2x8x1xf32> to vector<2x8x8xf32>
    %177 = arith.mulf %172, %176 : vector<2x8x8xf32>
    "tpu.trace_start"() <{level = 10 : i32, message = "bqk,bkd->bqd"}> : () -> ()
    %cst_48 = arith.constant dense<0.000000e+00> : vector<2x8x4xf32>
    %178 = tpu.matmul %177, %166, %cst_48 {dimension_numbers = #tpu.dot_dimension_numbers<[2], [1], [1], [2], [0, 0, 0, 1, 1, 2], [0], [0]>} : vector<2x8x8xf32>, vector<2x8x4xf32>, vector<2x8x4xf32> -> vector<2x8x4xf32>
    "tpu.trace_stop"() : () -> ()
    %179 = vector.shape_cast %178 : vector<2x8x4xf32> to vector<16x4xf32>
    %180 = tpu.concatenate %32, %53, %74, %95, %116, %137, %158, %179 in 1 : vector<16x4xf32>, vector<16x4xf32>, vector<16x4xf32>, vector<16x4xf32>, vector<16x4xf32>, vector<16x4xf32>, vector<16x4xf32>, vector<16x4xf32> -> vector<16x32xf32>
    %c0_49 = arith.constant 0 : index
    %c0_50 = arith.constant 0 : index
    %181 = vector.load %arg6[%c0_49, %c0_50] : memref<16x32xf32, #tpu.memory_space<vmem>>, vector<16x32xf32>
    %182 = arith.index_cast %7 : i32 to index
    %c0_51 = arith.constant 0 : index
    %c0_52 = arith.constant 0 : index
    %183 = vector.load %arg3[%182, %c0_51, %c0_52] : memref<1x32x32xf32, #tpu.memory_space<vmem>>, vector<1x32x32xf32>
    %184 = vector.shape_cast %183 : vector<1x32x32xf32> to vector<32x32xf32>
    %cst_53 = arith.constant dense<0.000000e+00> : vector<16x32xf32>
    %185 = tpu.matmul %180, %184, %cst_53 {dimension_numbers = #tpu.dot_dimension_numbers<[1], [0], [0], [1], [0, 0, 1, 1], [], []>} : vector<16x32xf32>, vector<32x32xf32>, vector<16x32xf32> -> vector<16x32xf32>
    %186 = arith.addf %181, %185 : vector<16x32xf32>
    %c0_54 = arith.constant 0 : index
    %c0_55 = arith.constant 0 : index
    %187 = vector.load %arg6[%c0_54, %c0_55] : memref<16x32xf32, #tpu.memory_space<vmem>>, vector<16x32xf32>
    tpu.vector_store %arg6[%c0_54, %c0_55], %186 {strides = array<i32>} : memref<16x32xf32, #tpu.memory_space<vmem>>, vector<16x32xf32>,
    %c1_i32_56 = arith.constant 1 : i32
    %c0_57 = arith.constant 0 : index
    %c0_58 = arith.constant 0 : index
    %188 = vector.load %arg6[%c0_57, %c0_58] : memref<16x32xf32, #tpu.memory_space<vmem>>, vector<16x32xf32>
    %189 = vector.shape_cast %188 : vector<16x32xf32> to vector<2x8x32xf32>
    %c0_59 = arith.constant 0 : index
    %c0_60 = arith.constant 0 : index
    %c0_61 = arith.constant 0 : index
    %190 = vector.load %arg5[%c0_59, %c0_60, %c0_61] : memref<2x8x32xf32, #tpu.memory_space<vmem>>, vector<2x8x32xf32>
    tpu.vector_store %arg5[%c0_59, %c0_60, %c0_61], %189 {strides = array<i32>} : memref<2x8x32xf32, #tpu.memory_space<vmem>>, vector<2x8x32xf32>,
    return
  }
  func.func @transform_0(%arg0: i32) -> (i32, i32, i32) {
    %c0_i32 = arith.constant 0 : i32
    %c0_i32_0 = arith.constant 0 : i32
    %c0_i32_1 = arith.constant 0 : i32
    return %arg0, %c0_i32, %c0_i32_0 : i32, i32, i32
  }
  func.func @transform_1(%arg0: i32) -> (i32, i32, i32) {
    %c0_i32 = arith.constant 0 : i32
    %c0_i32_0 = arith.constant 0 : i32
    %c0_i32_1 = arith.constant 0 : i32
    %c0_i32_2 = arith.constant 0 : i32
    return %c0_i32, %c0_i32_0, %c0_i32_1 : i32, i32, i32
  }
  func.func @transform_2(%arg0: i32) -> (i32, i32, i32) {
    %c0_i32 = arith.constant 0 : i32
    %c0_i32_0 = arith.constant 0 : i32
    %c0_i32_1 = arith.constant 0 : i32
    %c0_i32_2 = arith.constant 0 : i32
    return %c0_i32, %c0_i32_0, %c0_i32_1 : i32, i32, i32
  }
  func.func @transform_3(%arg0: i32) -> (i32, i32) {
    %c0_i32 = arith.constant 0 : i32
    %c0_i32_0 = arith.constant 0 : i32
    %c0_i32_1 = arith.constant 0 : i32
    return %c0_i32, %c0_i32_0 : i32, i32
  }
  func.func @transform_4(%arg0: i32) -> (i32, i32, i32) {
    %c0_i32 = arith.constant 0 : i32
    %c0_i32_0 = arith.constant 0 : i32
    %c0_i32_1 = arith.constant 0 : i32
    return %arg0, %c0_i32, %c0_i32_0 : i32, i32, i32
  }
}

</mosaic_0001>

<bundles_post_ra>
// kernel: tpu_custom_call.1
= control target key start
LH: loop header
LB: loop body
LE: loop exit
PB: predicated region body
PF: predicated region fallthrough
CT: control target
= control target key end

     0   :  { %9 = vsyncpa [#allocation4], 0  ;;  %s3934_s0 = inlined_call_operand.hbm [shape: f32[2,8,32], index: 0, kind: input, shape index: {}]   ;;  %s3935_s1 = inlined_call_operand.hbm [shape: f32[1,32,96], index: 1, kind: input, shape index: {}]   ;;  %s3936_s2 = inlined_call_operand.hbm [shape: f32[1,32,32], index: 2, kind: input, shape index: {}]   ;;  %s3937_s3 = inlined_call_operand.vmem [shape: f32[1,32], index: 3, kind: input, shape index: {}]   ;;  %s3938_s4 = inlined_call_operand.hbm [shape: f32[2,8,32], index: 4, kind: output, shape index: {}]  }
   0x1   :  { %10 = vsyncpa [#allocation7], 0 }
   0x2   :  { %11 = vsyncpa [#allocation5], 0  ;;  %s3510_s15 = smov [#allocation6]   ;;  %s3511_s17 = smov [#allocation3]  }
   0x3   :  { %s29_s16 = sshll.u32 %s3510_s15, 4  ;;  %s17_s18 = sshll.u32 %s3511_s17, 4  ;;  %s30_s16 = int_to_ptr.vmem [resolvable:$true] %s29_s16  ;;  %s3572_s18 = int_to_ptr.vmem [resolvable:$true] %s17_s18 }
   0x4   :  { %s3416_s21 = scalar_lea.hbm %s3935_s1, 512 }
   0x5   :  { %p3417_p0 = scmp.ne.s32.totalorder %s3935_s1, %s3416_s21  ;;  %p3420_p1 = scmp.lt.u32.totalorder %s3416_s21, %s3935_s1 }
   0x7   :  { %p3422_p2 = pnand %p3420_p1, %p3417_p0 }
   0x9   :  { %3425 = shalt.err (!%p3422_p2)
}
   0xa   :  { %s3426_s26 = scalar_lea.vmem %s30_s16, 512  ;;  %p3431_p4 = scmp.lt.s32.totalorder %s30_s16, %s30_s16 }
   0xb   :  { %p3427_p3 = scmp.ne.s32.totalorder %s30_s16, %s3426_s26  ;;  %p3432_p5 = scmp.lt.s32.totalorder %s3426_s26, %s3426_s26 }
   0xd   :  { %p3433_p6 = por %p3432_p5, %p3431_p4 }
   0xf   :  { %p3434_p7 = pnand %p3433_p6, %p3427_p3 }
  0x11   :  { %3437 = shalt.err (!%p3434_p7)
}
  0x12   :  { %s3512_s27 = smov 128   ;;  %s3513_s28 = smov 8  }
  0x13   :  { %35 = dma.hbm_to_vmem [thread:$0]  %s3935_s1, 512, %s30_s16, [#allocation7], %s3512_s27, %s3512_s27, %s3513_s28  }
  0x14   :  { %s3438_s7 = scalar_lea.hbm %s3934_s0, 256 }
  0x15   :  { %p3439_p8 = scmp.ne.s32.totalorder %s3934_s0, %s3438_s7  ;;  %p3442_p9 = scmp.lt.u32.totalorder %s3438_s7, %s3934_s0 }
  0x17   :  { %p3444_p10 = pnand %p3442_p9, %p3439_p8 }
  0x19   :  { %3447 = shalt.err (!%p3444_p10)
}
  0x1a   :  { %s3448_s12 = scalar_lea.vmem %s3572_s18, 256  ;;  %p3453_p12 = scmp.lt.s32.totalorder %s3572_s18, %s3572_s18 }
  0x1b   :  { %p3449_p11 = scmp.ne.s32.totalorder %s3572_s18, %s3448_s12  ;;  %p3454_p13 = scmp.lt.s32.totalorder %s3448_s12, %s3448_s12 }
  0x1d   :  { %p3455_p0 = por %p3454_p13, %p3453_p12 }
  0x1f   :  { %p3456_p1 = pnand %p3455_p0, %p3449_p11 }
  0x21   :  { %3459 = shalt.err (!%p3456_p1)
}
  0x22   :  { %23 = dma.hbm_to_vmem [thread:$0]  %s3934_s0, 256, %s3572_s18, [#allocation4], %s3512_s27, %s3512_s27, %s3513_s28  }
  0x23   :  { %s3514_s14 = smov [#allocation8]   ;;  %s3460_s19 = scalar_lea.hbm %s3936_s2, 512 }
  0x24   :  { %s41_s15 = sshll.u32 %s3514_s14, 4  ;;  %p3461_p2 = scmp.ne.s32.totalorder %s3936_s2, %s3460_s19  ;;  %s42_s15 = int_to_ptr.vmem [resolvable:$true] %s41_s15 }
  0x25   :  { %p3464_p3 = scmp.lt.u32.totalorder %s3460_s19, %s3936_s2 }
  0x27   :  { %p3466_p4 = pnand %p3464_p3, %p3461_p2 }
  0x29   :  { %3469 = shalt.err (!%p3466_p4)
}
  0x2a   :  { %s3470_s24 = scalar_lea.vmem %s42_s15, 512  ;;  %p3475_p6 = scmp.lt.s32.totalorder %s42_s15, %s42_s15 }
  0x2b   :  { %p3471_p5 = scmp.ne.s32.totalorder %s42_s15, %s3470_s24  ;;  %p3476_p7 = scmp.lt.s32.totalorder %s3470_s24, %s3470_s24 }
  0x2d   :  { %p3477_p8 = por %p3476_p7, %p3475_p6 }
  0x2f   :  { %p3478_p9 = pnand %p3477_p8, %p3471_p5 }
  0x31   :  { %3481 = shalt.err (!%p3478_p9)
}
  0x32   :  { %47 = dma.hbm_to_vmem [thread:$0]  %s3936_s2, 512, %s42_s15, [#allocation7], %s3512_s27, %s3512_s27, %s3513_s28  }
  0x33   :  { %3504 = dma.done.wait [#allocation4], 256  }
  0x34   :  { %3505 = vsyncadd [#allocation4], 4294967040 }
  0x35   :  { %3506 = dma.done.wait [#allocation7], 1024  }
  0x36   :  { %3507 = vsyncadd [#allocation7], 4294966272  ;;  %vm68_vm0 = vcmask 261120   ;;  %v71_v0 = vld [vmem:[#allocation6] sm:$0xff]  ;;  %v72_v1 = vld [vmem:[#allocation6 + $0x8] sm:$0xff]  ;;  %v3515_v8 = vmov 0.0  }
  0x37   :  { %v73_v2 = vld [vmem:[#allocation6 + $0x10] sm:$0xff]  ;;  %v3299_v3 = vpack.c.bf16 %v72_v1, %v71_v0  ;;  %v74_v4 = vld [vmem:[#allocation6 + $0x18] sm:$0xff]  ;;  %3128 = vmatprep.subr.mxu1 %v3515_v8  ;;  %vm3516_vm1 = vmmov 0   ;;  %s3517_s2 = smov 96   ;;  %vm161_vm2 = vcmask 31744   ;;  %vm315_vm3 = vcmask 64512  }
  0x38   :  { %v59_v5 = vld [vmem:[#allocation3] sm:$0xff]  ;;  %v3303_v6 = vpack.c.bf16 %v74_v4, %v73_v2  ;;  %v60_v7 = vld [vmem:[#allocation3 + $0x8] sm:$0xff]  ;;  %3130 = vmatprep.mubr.msk.f32.mxu1 %vm3516_vm1, %v3515_v8  ;;  %s3518_s25 = smov 64   ;;  %s3519_s26 = smov 92   ;;  %vm2860_vm4 = vcmask 97280   ;;  %vm2863_vm5 = vcmask 130048  }
  0x39   :  { %3125 = vmatprep.mubr.msk.f32.mxu0 %vm68_vm0, %v59_v5  ;;  %3300 = vmatprep.subr.bf16.mxu0 %v3299_v3  ;;  %s3520_s29 = smov 124   ;;  %s3521_s30 = smov 60   ;;  %vm2866_vm6 = vcmask 162816   ;;  %vm2872_vm7 = vcmask 228352   ;;  %vm2869_vm8 = vcmask 195584  }
  0x3a   :  { %3302 = vmatpush3.bf16.msra.mxu0 %v3299_v3  ;;  %s3522_s5 = smov 120   ;;  %s3523_s6 = smov 88  }
  0x3b   :  { %3304 = vmatprep.subr.bf16.mxu0 %v3303_v6  ;;  %s3524_s7 = smov 56   ;;  %s3525_s8 = smov 84  }
  0x3c   :  { %s3526_s9 = smov 116   ;;  %s3527_s10 = smov 52  }
  0x3d   :  { %s3528_s11 = smov 80   ;;  %s3529_s12 = smov 112  }
  0x3e   :  { %3306 = vmatpush3.bf16.msra.mxu0 %v3303_v6  ;;  %s3530_s1 = smov 48   ;;  %s3531_s13 = smov 76  }
  0x3f   :  { %3148 = vmatprep.subr.mxu0 %v3515_v8  ;;  %s3532_s14 = smov 108   ;;  %s3533_s15 = smov 44  }
  0x40   :  { %s3534_s16 = smov 72   ;;  %s3535_s17 = smov 104  }
  0x41   :  { %3126 = vmatmul.mubr.msk.f32.vlgmr.msra.gmra.mrb[0].mxu0 %vm68_vm0, %v60_v7  ;;  %s3536_s19 = smov 40   ;;  %s3537_s20 = smov 68  }
  0x42   :  { %3150 = vmatprep.mubr.msk.f32.mxu0 %vm3516_vm1, %v3515_v8  ;;  %s3538_s21 = smov 100   ;;  %s3539_s22 = smov 36  }
  0x43   :  { %s3540_s23 = smov 4   ;;  %s3541_s24 = smov 12  }
  0x44   :  { %s3542_s0 = smov 16   ;;  %s3543_s18 = smov 20  }
 0x114   :  { %v3632_v9 = vpop.f32.mrb[0].mxu0 }
 0x115   :  { %v3634_v10 = vpop.f32.mrb[1].mxu0  ;;  %v3649_v14 = vmul.f32 0.5, %v3632_v9 }
 0x116   :  { %159 = vrot.lane.b32.xlu0 %v3634_v10, %s3517_s2  ;;  %v3641_v12 = vmul.f32 0.5, %v3634_v10 }
 0x11a   :  { %238 = vrot.lane.b32.xlu0 %v3632_v9, %s3517_s2  ;;  %s3544_s2 = smov 24  }
 0x188   :  { %v160_v11 = vpop.permute.xlu0 %159 }
 0x189   :  { %3129 = vmatpush3.xpose.msk.msra.mxu1 %vm161_vm2, %v160_v11 }
 0x18a   :  { %3133 = vmatprep.subr.mxu1 %v3515_v8 }
 0x18c   :  { %v239_v13 = vpop.permute.xlu0 %238  ;;  %3131 = vmatmul.mubr.msk.f32.vlgmr.msra.gmra.mrb[0].mxu1 %vm161_vm2, %v3641_v12 }
 0x18d   :  { %3134 = vmatpush3.xpose.msk.msra.mxu1 %vm161_vm2, %v239_v13  ;;  %3135 = vmatprep.mubr.msk.f32.mxu1 %vm3516_vm1, %v3515_v8 }
 0x18e   :  { %3138 = vmatprep.subr.mxu1 %v3515_v8 }
 0x190   :  { %3136 = vmatmul.mubr.msk.f32.vlgmr.msra.gmra.mrb[2].mxu1 %vm161_vm2, %v3649_v14 }
 0x191   :  { %3140 = vmatprep.mubr.msk.f32.mxu1 %vm3516_vm1, %v3515_v8 }
 0x25f   :  { %v233_v15 = vpop.f32.mrb[0].mxu1 }
 0x260   :  { %v3132_v16 = vpop.f32.mrb[1].mxu1  ;;  %v316_v17 = vsel %vm315_vm3, %v233_v15, -inf }
 0x261   :  { %317 = vmax.xlane.f32.xlu1 %v316_v17 }
 0x263   :  { %v311_v18 = vpop.f32.mrb[2].mxu1 }
 0x264   :  { %v3137_v19 = vpop.f32.mrb[3].mxu1  ;;  %v319_v20 = vsel %vm315_vm3, %v311_v18, -inf }
 0x265   :  { %320 = vmax.xlane.f32.xlu1 %v319_v20 }
 0x276   :  { %338 = vrot.lane.b32.xlu1 %v3634_v10, %s3518_s25 }
 0x27a   :  { %414 = vrot.lane.b32.xlu1 %v3632_v9, %s3518_s25  ;;  %s3545_s25 = smov 28  }
 0x27e   :  { %492 = vrot.lane.b32.xlu1 %v3634_v10, %s3519_s26 }
 0x282   :  { %570 = vrot.lane.b32.xlu1 %v3632_v9, %s3519_s26 }
 0x2ee   :  { %v318_v21 = vpop.xlane.xlu1 %317 }
 0x2ef   :  { %v322_v22 = vsub.f32 %v233_v15, %v318_v21 }
 0x2f1   :  { %v324_v23 = vmul.f32 1.442695, %v322_v22 }
 0x2f2   :  { %v321_v24 = vpop.xlane.xlu1 %320 }
 0x2f3   :  { %3352 = vpow2.f32 %v324_v23  ;;  %v323_v25 = vsub.f32 %v311_v18, %v321_v24 }
 0x2f5   :  { %v326_v26 = vmul.f32 1.442695, %v323_v25 }
 0x2f6   :  { %v339_v27 = vpop.permute.xlu1 %338 }
 0x2f7   :  { %3354 = vpow2.f32 %v326_v26  ;;  %3139 = vmatpush3.msra.mxu1 %v339_v27 }
 0x2f8   :  { %3143 = vmatprep.subr.mxu1 %v3515_v8 }
 0x2fa   :  { %v415_v28 = vpop.permute.xlu1 %414 }
 0x2fd   :  { %v3353_v29 = vpop.eup %3352 }
 0x2fe   :  { %v493_v30 = vpop.permute.xlu1 %492  ;;  %v328_v31 = vsel %vm315_vm3, %v3353_v29, 0.0 }
 0x2ff   :  { %329 = vadd.xlane.f32.xlu0 %v328_v31  ;;  %3149 = vmatpush3.xpose.msk.msra.mxu0 %vm161_vm2, %v493_v30 }
 0x300   :  { %3158 = vmatprep.subr.mxu0 %v3515_v8 }
 0x301   :  { %v3355_v32 = vpop.eup %3354 }
 0x302   :  { %v331_v33 = vsel %vm315_vm3, %v3355_v32, 0.0  ;;  %v571_v34 = vpop.permute.xlu1 %570 }
 0x303   :  { %332 = vadd.xlane.f32.xlu1 %v331_v33 }
 0x314   :  { %568 = vrot.lane.b32.xlu1 %v3649_v14, %s3520_s29 }
 0x315   :  { %490 = vrot.lane.b32.xlu0 %v3641_v12, %s3520_s29 }
 0x38c   :  { %v330_v35 = vpop.xlane.xlu0 %329 }
 0x38d   :  { %3356 = vrcp.f32 %v330_v35 }
 0x390   :  { %v491_v36 = vpop.permute.xlu0 %490  ;;  %v333_v37 = vpop.xlane.xlu1 %332 }
 0x391   :  { %3358 = vrcp.f32 %v333_v37  ;;  %3151 = vmatmul.mubr.msk.f32.vlgmr.msra.gmra.mrb[2].mxu0 %vm161_vm2, %v491_v36 }
 0x392   :  { %3160 = vmatprep.mubr.msk.f32.mxu0 %vm3516_vm1, %v3515_v8 }
 0x394   :  { %v569_v42 = vpop.permute.xlu1 %568 }
 0x397   :  { %v3357_v38 = vpop.eup %3356 }
 0x398   :  { %v336_v39 = vmul.f32 %v3357_v38, %v3353_v29 }
 0x39a   :  { %3141 = vmatmul.mubr.msk.f32.vlgmr.msra.gmra.mrb[4].mxu1 %vm315_vm3, %v336_v39 }
 0x39b   :  { %v3359_v40 = vpop.eup %3358  ;;  %3144 = vmatpush3.msra.mxu1 %v415_v28  ;;  %3145 = vmatprep.mubr.msk.f32.mxu1 %vm3516_vm1, %v3515_v8 }
 0x39c   :  { %v337_v41 = vmul.f32 %v3359_v40, %v3355_v32  ;;  %3153 = vmatprep.subr.mxu1 %v3515_v8 }
 0x39e   :  { %3146 = vmatmul.mubr.msk.f32.vlgmr.msra.gmra.mrb[6].mxu1 %vm315_vm3, %v337_v41 }
 0x39f   :  { %3155 = vmatprep.mubr.msk.f32.mxu1 %vm3516_vm1, %v3515_v8 }
 0x3a2   :  { %3154 = vmatpush3.xpose.msk.msra.mxu1 %vm161_vm2, %v571_v34 }
 0x3a3   :  { %3163 = vmatprep.subr.mxu1 %v3515_v8 }
 0x3a5   :  { %3156 = vmatmul.mubr.msk.f32.vlgmr.msra.gmra.mrb[8].mxu1 %vm161_vm2, %v569_v42 }
 0x3a6   :  { %3165 = vmatprep.mubr.msk.f32.mxu1 %vm3516_vm1, %v3515_v8 }
 0x464   :  { %v564_v43 = vpop.f32.mrb[2].mxu0 }
 0x465   :  { %v3152_v44 = vpop.f32.mrb[3].mxu0  ;;  %v646_v45 = vsel %vm315_vm3, %v564_v43, -inf }
 0x466   :  { %647 = vmax.xlane.f32.xlu1 %v646_v45 }
 0x46d   :  { %v3685_v46 = vpop.f32.mrb[4].mxu1 }
 0x46e   :  { %v3142_v47 = vpop.f32.mrb[5].mxu1 }
 0x471   :  { %v3687_v48 = vpop.f32.mrb[6].mxu1 }
 0x472   :  { %v3147_v49 = vpop.f32.mrb[7].mxu1 }
 0x478   :  { %v642_v50 = vpop.f32.mrb[8].mxu1 }
 0x479   :  { %v3157_v51 = vpop.f32.mrb[9].mxu1  ;;  %v649_v52 = vsel %vm315_vm3, %v642_v50, -inf }
 0x47a   :  { %650 = vmax.xlane.f32.xlu0 %v649_v52 }
 0x490   :  { %744 = vrot.lane.b32.xlu0 %v3632_v9, %s3521_s30 }
 0x494   :  { %820 = vrot.lane.b32.xlu0 %v3641_v12, %s3522_s5 }
 0x4f3   :  { %v648_v53 = vpop.xlane.xlu1 %647 }
 0x4f4   :  { %v652_v54 = vsub.f32 %v564_v43, %v648_v53 }
 0x4f6   :  { %v654_v55 = vmul.f32 1.442695, %v652_v54 }
 0x4f8   :  { %3360 = vpow2.f32 %v654_v55 }
 0x502   :  { %v3361_v56 = vpop.eup %3360 }
 0x503   :  { %v658_v57 = vsel %vm315_vm3, %v3361_v56, 0.0 }
 0x504   :  { %659 = vadd.xlane.f32.xlu1 %v658_v57 }
 0x507   :  { %v651_v58 = vpop.xlane.xlu0 %650 }
 0x508   :  { %v653_v60 = vsub.f32 %v642_v50, %v651_v58 }
 0x50a   :  { %v656_v61 = vmul.f32 1.442695, %v653_v60 }
 0x50b   :  { %v745_v59 = vpop.permute.xlu0 %744 }
 0x50c   :  { %3164 = vmatpush3.msra.mxu1 %v745_v59  ;;  %3362 = vpow2.f32 %v656_v61 }
 0x50d   :  { %3173 = vmatprep.subr.mxu1 %v3515_v8 }
 0x50f   :  { %v821_v5 = vpop.permute.xlu0 %820 }
 0x515   :  { %668 = vrot.lane.b32.xlu1 %v3634_v10, %s3521_s30 }
 0x516   :  { %v3363_v62 = vpop.eup %3362 }
 0x517   :  { %v661_v63 = vsel %vm315_vm3, %v3363_v62, 0.0 }
 0x519   :  { %822 = vrot.lane.b32.xlu1 %v3634_v10, %s3523_s6 }
 0x51d   :  { %900 = vrot.lane.b32.xlu1 %v3632_v9, %s3523_s6 }
 0x541   :  { %662 = vadd.xlane.f32.xlu1 %v661_v63 }
 0x552   :  { %898 = vrot.lane.b32.xlu1 %v3649_v14, %s3522_s5 }
 0x591   :  { %v660_v0 = vpop.xlane.xlu1 %659 }
 0x592   :  { %3364 = vrcp.f32 %v660_v0 }
 0x595   :  { %v669_v1 = vpop.permute.xlu1 %668 }
 0x596   :  { %3159 = vmatpush3.msra.mxu0 %v669_v1 }
 0x597   :  { %3168 = vmatprep.subr.mxu0 %v3515_v8 }
 0x599   :  { %v823_v4 = vpop.permute.xlu1 %822 }
 0x59c   :  { %v3365_v2 = vpop.eup %3364 }
 0x59d   :  { %v666_v3 = vmul.f32 %v3365_v2, %v3361_v56  ;;  %v901_v6 = vpop.permute.xlu1 %900 }
 0x59f   :  { %3161 = vmatmul.mubr.msk.f32.vlgmr.msra.gmra.mrb[4].mxu0 %vm315_vm3, %v666_v3 }
 0x5a0   :  { %3169 = vmatpush3.xpose.msk.msra.mxu0 %vm161_vm2, %v823_v4  ;;  %3170 = vmatprep.mubr.msk.f32.mxu0 %vm3516_vm1, %v3515_v8 }
 0x5a1   :  { %3178 = vmatprep.subr.mxu0 %v3515_v8 }
 0x5a3   :  { %3171 = vmatmul.mubr.msk.f32.vlgmr.msra.gmra.mrb[6].mxu0 %vm161_vm2, %v821_v5 }
 0x5a4   :  { %3180 = vmatprep.mubr.msk.f32.mxu0 %vm3516_vm1, %v3515_v8 }
 0x5ce   :  { %v663_v7 = vpop.xlane.xlu1 %662 }
 0x5cf   :  { %3366 = vrcp.f32 %v663_v7 }
 0x5d2   :  { %v899_v15 = vpop.permute.xlu1 %898 }
 0x5d9   :  { %v3367_v11 = vpop.eup %3366 }
 0x5da   :  { %v667_v13 = vmul.f32 %v3367_v11, %v3363_v62 }
 0x5dc   :  { %3166 = vmatmul.mubr.msk.f32.vlgmr.msra.gmra.mrb[10].mxu1 %vm315_vm3, %v667_v13 }
 0x5dd   :  { %3174 = vmatpush3.xpose.msk.msra.mxu1 %vm161_vm2, %v901_v6  ;;  %3175 = vmatprep.mubr.msk.f32.mxu1 %vm3516_vm1, %v3515_v8 }
 0x5de   :  { %3183 = vmatprep.subr.mxu1 %v3515_v8 }
 0x5e0   :  { %3176 = vmatmul.mubr.msk.f32.vlgmr.msra.gmra.mrb[12].mxu1 %vm161_vm2, %v899_v15 }
 0x5e1   :  { %3185 = vmatprep.mubr.msk.f32.mxu1 %vm3516_vm1, %v3515_v8 }
 0x672   :  { %v3716_v16 = vpop.f32.mrb[4].mxu0 }
 0x673   :  { %v3162_v17 = vpop.f32.mrb[5].mxu0 }
 0x676   :  { %v894_v18 = vpop.f32.mrb[6].mxu0 }
 0x677   :  { %v3172_v19 = vpop.f32.mrb[7].mxu0  ;;  %v976_v20 = vsel %vm315_vm3, %v894_v18, -inf }
 0x678   :  { %977 = vmax.xlane.f32.xlu0 %v976_v20 }
 0x6af   :  { %v3719_v21 = vpop.f32.mrb[10].mxu1 }
 0x6b0   :  { %v3167_v22 = vpop.f32.mrb[11].mxu1 }
 0x6b3   :  { %v972_v23 = vpop.f32.mrb[12].mxu1 }
 0x6b4   :  { %v3177_v24 = vpop.f32.mrb[13].mxu1  ;;  %v979_v25 = vsel %vm315_vm3, %v972_v23, -inf }
 0x6b5   :  { %980 = vmax.xlane.f32.xlu1 %v979_v25 }
 0x6c6   :  { %998 = vrot.lane.b32.xlu1 %v3634_v10, %s3524_s7 }
 0x6ca   :  { %1152 = vrot.lane.b32.xlu1 %v3634_v10, %s3525_s8 }
 0x6ce   :  { %1230 = vrot.lane.b32.xlu1 %v3632_v9, %s3525_s8 }
 0x6d2   :  { %1228 = vrot.lane.b32.xlu1 %v3649_v14, %s3526_s9 }
 0x705   :  { %v978_v26 = vpop.xlane.xlu0 %977 }
 0x706   :  { %v982_v27 = vsub.f32 %v894_v18, %v978_v26 }
 0x708   :  { %v984_v28 = vmul.f32 1.442695, %v982_v27 }
 0x70a   :  { %3368 = vpow2.f32 %v984_v28 }
 0x714   :  { %v3369_v29 = vpop.eup %3368 }
 0x715   :  { %v988_v30 = vsel %vm315_vm3, %v3369_v29, 0.0 }
 0x716   :  { %989 = vadd.xlane.f32.xlu0 %v988_v30 }
 0x72c   :  { %1074 = vrot.lane.b32.xlu0 %v3632_v9, %s3524_s7 }
 0x742   :  { %v981_v31 = vpop.xlane.xlu1 %980 }
 0x743   :  { %v983_v32 = vsub.f32 %v972_v23, %v981_v31 }
 0x745   :  { %v986_v33 = vmul.f32 1.442695, %v983_v32 }
 0x746   :  { %v999_v34 = vpop.permute.xlu1 %998 }
 0x747   :  { %3370 = vpow2.f32 %v986_v33  ;;  %3179 = vmatpush3.msra.mxu0 %v999_v34 }
 0x748   :  { %3188 = vmatprep.subr.mxu0 %v3515_v8 }
 0x74a   :  { %v1153_v41 = vpop.permute.xlu1 %1152 }
 0x74e   :  { %v1231_v45 = vpop.permute.xlu1 %1230 }
 0x751   :  { %v3371_v35 = vpop.eup %3370 }
 0x752   :  { %v991_v36 = vsel %vm315_vm3, %v3371_v35, 0.0  ;;  %v1229_v49 = vpop.permute.xlu1 %1228 }
 0x753   :  { %992 = vadd.xlane.f32.xlu0 %v991_v36 }
 0x769   :  { %1150 = vrot.lane.b32.xlu0 %v3641_v12, %s3526_s9 }
 0x7a3   :  { %v990_v37 = vpop.xlane.xlu0 %989 }
 0x7a4   :  { %3372 = vrcp.f32 %v990_v37 }
 0x7a7   :  { %v1075_v38 = vpop.permute.xlu0 %1074 }
 0x7a8   :  { %3184 = vmatpush3.msra.mxu1 %v1075_v38 }
 0x7a9   :  { %3193 = vmatprep.subr.mxu1 %v3515_v8 }
 0x7ae   :  { %v3373_v39 = vpop.eup %3372 }
 0x7af   :  { %v996_v40 = vmul.f32 %v3373_v39, %v3369_v29 }
 0x7b1   :  { %3181 = vmatmul.mubr.msk.f32.vlgmr.msra.gmra.mrb[8].mxu0 %vm315_vm3, %v996_v40 }
 0x7b2   :  { %3189 = vmatpush3.xpose.msk.msra.mxu0 %vm161_vm2, %v1153_v41  ;;  %3190 = vmatprep.mubr.msk.f32.mxu0 %vm3516_vm1, %v3515_v8 }
 0x7b3   :  { %3198 = vmatprep.subr.mxu0 %v3515_v8 }
 0x7e0   :  { %v993_v42 = vpop.xlane.xlu0 %992 }
 0x7e1   :  { %3374 = vrcp.f32 %v993_v42 }
 0x7e4   :  { %v1151_v43 = vpop.permute.xlu0 %1150 }
 0x7e5   :  { %3191 = vmatmul.mubr.msk.f32.vlgmr.msra.gmra.mrb[10].mxu0 %vm161_vm2, %v1151_v43 }
 0x7e6   :  { %3200 = vmatprep.mubr.msk.f32.mxu0 %vm3516_vm1, %v3515_v8 }
 0x7eb   :  { %v3375_v44 = vpop.eup %3374 }
 0x7ec   :  { %v997_v47 = vmul.f32 %v3375_v44, %v3371_v35 }
 0x7ee   :  { %3186 = vmatmul.mubr.msk.f32.vlgmr.msra.gmra.mrb[14].mxu1 %vm315_vm3, %v997_v47 }
 0x7ef   :  { %3194 = vmatpush3.xpose.msk.msra.mxu1 %vm161_vm2, %v1231_v45  ;;  %3195 = vmatprep.mubr.msk.f32.mxu1 %vm3516_vm1, %v3515_v8 }
 0x7f0   :  { %3203 = vmatprep.subr.mxu1 %v3515_v8 }
 0x7f2   :  { %3196 = vmatmul.mubr.msk.f32.vlgmr.msra.gmra.mrb[16].mxu1 %vm161_vm2, %v1229_v49 }
 0x7f3   :  { %3205 = vmatprep.mubr.msk.f32.mxu1 %vm3516_vm1, %v3515_v8 }
 0x884   :  { %v3748_v50 = vpop.f32.mrb[8].mxu0 }
 0x885   :  { %v3182_v51 = vpop.f32.mrb[9].mxu0 }
 0x8b8   :  { %v1224_v52 = vpop.f32.mrb[10].mxu0 }
 0x8b9   :  { %v3192_v53 = vpop.f32.mrb[11].mxu0  ;;  %v1306_v54 = vsel %vm315_vm3, %v1224_v52, -inf }
 0x8ba   :  { %1307 = vmax.xlane.f32.xlu0 %v1306_v54 }
 0x8c1   :  { %v3751_v55 = vpop.f32.mrb[14].mxu1 }
 0x8c2   :  { %v3187_v56 = vpop.f32.mrb[15].mxu1 }
 0x8c5   :  { %v1302_v57 = vpop.f32.mrb[16].mxu1 }
 0x8c6   :  { %v3197_v58 = vpop.f32.mrb[17].mxu1  ;;  %v1309_v59 = vsel %vm315_vm3, %v1302_v57, -inf }
 0x8c7   :  { %1310 = vmax.xlane.f32.xlu1 %v1309_v59 }
 0x8d8   :  { %1328 = vrot.lane.b32.xlu1 %v3634_v10, %s3527_s10 }
 0x8dc   :  { %1482 = vrot.lane.b32.xlu1 %v3634_v10, %s3528_s11 }
 0x8e0   :  { %1560 = vrot.lane.b32.xlu1 %v3632_v9, %s3528_s11 }
 0x8e4   :  { %1558 = vrot.lane.b32.xlu1 %v3649_v14, %s3529_s12 }
 0x947   :  { %v1308_v60 = vpop.xlane.xlu0 %1307 }
 0x948   :  { %v1312_v61 = vsub.f32 %v1224_v52, %v1308_v60 }
 0x94a   :  { %v1314_v62 = vmul.f32 1.442695, %v1312_v61 }
 0x94c   :  { %3376 = vpow2.f32 %v1314_v62 }
 0x954   :  { %v1311_v63 = vpop.xlane.xlu1 %1310 }
 0x955   :  { %v1313_v3 = vsub.f32 %v1302_v57, %v1311_v63 }
 0x956   :  { %v3377_v0 = vpop.eup %3376 }
 0x957   :  { %v1318_v1 = vsel %vm315_vm3, %v3377_v0, 0.0  ;;  %v1316_v4 = vmul.f32 1.442695, %v1313_v3 }
 0x958   :  { %1319 = vadd.xlane.f32.xlu0 %v1318_v1  ;;  %v1329_v2 = vpop.permute.xlu1 %1328 }
 0x959   :  { %3199 = vmatpush3.msra.mxu0 %v1329_v2  ;;  %3378 = vpow2.f32 %v1316_v4 }
 0x95a   :  { %3208 = vmatprep.subr.mxu0 %v3515_v8 }
 0x95c   :  { %v1483_v17 = vpop.permute.xlu1 %1482 }
 0x960   :  { %v1561_v22 = vpop.permute.xlu1 %1560 }
 0x963   :  { %v3379_v5 = vpop.eup %3378 }
 0x964   :  { %v1321_v6 = vsel %vm315_vm3, %v3379_v5, 0.0  ;;  %v1559_v24 = vpop.permute.xlu1 %1558 }
 0x96e   :  { %1404 = vrot.lane.b32.xlu0 %v3632_v9, %s3527_s10 }
 0x98d   :  { %1322 = vadd.xlane.f32.xlu0 %v1321_v6 }
 0x9a3   :  { %1480 = vrot.lane.b32.xlu0 %v3641_v12, %s3529_s12 }
 0x9e5   :  { %v1320_v7 = vpop.xlane.xlu0 %1319 }
 0x9e6   :  { %3380 = vrcp.f32 %v1320_v7 }
 0x9e9   :  { %v1405_v11 = vpop.permute.xlu0 %1404 }
 0x9ea   :  { %3204 = vmatpush3.msra.mxu1 %v1405_v11 }
 0x9eb   :  { %3213 = vmatprep.subr.mxu1 %v3515_v8 }
 0x9f0   :  { %v3381_v13 = vpop.eup %3380 }
 0x9f1   :  { %v1326_v15 = vmul.f32 %v3381_v13, %v3377_v0 }
 0x9f3   :  { %3201 = vmatmul.mubr.msk.f32.vlgmr.msra.gmra.mrb[12].mxu0 %vm315_vm3, %v1326_v15 }
 0x9f4   :  { %3209 = vmatpush3.xpose.msk.msra.mxu0 %vm161_vm2, %v1483_v17  ;;  %3210 = vmatprep.mubr.msk.f32.mxu0 %vm3516_vm1, %v3515_v8 }
 0x9f5   :  { %3218 = vmatprep.subr.mxu0 %v3515_v8 }
 0xa1a   :  { %v1323_v18 = vpop.xlane.xlu0 %1322 }
 0xa1b   :  { %3382 = vrcp.f32 %v1323_v18 }
 0xa1e   :  { %v1481_v19 = vpop.permute.xlu0 %1480 }
 0xa1f   :  { %3211 = vmatmul.mubr.msk.f32.vlgmr.msra.gmra.mrb[14].mxu0 %vm161_vm2, %v1481_v19 }
 0xa20   :  { %3220 = vmatprep.mubr.msk.f32.mxu0 %vm3516_vm1, %v3515_v8 }
 0xa25   :  { %v3383_v20 = vpop.eup %3382 }
 0xa26   :  { %v1327_v23 = vmul.f32 %v3383_v20, %v3379_v5 }
 0xa28   :  { %3206 = vmatmul.mubr.msk.f32.vlgmr.msra.gmra.mrb[18].mxu1 %vm315_vm3, %v1327_v23 }
 0xa29   :  { %3214 = vmatpush3.xpose.msk.msra.mxu1 %vm161_vm2, %v1561_v22  ;;  %3215 = vmatprep.mubr.msk.f32.mxu1 %vm3516_vm1, %v3515_v8 }
 0xa2a   :  { %3223 = vmatprep.subr.mxu1 %v3515_v8 }
 0xa2c   :  { %3216 = vmatmul.mubr.msk.f32.vlgmr.msra.gmra.mrb[20].mxu1 %vm161_vm2, %v1559_v24 }
 0xa2d   :  { %3225 = vmatprep.mubr.msk.f32.mxu1 %vm3516_vm1, %v3515_v8 }
 0xac6   :  { %v3780_v25 = vpop.f32.mrb[12].mxu0 }
 0xac7   :  { %v3202_v26 = vpop.f32.mrb[13].mxu0 }
 0xaf2   :  { %v1554_v27 = vpop.f32.mrb[14].mxu0 }
 0xaf3   :  { %v3212_v28 = vpop.f32.mrb[15].mxu0  ;;  %v1636_v29 = vsel %vm315_vm3, %v1554_v27, -inf }
 0xaf4   :  { %1637 = vmax.xlane.f32.xlu0 %v1636_v29 }
 0xafb   :  { %v3783_v30 = vpop.f32.mrb[18].mxu1 }
 0xafc   :  { %v3207_v31 = vpop.f32.mrb[19].mxu1 }
 0xaff   :  { %v1632_v32 = vpop.f32.mrb[20].mxu1 }
 0xb00   :  { %v3217_v33 = vpop.f32.mrb[21].mxu1  ;;  %v1639_v34 = vsel %vm315_vm3, %v1632_v32, -inf }
 0xb01   :  { %1640 = vmax.xlane.f32.xlu1 %v1639_v34 }
 0xb12   :  { %1658 = vrot.lane.b32.xlu1 %v3634_v10, %s3530_s1 }
 0xb16   :  { %1812 = vrot.lane.b32.xlu1 %v3634_v10, %s3531_s13 }
 0xb1a   :  { %1890 = vrot.lane.b32.xlu1 %v3632_v9, %s3531_s13 }
 0xb1e   :  { %1888 = vrot.lane.b32.xlu1 %v3649_v14, %s3532_s14 }
 0xb81   :  { %v1638_v35 = vpop.xlane.xlu0 %1637 }
 0xb82   :  { %v1642_v36 = vsub.f32 %v1554_v27, %v1638_v35 }
 0xb84   :  { %v1644_v37 = vmul.f32 1.442695, %v1642_v36 }
 0xb86   :  { %3384 = vpow2.f32 %v1644_v37 }
 0xb8e   :  { %v1641_v38 = vpop.xlane.xlu1 %1640 }
 0xb8f   :  { %v1643_v42 = vsub.f32 %v1632_v32, %v1641_v38 }
 0xb90   :  { %v3385_v39 = vpop.eup %3384 }
 0xb91   :  { %v1648_v40 = vsel %vm315_vm3, %v3385_v39, 0.0  ;;  %v1646_v43 = vmul.f32 1.442695, %v1643_v42 }
 0xb92   :  { %1649 = vadd.xlane.f32.xlu0 %v1648_v40  ;;  %v1659_v41 = vpop.permute.xlu1 %1658 }
 0xb93   :  { %3219 = vmatpush3.msra.mxu0 %v1659_v41  ;;  %3386 = vpow2.f32 %v1646_v43 }
 0xb94   :  { %3228 = vmatprep.subr.mxu0 %v3515_v8 }
 0xb96   :  { %v1813_v53 = vpop.permute.xlu1 %1812 }
 0xb9a   :  { %v1891_v58 = vpop.permute.xlu1 %1890 }
 0xb9d   :  { %v3387_v44 = vpop.eup %3386 }
 0xb9e   :  { %v1651_v45 = vsel %vm315_vm3, %v3387_v44, 0.0  ;;  %v1889_v60 = vpop.permute.xlu1 %1888 }
 0xba8   :  { %1734 = vrot.lane.b32.xlu0 %v3632_v9, %s3530_s1 }
 0xbc7   :  { %1652 = vadd.xlane.f32.xlu0 %v1651_v45 }
 0xbdd   :  { %1810 = vrot.lane.b32.xlu0 %v3641_v12, %s3532_s14 }
 0xc1f   :  { %v1650_v47 = vpop.xlane.xlu0 %1649 }
 0xc20   :  { %3388 = vrcp.f32 %v1650_v47 }
 0xc23   :  { %v1735_v49 = vpop.permute.xlu0 %1734 }
 0xc24   :  { %3224 = vmatpush3.msra.mxu1 %v1735_v49 }
 0xc25   :  { %3233 = vmatprep.subr.mxu1 %v3515_v8 }
 0xc2a   :  { %v3389_v51 = vpop.eup %3388 }
 0xc2b   :  { %v1656_v52 = vmul.f32 %v3389_v51, %v3385_v39 }
 0xc2d   :  { %3221 = vmatmul.mubr.msk.f32.vlgmr.msra.gmra.mrb[16].mxu0 %vm315_vm3, %v1656_v52 }
 0xc2e   :  { %3229 = vmatpush3.xpose.msk.msra.mxu0 %vm161_vm2, %v1813_v53  ;;  %3230 = vmatprep.mubr.msk.f32.mxu0 %vm3516_vm1, %v3515_v8 }
 0xc2f   :  { %3238 = vmatprep.subr.mxu0 %v3515_v8 }
 0xc54   :  { %v1653_v54 = vpop.xlane.xlu0 %1652 }
 0xc55   :  { %3390 = vrcp.f32 %v1653_v54 }
 0xc58   :  { %v1811_v56 = vpop.permute.xlu0 %1810 }
 0xc59   :  { %3231 = vmatmul.mubr.msk.f32.vlgmr.msra.gmra.mrb[18].mxu0 %vm161_vm2, %v1811_v56 }
 0xc5a   :  { %3240 = vmatprep.mubr.msk.f32.mxu0 %vm3516_vm1, %v3515_v8 }
 0xc5f   :  { %v3391_v57 = vpop.eup %3390 }
 0xc60   :  { %v1657_v59 = vmul.f32 %v3391_v57, %v3387_v44 }
 0xc62   :  { %3226 = vmatmul.mubr.msk.f32.vlgmr.msra.gmra.mrb[22].mxu1 %vm315_vm3, %v1657_v59 }
 0xc63   :  { %3234 = vmatpush3.xpose.msk.msra.mxu1 %vm161_vm2, %v1891_v58  ;;  %3235 = vmatprep.mubr.msk.f32.mxu1 %vm3516_vm1, %v3515_v8 }
 0xc64   :  { %3243 = vmatprep.subr.mxu1 %v3515_v8 }
 0xc66   :  { %3236 = vmatmul.mubr.msk.f32.vlgmr.msra.gmra.mrb[24].mxu1 %vm161_vm2, %v1889_v60 }
 0xc67   :  { %3245 = vmatprep.mubr.msk.f32.mxu1 %vm3516_vm1, %v3515_v8 }
 0xd00   :  { %v3812_v61 = vpop.f32.mrb[16].mxu0 }
 0xd01   :  { %v3222_v62 = vpop.f32.mrb[17].mxu0 }
 0xd2c   :  { %v1884_v63 = vpop.f32.mrb[18].mxu0 }
 0xd2d   :  { %v3232_v0 = vpop.f32.mrb[19].mxu0  ;;  %v1966_v1 = vsel %vm315_vm3, %v1884_v63, -inf }
 0xd2e   :  { %1967 = vmax.xlane.f32.xlu0 %v1966_v1 }
 0xd35   :  { %v3815_v2 = vpop.f32.mrb[22].mxu1 }
 0xd36   :  { %v3227_v3 = vpop.f32.mrb[23].mxu1 }
 0xd39   :  { %v1962_v4 = vpop.f32.mrb[24].mxu1 }
 0xd3a   :  { %v3237_v5 = vpop.f32.mrb[25].mxu1  ;;  %v1969_v6 = vsel %vm315_vm3, %v1962_v4, -inf }
 0xd3b   :  { %1970 = vmax.xlane.f32.xlu1 %v1969_v6 }
 0xd4c   :  { %1988 = vrot.lane.b32.xlu1 %v3634_v10, %s3533_s15 }
 0xd50   :  { %2142 = vrot.lane.b32.xlu1 %v3634_v10, %s3534_s16 }
 0xd54   :  { %2220 = vrot.lane.b32.xlu1 %v3632_v9, %s3534_s16 }
 0xd58   :  { %2218 = vrot.lane.b32.xlu1 %v3649_v14, %s3535_s17 }
 0xdbb   :  { %v1968_v7 = vpop.xlane.xlu0 %1967 }
 0xdbc   :  { %v1972_v11 = vsub.f32 %v1884_v63, %v1968_v7 }
 0xdbe   :  { %v1974_v13 = vmul.f32 1.442695, %v1972_v11 }
 0xdc0   :  { %3392 = vpow2.f32 %v1974_v13 }
 0xdc8   :  { %v1971_v15 = vpop.xlane.xlu1 %1970 }
 0xdc9   :  { %v1973_v20 = vsub.f32 %v1962_v4, %v1971_v15 }
 0xdca   :  { %v3393_v17 = vpop.eup %3392 }
 0xdcb   :  { %v1978_v18 = vsel %vm315_vm3, %v3393_v17, 0.0  ;;  %v1976_v22 = vmul.f32 1.442695, %v1973_v20 }
 0xdcc   :  { %1979 = vadd.xlane.f32.xlu0 %v1978_v18  ;;  %v1989_v19 = vpop.permute.xlu1 %1988 }
 0xdcd   :  { %3239 = vmatpush3.msra.mxu0 %v1989_v19  ;;  %3394 = vpow2.f32 %v1976_v22 }
 0xdce   :  { %3248 = vmatprep.subr.mxu0 %v3515_v8 }
 0xdd0   :  { %v2143_v31 = vpop.permute.xlu1 %2142 }
 0xdd4   :  { %v2221_v35 = vpop.permute.xlu1 %2220 }
 0xdd7   :  { %v3395_v23 = vpop.eup %3394 }
 0xdd8   :  { %v1981_v24 = vsel %vm315_vm3, %v3395_v23, 0.0  ;;  %v2219_v37 = vpop.permute.xlu1 %2218 }
 0xde2   :  { %2064 = vrot.lane.b32.xlu0 %v3632_v9, %s3533_s15 }
 0xe01   :  { %1982 = vadd.xlane.f32.xlu0 %v1981_v24 }
 0xe17   :  { %2140 = vrot.lane.b32.xlu0 %v3641_v12, %s3535_s17 }
 0xe59   :  { %v1980_v26 = vpop.xlane.xlu0 %1979 }
 0xe5a   :  { %3396 = vrcp.f32 %v1980_v26 }
 0xe5d   :  { %v2065_v27 = vpop.permute.xlu0 %2064 }
 0xe5e   :  { %3244 = vmatpush3.msra.mxu1 %v2065_v27 }
 0xe5f   :  { %3253 = vmatprep.subr.mxu1 %v3515_v8 }
 0xe64   :  { %v3397_v28 = vpop.eup %3396 }
 0xe65   :  { %v1986_v29 = vmul.f32 %v3397_v28, %v3393_v17 }
 0xe67   :  { %3241 = vmatmul.mubr.msk.f32.vlgmr.msra.gmra.mrb[20].mxu0 %vm315_vm3, %v1986_v29 }
 0xe68   :  { %3249 = vmatpush3.xpose.msk.msra.mxu0 %vm161_vm2, %v2143_v31  ;;  %3250 = vmatprep.mubr.msk.f32.mxu0 %vm3516_vm1, %v3515_v8 }
 0xe69   :  { %3258 = vmatprep.subr.mxu0 %v3515_v8 }
 0xe8e   :  { %v1983_v32 = vpop.xlane.xlu0 %1982 }
 0xe8f   :  { %3398 = vrcp.f32 %v1983_v32 }
 0xe92   :  { %v2141_v33 = vpop.permute.xlu0 %2140 }
 0xe93   :  { %3251 = vmatmul.mubr.msk.f32.vlgmr.msra.gmra.mrb[22].mxu0 %vm161_vm2, %v2141_v33 }
 0xe94   :  { %3260 = vmatprep.mubr.msk.f32.mxu0 %vm3516_vm1, %v3515_v8 }
 0xe99   :  { %v3399_v34 = vpop.eup %3398 }
 0xe9a   :  { %v1987_v36 = vmul.f32 %v3399_v34, %v3395_v23 }
 0xe9c   :  { %3246 = vmatmul.mubr.msk.f32.vlgmr.msra.gmra.mrb[26].mxu1 %vm315_vm3, %v1987_v36 }
 0xe9d   :  { %3254 = vmatpush3.xpose.msk.msra.mxu1 %vm161_vm2, %v2221_v35  ;;  %3255 = vmatprep.mubr.msk.f32.mxu1 %vm3516_vm1, %v3515_v8 }
 0xe9e   :  { %3263 = vmatprep.subr.mxu1 %v3515_v8 }
 0xea0   :  { %3256 = vmatmul.mubr.msk.f32.vlgmr.msra.gmra.mrb[28].mxu1 %vm161_vm2, %v2219_v37 }
 0xea1   :  { %3265 = vmatprep.mubr.msk.f32.mxu1 %vm3516_vm1, %v3515_v8 }
 0xf3a   :  { %v3844_v38 = vpop.f32.mrb[20].mxu0 }
 0xf3b   :  { %v3242_v39 = vpop.f32.mrb[21].mxu0 }
 0xf66   :  { %v2214_v40 = vpop.f32.mrb[22].mxu0 }
 0xf67   :  { %v3252_v41 = vpop.f32.mrb[23].mxu0  ;;  %v2296_v42 = vsel %vm315_vm3, %v2214_v40, -inf }
 0xf68   :  { %2297 = vmax.xlane.f32.xlu0 %v2296_v42 }
 0xf6f   :  { %v3847_v43 = vpop.f32.mrb[26].mxu1 }
 0xf70   :  { %v3247_v44 = vpop.f32.mrb[27].mxu1 }
 0xf71   :  { %v2988_v44 = vld [vmem:[%s3937_s3] ss:$0 sm:$0xff]  ;;  %s3546_s3 = smov [#allocation9]  }
 0xf72   :  { %70 = vst.msk [vmem:[#allocation2 + $0x8] sm:$0xff] %vm68_vm0, %v2988_v44  ;;  %69 = vst.msk [vmem:[#allocation2] sm:$0xff] %vm68_vm0, %v2988_v44  ;;  %s2975_s30 = sshll.u32 %s3546_s3, 4  ;;  %s2976_s30 = int_to_ptr.vmem [resolvable:$true] %s2975_s30 }
 0xf73   :  { %v2292_v45 = vpop.f32.mrb[28].mxu1  ;;  %s3482_s5 = scalar_lea.vmem %s2976_s30, 256  ;;  %p3487_p11 = scmp.lt.s32.totalorder %s2976_s30, %s2976_s30 }
 0xf74   :  { %v3257_v47 = vpop.f32.mrb[29].mxu1  ;;  %v2299_v49 = vsel %vm315_vm3, %v2292_v45, -inf  ;;  %p3483_p10 = scmp.ne.s32.totalorder %s2976_s30, %s3482_s5  ;;  %p3488_p12 = scmp.lt.s32.totalorder %s3482_s5, %s3482_s5 }
 0xf75   :  { %2300 = vmax.xlane.f32.xlu1 %v2299_v49 }
 0xf76   :  { %p3489_p13 = por %p3488_p12, %p3487_p11 }
 0xf78   :  { %p3490_p0 = pnand %p3489_p13, %p3483_p10 }
 0xf86   :  { %2318 = vrot.lane.b32.xlu1 %v3634_v10, %s3536_s19 }
 0xf8a   :  { %2472 = vrot.lane.b32.xlu1 %v3634_v10, %s3537_s20 }
 0xf8e   :  { %2550 = vrot.lane.b32.xlu1 %v3632_v9, %s3537_s20 }
 0xf92   :  { %2548 = vrot.lane.b32.xlu1 %v3649_v14, %s3538_s21 }
 0xff5   :  { %v2298_v51 = vpop.xlane.xlu0 %2297 }
 0xff6   :  { %v2302_v52 = vsub.f32 %v2214_v40, %v2298_v51 }
 0xff8   :  { %v2304_v53 = vmul.f32 1.442695, %v2302_v52 }
 0xffa   :  { %3400 = vpow2.f32 %v2304_v53 }
0x1002   :  { %v2301_v54 = vpop.xlane.xlu1 %2300 }
0x1003   :  { %v2303_v59 = vsub.f32 %v2292_v45, %v2301_v54 }
0x1004   :  { %v3401_v56 = vpop.eup %3400 }
0x1005   :  { %v2308_v57 = vsel %vm315_vm3, %v3401_v56, 0.0  ;;  %v2306_v60 = vmul.f32 1.442695, %v2303_v59 }
0x1006   :  { %2309 = vadd.xlane.f32.xlu0 %v2308_v57  ;;  %v2319_v58 = vpop.permute.xlu1 %2318 }
0x1007   :  { %3259 = vmatpush3.msra.mxu0 %v2319_v58  ;;  %3402 = vpow2.f32 %v2306_v60 }
0x1008   :  { %3268 = vmatprep.subr.mxu0 %v3515_v8 }
0x100a   :  { %v2473_v4 = vpop.permute.xlu1 %2472 }
0x100e   :  { %v2551_v7 = vpop.permute.xlu1 %2550 }
0x1011   :  { %v3403_v62 = vpop.eup %3402 }
0x1012   :  { %v2311_v14 = vsel %vm315_vm3, %v3403_v62, 0.0  ;;  %v2549_v13 = vpop.permute.xlu1 %2548 }
0x101c   :  { %2394 = vrot.lane.b32.xlu0 %v3632_v9, %s3536_s19 }
0x103b   :  { %2312 = vadd.xlane.f32.xlu0 %v2311_v14 }
0x1051   :  { %2470 = vrot.lane.b32.xlu0 %v3641_v12, %s3538_s21 }
0x1093   :  { %v2310_v63 = vpop.xlane.xlu0 %2309 }
0x1094   :  { %3404 = vrcp.f32 %v2310_v63 }
0x1097   :  { %v2395_v0 = vpop.permute.xlu0 %2394 }
0x1098   :  { %3264 = vmatpush3.msra.mxu1 %v2395_v0 }
0x1099   :  { %3273 = vmatprep.subr.mxu1 %v3515_v8 }
0x109e   :  { %v3405_v1 = vpop.eup %3404 }
0x109f   :  { %v2316_v3 = vmul.f32 %v3405_v1, %v3401_v56 }
0x10a1   :  { %3261 = vmatmul.mubr.msk.f32.vlgmr.msra.gmra.mrb[24].mxu0 %vm315_vm3, %v2316_v3 }
0x10a2   :  { %3269 = vmatpush3.xpose.msk.msra.mxu0 %vm161_vm2, %v2473_v4  ;;  %3270 = vmatprep.mubr.msk.f32.mxu0 %vm3516_vm1, %v3515_v8 }
0x10a3   :  { %3278 = vmatprep.subr.mxu0 %v3515_v8 }
0x10c8   :  { %v2313_v5 = vpop.xlane.xlu0 %2312 }
0x10c9   :  { %3406 = vrcp.f32 %v2313_v5 }
0x10cc   :  { %v2471_v12 = vpop.permute.xlu0 %2470 }
0x10cd   :  { %3271 = vmatmul.mubr.msk.f32.vlgmr.msra.gmra.mrb[26].mxu0 %vm161_vm2, %v2471_v12 }
0x10ce   :  { %3280 = vmatprep.mubr.msk.f32.mxu0 %vm3516_vm1, %v3515_v8 }
0x10d3   :  { %v3407_v6 = vpop.eup %3406 }
0x10d4   :  { %v2317_v11 = vmul.f32 %v3407_v6, %v3403_v62 }
0x10d6   :  { %3266 = vmatmul.mubr.msk.f32.vlgmr.msra.gmra.mrb[30].mxu1 %vm315_vm3, %v2317_v11 }
0x10d7   :  { %3274 = vmatpush3.xpose.msk.msra.mxu1 %vm161_vm2, %v2551_v7  ;;  %3275 = vmatprep.mubr.msk.f32.mxu1 %vm3516_vm1, %v3515_v8 }
0x10d8   :  { %3283 = vmatprep.subr.mxu1 %v3515_v8 }
0x10da   :  { %3276 = vmatmul.mubr.msk.f32.vlgmr.msra.gmra.mrb[32].mxu1 %vm161_vm2, %v2549_v13 }
0x10db   :  { %3285 = vmatprep.mubr.msk.f32.mxu1 %vm3516_vm1, %v3515_v8 }
0x1174   :  { %v2390_v15 = vpop.f32.mrb[24].mxu0 }
0x1175   :  { %v3262_v17 = vpop.f32.mrb[25].mxu0 }
0x11a0   :  { %v2544_v18 = vpop.f32.mrb[26].mxu0 }
0x11a1   :  { %v3272_v19 = vpop.f32.mrb[27].mxu0  ;;  %v2626_v20 = vsel %vm315_vm3, %v2544_v18, -inf }
0x11a2   :  { %2627 = vmax.xlane.f32.xlu0 %v2626_v20  ;;  %v2876_v20 = vld [vmem:[#allocation2 + $0x8] sm:$0xff] }
0x11a9   :  { %v2466_v22 = vpop.f32.mrb[30].mxu1 }
0x11aa   :  { %v3267_v23 = vpop.f32.mrb[31].mxu1 }
0x11ad   :  { %v2622_v24 = vpop.f32.mrb[32].mxu1 }
0x11ae   :  { %v3277_v26 = vpop.f32.mrb[33].mxu1  ;;  %v2629_v27 = vsel %vm315_vm3, %v2622_v24, -inf }
0x11af   :  { %2630 = vmax.xlane.f32.xlu1 %v2629_v27 }
0x11c0   :  { %2648 = vrot.lane.b32.xlu1 %v3634_v10, %s3539_s22 }
0x11c4   :  { %2802 = vrot.lane.b32.xlu1 %v3716_v16, %s3540_s23 }
0x11c8   :  { %2804 = vrot.lane.b32.xlu1 %v3719_v21, %s3540_s23 }
0x11cc   :  { %2812 = vrot.lane.b32.xlu1 %v3751_v55, %s3513_s28 }
0x11d0   :  { %2820 = vrot.lane.b32.xlu1 %v3783_v30, %s3541_s24 }
0x11d4   :  { %2828 = vrot.lane.b32.xlu1 %v3815_v2, %s3542_s0 }
0x11d8   :  { %2836 = vrot.lane.b32.xlu1 %v3847_v43, %s3543_s18 }
0x11dc   :  { %2844 = vrot.lane.b32.xlu1 %v2466_v22, %s3544_s2  ;;  %v2875_v22 = vld [vmem:[#allocation2] sm:$0xff] }
0x122f   :  { %v2628_v8 = vpop.xlane.xlu0 %2627 }
0x1230   :  { %v2632_v10 = vsub.f32 %v2544_v18, %v2628_v8 }
0x1232   :  { %v2634_v28 = vmul.f32 1.442695, %v2632_v10 }
0x1234   :  { %3408 = vpow2.f32 %v2634_v28 }
0x123c   :  { %v2631_v16 = vpop.xlane.xlu1 %2630 }
0x123d   :  { %v2633_v21 = vsub.f32 %v2622_v24, %v2631_v16 }
0x123e   :  { %v3409_v29 = vpop.eup %3408 }
0x123f   :  { %v2636_v31 = vmul.f32 1.442695, %v2633_v21  ;;  %v2638_v55 = vsel %vm315_vm3, %v3409_v29, 0.0 }
0x1240   :  { %2639 = vadd.xlane.f32.xlu0 %v2638_v55  ;;  %v2649_v30 = vpop.permute.xlu1 %2648 }
0x1241   :  { %3410 = vpow2.f32 %v2636_v31  ;;  %3279 = vmatpush3.msra.mxu0 %v2649_v30 }
0x1244   :  { %v2803_v51 = vpop.permute.xlu1 %2802 }
0x1245   :  { %v2856_v59 = vsel %vm161_vm2, %v3685_v46, %v2803_v51 }
0x1248   :  { %v2805_v53 = vpop.permute.xlu1 %2804 }
0x1249   :  { %v2857_v12 = vsel %vm161_vm2, %v3687_v48, %v2805_v53 }
0x124b   :  { %v3411_v2 = vpop.eup %3410 }
0x124c   :  { %v2641_v32 = vsel %vm315_vm3, %v3411_v2, 0.0  ;;  %v2813_v56 = vpop.permute.xlu1 %2812 }
0x124d   :  { %2642 = vadd.xlane.f32.xlu0 %v2641_v32  ;;  %v2859_v6 = vsel %vm315_vm3, %v2857_v12, %v2813_v56 }
0x1250   :  { %v2821_v58 = vpop.permute.xlu1 %2820 }
0x1251   :  { %v2862_v11 = vsel %vm2860_vm4, %v2859_v6, %v2821_v58 }
0x1254   :  { %v2829_v14 = vpop.permute.xlu1 %2828 }
0x1255   :  { %v2865_v13 = vsel %vm2863_vm5, %v2862_v11, %v2829_v14 }
0x1258   :  { %v2837_v46 = vpop.permute.xlu1 %2836 }
0x125c   :  { %v2845_v7 = vpop.permute.xlu1 %2844 }
0x1263   :  { %2724 = vrot.lane.b32.xlu0 %v3632_v9, %s3539_s22 }
0x1267   :  { %2810 = vrot.lane.b32.xlu0 %v3748_v50, %s3513_s28  ;;  %v2877_v50 = vld [vmem:[#allocation8] sm:$0xff] }
0x126b   :  { %2818 = vrot.lane.b32.xlu0 %v3780_v25, %s3541_s24  ;;  %v2878_v25 = vld [vmem:[#allocation8 + $0x8] sm:$0xff] }
0x126c   :  { %v3307_v40 = vpack.c.bf16 %v2878_v25, %v2877_v50 }
0x126e   :  { %3308 = vmatprep.subr.bf16.mxu0 %v3307_v40 }
0x126f   :  { %2826 = vrot.lane.b32.xlu0 %v3812_v61, %s3542_s0  ;;  %v2879_v61 = vld [vmem:[#allocation8 + $0x10] sm:$0xff] }
0x1273   :  { %2834 = vrot.lane.b32.xlu0 %v3844_v38, %s3543_s18  ;;  %v2880_v38 = vld [vmem:[#allocation8 + $0x18] sm:$0xff] }
0x1274   :  { %v3311_v41 = vpack.c.bf16 %v2880_v38, %v2879_v61 }
0x1277   :  { %2842 = vrot.lane.b32.xlu0 %v2390_v15, %s3544_s2  ;;  %v2868_v15 = vsel %vm2866_vm6, %v2865_v13, %v2837_v46 }
0x1278   :  { %v2871_v17 = vsel %vm2869_vm8, %v2868_v15, %v2845_v7 }
0x12cd   :  { %v2640_v33 = vpop.xlane.xlu0 %2639 }
0x12ce   :  { %3412 = vrcp.f32 %v2640_v33 }
0x12d8   :  { %v3413_v34 = vpop.eup %3412 }
0x12d9   :  { %v2646_v35 = vmul.f32 %v3413_v34, %v3409_v29 }
0x12da   :  { %v2643_v36 = vpop.xlane.xlu0 %2642 }
0x12db   :  { %3414 = vrcp.f32 %v2643_v36  ;;  %3281 = vmatmul.mubr.msk.f32.vlgmr.msra.gmra.mrb[28].mxu0 %vm315_vm3, %v2646_v35 }
0x12dc   :  { %3310 = vmatpush3.bf16.msra.mxu0 %v3307_v40 }
0x12dd   :  { %3312 = vmatprep.subr.bf16.mxu0 %v3311_v41 }
0x12de   :  { %v2725_v37 = vpop.permute.xlu0 %2724 }
0x12df   :  { %3284 = vmatpush3.msra.mxu1 %v2725_v37 }
0x12e0   :  { %3314 = vmatpush3.bf16.msra.mxu0 %v3311_v41 }
0x12e2   :  { %v2811_v49 = vpop.permute.xlu0 %2810 }
0x12e3   :  { %v2858_v60 = vsel %vm315_vm3, %v2856_v59, %v2811_v49 }
0x12e5   :  { %v3415_v9 = vpop.eup %3414 }
0x12e6   :  { %v2647_v39 = vmul.f32 %v3415_v9, %v3411_v2  ;;  %v2819_v52 = vpop.permute.xlu0 %2818 }
0x12e7   :  { %v2861_v63 = vsel %vm2860_vm4, %v2858_v60, %v2819_v52 }
0x12e8   :  { %3286 = vmatmul.mubr.msk.f32.vlgmr.msra.gmra.mrb[34].mxu1 %vm315_vm3, %v2647_v39 }
0x12ea   :  { %v2827_v54 = vpop.permute.xlu0 %2826 }
0x12eb   :  { %v2864_v0 = vsel %vm2863_vm5, %v2861_v63, %v2827_v54 }
0x12ee   :  { %v2835_v57 = vpop.permute.xlu0 %2834 }
0x12ef   :  { %v2867_v1 = vsel %vm2866_vm6, %v2864_v0, %v2835_v57 }
0x12f2   :  { %v2843_v62 = vpop.permute.xlu0 %2842 }
0x12f3   :  { %v2870_v3 = vsel %vm2869_vm8, %v2867_v1, %v2843_v62 }
0x13ae   :  { %v2720_v42 = vpop.f32.mrb[28].mxu0 }
0x13af   :  { %2850 = vrot.lane.b32.xlu0 %v2720_v42, %s3545_s25  ;;  %v3282_v43 = vpop.f32.mrb[29].mxu0 }
0x13bb   :  { %v2796_v45 = vpop.f32.mrb[34].mxu1 }
0x13bc   :  { %2852 = vrot.lane.b32.xlu1 %v2796_v45, %s3545_s25  ;;  %v3287_v47 = vpop.f32.mrb[35].mxu1 }
0x1421   :  { %v2851_v4 = vpop.permute.xlu0 %2850 }
0x1422   :  { %v2873_v5 = vsel %vm2872_vm7, %v2870_v3, %v2851_v4 }
0x1423   :  { %3296 = vmatprep.mubr.msk.f32.mxu0 %vm68_vm0, %v2873_v5 }
0x142e   :  { %v2853_v18 = vpop.permute.xlu1 %2852 }
0x142f   :  { %v2874_v19 = vsel %vm2872_vm7, %v2871_v17, %v2853_v18 }
0x1430   :  { %3297 = vmatmul.mubr.msk.f32.vlgmr.msra.gmra.mrb[30].mxu0 %vm68_vm0, %v2874_v19 }
0x1503   :  { %v3298_v23 = vpop.f32.mrb[30].mxu0 }
0x1504   :  { %v2963_v24 = vadd.f32 %v3298_v23, %v2876_v20  ;;  %v2953_v26 = vpop.f32.mrb[31].mxu0 }
0x1505   :  { %v2962_v48 = vadd.f32 %v2953_v26, %v2875_v22 }
0x1506   :  { %2965 = vst.msk [vmem:[#allocation2 + $0x8] sm:$0xff] %vm68_vm0, %v2963_v24 }
0x1507   :  { %2964 = vst.msk [vmem:[#allocation2] sm:$0xff] %vm68_vm0, %v2962_v48 }
0x150d   :  { %v2967_v27 = vld [vmem:[#allocation2 + $0x8] sm:$0xff] }
0x150e   :  { %v2966_v8 = vld [vmem:[#allocation2] sm:$0xff]  ;;  %2969 = vst.msk [vmem:[#allocation9 + $0x8] sm:$0xff] %vm68_vm0, %v2967_v27 }
0x150f   :  { %2968 = vst.msk [vmem:[#allocation9] sm:$0xff] %vm68_vm0, %v2966_v8 }
0x1510   :  { %3493 = shalt.err (!%p3490_p0)
}
0x1511   :  { %s3494_s8 = scalar_lea.hbm %s3938_s4, 256 }
0x1512   :  { %p3495_p1 = scmp.ne.s32.totalorder %s3938_s4, %s3494_s8  ;;  %p3498_p2 = scmp.lt.u32.totalorder %s3494_s8, %s3938_s4 }
0x1514   :  { %p3500_p3 = pnand %p3498_p2, %p3495_p1 }
0x1516   :  { %3503 = shalt.err (!%p3500_p3)
}
0x1517   :  { %2981 = dma.vmem_to_hbm [thread:$0]  %s2976_s30, 256, %s3938_s4, [#allocation5], %s3512_s27, %s3512_s27, %s3513_s28  }
0x1518   :  { %3508 = dma.done.wait [#allocation5], 256  }
0x1519   :  { %3509 = vsyncadd [#allocation5], 4294967040 }
0x151a   :  { %2985 = vsyncpa [#allocation4], 1 }
0x151b   :  { %2986 = vsyncpa [#allocation7], 1 }
0x151c   :  { %2987 = vsyncpa [#allocation5], 1 }

// kernel: tpu_custom_call.1
= control target key start
LH: loop header
LB: loop body
LE: loop exit
PB: predicated region body
PF: predicated region fallthrough
CT: control target
= control target key end

     0   :  { %9 = vsyncpa [#allocation4], 0  ;;  %s3934_s0 = inlined_call_operand.hbm [shape: f32[2,8,32], index: 0, kind: input, shape index: {}]   ;;  %s3935_s1 = inlined_call_operand.hbm [shape: f32[1,32,96], index: 1, kind: input, shape index: {}]   ;;  %s3936_s2 = inlined_call_operand.hbm [shape: f32[1,32,32], index: 2, kind: input, shape index: {}]   ;;  %s3937_s3 = inlined_call_operand.vmem [shape: f32[1,32], index: 3, kind: input, shape index: {}]   ;;  %s3938_s4 = inlined_call_operand.hbm [shape: f32[2,8,32], index: 4, kind: output, shape index: {}]  }
   0x1   :  { %10 = vsyncpa [#allocation7], 0 }
   0x2   :  { %11 = vsyncpa [#allocation5], 0  ;;  %s3510_s15 = smov [#allocation6]   ;;  %s3511_s17 = smov [#allocation3]  }
   0x3   :  { %s29_s16 = sshll.u32 %s3510_s15, 4  ;;  %s17_s18 = sshll.u32 %s3511_s17, 4  ;;  %s30_s16 = int_to_ptr.vmem [resolvable:$true] %s29_s16  ;;  %s3572_s18 = int_to_ptr.vmem [resolvable:$true] %s17_s18 }
   0x4   :  { %s3416_s21 = scalar_lea.hbm %s3935_s1, 512 }
   0x5   :  { %p3417_p0 = scmp.ne.s32.totalorder %s3935_s1, %s3416_s21  ;;  %p3420_p1 = scmp.lt.u32.totalorder %s3416_s21, %s3935_s1 }
   0x7   :  { %p3422_p2 = pnand %p3420_p1, %p3417_p0 }
   0x9   :  { %3425 = shalt.err (!%p3422_p2)
}
   0xa   :  { %s3426_s26 = scalar_lea.vmem %s30_s16, 512  ;;  %p3431_p4 = scmp.lt.s32.totalorder %s30_s16, %s30_s16 }
   0xb   :  { %p3427_p3 = scmp.ne.s32.totalorder %s30_s16, %s3426_s26  ;;  %p3432_p5 = scmp.lt.s32.totalorder %s3426_s26, %s3426_s26 }
   0xd   :  { %p3433_p6 = por %p3432_p5, %p3431_p4 }
   0xf   :  { %p3434_p7 = pnand %p3433_p6, %p3427_p3 }
  0x11   :  { %3437 = shalt.err (!%p3434_p7)
}
  0x12   :  { %s3512_s27 = smov 128   ;;  %s3513_s28 = smov 8  }
  0x13   :  { %35 = dma.hbm_to_vmem [thread:$0]  %s3935_s1, 512, %s30_s16, [#allocation7], %s3512_s27, %s3512_s27, %s3513_s28  }
  0x14   :  { %s3438_s7 = scalar_lea.hbm %s3934_s0, 256 }
  0x15   :  { %p3439_p8 = scmp.ne.s32.totalorder %s3934_s0, %s3438_s7  ;;  %p3442_p9 = scmp.lt.u32.totalorder %s3438_s7, %s3934_s0 }
  0x17   :  { %p3444_p10 = pnand %p3442_p9, %p3439_p8 }
  0x19   :  { %3447 = shalt.err (!%p3444_p10)
}
  0x1a   :  { %s3448_s12 = scalar_lea.vmem %s3572_s18, 256  ;;  %p3453_p12 = scmp.lt.s32.totalorder %s3572_s18, %s3572_s18 }
  0x1b   :  { %p3449_p11 = scmp.ne.s32.totalorder %s3572_s18, %s3448_s12  ;;  %p3454_p13 = scmp.lt.s32.totalorder %s3448_s12, %s3448_s12 }
  0x1d   :  { %p3455_p0 = por %p3454_p13, %p3453_p12 }
  0x1f   :  { %p3456_p1 = pnand %p3455_p0, %p3449_p11 }
  0x21   :  { %3459 = shalt.err (!%p3456_p1)
}
  0x22   :  { %23 = dma.hbm_to_vmem [thread:$0]  %s3934_s0, 256, %s3572_s18, [#allocation4], %s3512_s27, %s3512_s27, %s3513_s28  }
  0x23   :  { %s3514_s14 = smov [#allocation8]   ;;  %s3460_s19 = scalar_lea.hbm %s3936_s2, 512 }
  0x24   :  { %s41_s15 = sshll.u32 %s3514_s14, 4  ;;  %p3461_p2 = scmp.ne.s32.totalorder %s3936_s2, %s3460_s19  ;;  %s42_s15 = int_to_ptr.vmem [resolvable:$true] %s41_s15 }
  0x25   :  { %p3464_p3 = scmp.lt.u32.totalorder %s3460_s19, %s3936_s2 }
  0x27   :  { %p3466_p4 = pnand %p3464_p3, %p3461_p2 }
  0x29   :  { %3469 = shalt.err (!%p3466_p4)
}
  0x2a   :  { %s3470_s24 = scalar_lea.vmem %s42_s15, 512  ;;  %p3475_p6 = scmp.lt.s32.totalorder %s42_s15, %s42_s15 }
  0x2b   :  { %p3471_p5 = scmp.ne.s32.totalorder %s42_s15, %s3470_s24  ;;  %p3476_p7 = scmp.lt.s32.totalorder %s3470_s24, %s3470_s24 }
  0x2d   :  { %p3477_p8 = por %p3476_p7, %p3475_p6 }
  0x2f   :  { %p3478_p9 = pnand %p3477_p8, %p3471_p5 }
  0x31   :  { %3481 = shalt.err (!%p3478_p9)
}
  0x32   :  { %47 = dma.hbm_to_vmem [thread:$0]  %s3936_s2, 512, %s42_s15, [#allocation7], %s3512_s27, %s3512_s27, %s3513_s28  }
  0x33   :  { %3504 = dma.done.wait [#allocation4], 256  }
  0x34   :  { %3505 = vsyncadd [#allocation4], 4294967040 }
  0x35   :  { %3506 = dma.done.wait [#allocation7], 1024  }
  0x36   :  { %3507 = vsyncadd [#allocation7], 4294966272  ;;  %vm68_vm0 = vcmask 261120   ;;  %v71_v0 = vld [vmem:[#allocation6] sm:$0xff]  ;;  %v72_v1 = vld [vmem:[#allocation6 + $0x8] sm:$0xff]  ;;  %v3515_v8 = vmov 0.0  }
  0x37   :  { %v73_v2 = vld [vmem:[#allocation6 + $0x10] sm:$0xff]  ;;  %v3299_v3 = vpack.c.bf16 %v72_v1, %v71_v0  ;;  %v74_v4 = vld [vmem:[#allocation6 + $0x18] sm:$0xff]  ;;  %3128 = vmatprep.subr.mxu1 %v3515_v8  ;;  %vm3516_vm1 = vmmov 0   ;;  %s3517_s2 = smov 96   ;;  %vm161_vm2 = vcmask 31744   ;;  %vm315_vm3 = vcmask 64512  }
  0x38   :  { %v59_v5 = vld [vmem:[#allocation3] sm:$0xff]  ;;  %v3303_v6 = vpack.c.bf16 %v74_v4, %v73_v2  ;;  %v60_v7 = vld [vmem:[#allocation3 + $0x8] sm:$0xff]  ;;  %3130 = vmatprep.mubr.msk.f32.mxu1 %vm3516_vm1, %v3515_v8  ;;  %s3518_s25 = smov 64   ;;  %s3519_s26 = smov 92   ;;  %vm2860_vm4 = vcmask 97280   ;;  %vm2863_vm5 = vcmask 130048  }
  0x39   :  { %3125 = vmatprep.mubr.msk.f32.mxu0 %vm68_vm0, %v59_v5  ;;  %3300 = vmatprep.subr.bf16.mxu0 %v3299_v3  ;;  %s3520_s29 = smov 124   ;;  %s3521_s30 = smov 60   ;;  %vm2866_vm6 = vcmask 162816   ;;  %vm2872_vm7 = vcmask 228352   ;;  %vm2869_vm8 = vcmask 195584  }
  0x3a   :  { %3302 = vmatpush3.bf16.msra.mxu0 %v3299_v3  ;;  %s3522_s5 = smov 120   ;;  %s3523_s6 = smov 88  }
  0x3b   :  { %3304 = vmatprep.subr.bf16.mxu0 %v3303_v6  ;;  %s3524_s7 = smov 56   ;;  %s3525_s8 = smov 84  }
  0x3c   :  { %s3526_s9 = smov 116   ;;  %s3527_s10 = smov 52  }
  0x3d   :  { %s3528_s11 = smov 80   ;;  %s3529_s12 = smov 112  }
  0x3e   :  { %3306 = vmatpush3.bf16.msra.mxu0 %v3303_v6  ;;  %s3530_s1 = smov 48   ;;  %s3531_s13 = smov 76  }
  0x3f   :  { %3148 = vmatprep.subr.mxu0 %v3515_v8  ;;  %s3532_s14 = smov 108   ;;  %s3533_s15 = smov 44  }
  0x40   :  { %s3534_s16 = smov 72   ;;  %s3535_s17 = smov 104  }
  0x41   :  { %3126 = vmatmul.mubr.msk.f32.vlgmr.msra.gmra.mrb[0].mxu0 %vm68_vm0, %v60_v7  ;;  %s3536_s19 = smov 40   ;;  %s3537_s20 = smov 68  }
  0x42   :  { %3150 = vmatprep.mubr.msk.f32.mxu0 %vm3516_vm1, %v3515_v8  ;;  %s3538_s21 = smov 100   ;;  %s3539_s22 = smov 36  }
  0x43   :  { %s3540_s23 = smov 4   ;;  %s3541_s24 = smov 12  }
  0x44   :  { %s3542_s0 = smov 16   ;;  %s3543_s18 = smov 20  }
 0x114   :  { %v3632_v9 = vpop.f32.mrb[0].mxu0 }
 0x115   :  { %v3634_v10 = vpop.f32.mrb[1].mxu0  ;;  %v3649_v14 = vmul.f32 0.5, %v3632_v9 }
 0x116   :  { %159 = vrot.lane.b32.xlu0 %v3634_v10, %s3517_s2  ;;  %v3641_v12 = vmul.f32 0.5, %v3634_v10 }
 0x11a   :  { %238 = vrot.lane.b32.xlu0 %v3632_v9, %s3517_s2  ;;  %s3544_s2 = smov 24  }
 0x188   :  { %v160_v11 = vpop.permute.xlu0 %159 }
 0x189   :  { %3129 = vmatpush3.xpose.msk.msra.mxu1 %vm161_vm2, %v160_v11 }
 0x18a   :  { %3133 = vmatprep.subr.mxu1 %v3515_v8 }
 0x18c   :  { %v239_v13 = vpop.permute.xlu0 %238  ;;  %3131 = vmatmul.mubr.msk.f32.vlgmr.msra.gmra.mrb[0].mxu1 %vm161_vm2, %v3641_v12 }
 0x18d   :  { %3134 = vmatpush3.xpose.msk.msra.mxu1 %vm161_vm2, %v239_v13  ;;  %3135 = vmatprep.mubr.msk.f32.mxu1 %vm3516_vm1, %v3515_v8 }
 0x18e   :  { %3138 = vmatprep.subr.mxu1 %v3515_v8 }
 0x190   :  { %3136 = vmatmul.mubr.msk.f32.vlgmr.msra.gmra.mrb[2].mxu1 %vm161_vm2, %v3649_v14 }
 0x191   :  { %3140 = vmatprep.mubr.msk.f32.mxu1 %vm3516_vm1, %v3515_v8 }
 0x25f   :  { %v233_v15 = vpop.f32.mrb[0].mxu1 }
 0x260   :  { %v3132_v16 = vpop.f32.mrb[1].mxu1  ;;  %v316_v17 = vsel %vm315_vm3, %v233_v15, -inf }
 0x261   :  { %317 = vmax.xlane.f32.xlu1 %v316_v17 }
 0x263   :  { %v311_v18 = vpop.f32.mrb[2].mxu1 }
 0x264   :  { %v3137_v19 = vpop.f32.mrb[3].mxu1  ;;  %v319_v20 = vsel %vm315_vm3, %v311_v18, -inf }
 0x265   :  { %320 = vmax.xlane.f32.xlu1 %v319_v20 }
 0x276   :  { %338 = vrot.lane.b32.xlu1 %v3634_v10, %s3518_s25 }
 0x27a   :  { %414 = vrot.lane.b32.xlu1 %v3632_v9, %s3518_s25  ;;  %s3545_s25 = smov 28  }
 0x27e   :  { %492 = vrot.lane.b32.xlu1 %v3634_v10, %s3519_s26 }
 0x282   :  { %570 = vrot.lane.b32.xlu1 %v3632_v9, %s3519_s26 }
 0x2ee   :  { %v318_v21 = vpop.xlane.xlu1 %317 }
 0x2ef   :  { %v322_v22 = vsub.f32 %v233_v15, %v318_v21 }
 0x2f1   :  { %v324_v23 = vmul.f32 1.442695, %v322_v22 }
 0x2f2   :  { %v321_v24 = vpop.xlane.xlu1 %320 }
 0x2f3   :  { %3352 = vpow2.f32 %v324_v23  ;;  %v323_v25 = vsub.f32 %v311_v18, %v321_v24 }
 0x2f5   :  { %v326_v26 = vmul.f32 1.442695, %v323_v25 }
 0x2f6   :  { %v339_v27 = vpop.permute.xlu1 %338 }
 0x2f7   :  { %3354 = vpow2.f32 %v326_v26  ;;  %3139 = vmatpush3.msra.mxu1 %v339_v27 }
 0x2f8   :  { %3143 = vmatprep.subr.mxu1 %v3515_v8 }
 0x2fa   :  { %v415_v28 = vpop.permute.xlu1 %414 }
 0x2fd   :  { %v3353_v29 = vpop.eup %3352 }
 0x2fe   :  { %v493_v30 = vpop.permute.xlu1 %492  ;;  %v328_v31 = vsel %vm315_vm3, %v3353_v29, 0.0 }
 0x2ff   :  { %329 = vadd.xlane.f32.xlu0 %v328_v31  ;;  %3149 = vmatpush3.xpose.msk.msra.mxu0 %vm161_vm2, %v493_v30 }
 0x300   :  { %3158 = vmatprep.subr.mxu0 %v3515_v8 }
 0x301   :  { %v3355_v32 = vpop.eup %3354 }
 0x302   :  { %v331_v33 = vsel %vm315_vm3, %v3355_v32, 0.0  ;;  %v571_v34 = vpop.permute.xlu1 %570 }
 0x303   :  { %332 = vadd.xlane.f32.xlu1 %v331_v33 }
 0x314   :  { %568 = vrot.lane.b32.xlu1 %v3649_v14, %s3520_s29 }
 0x315   :  { %490 = vrot.lane.b32.xlu0 %v3641_v12, %s3520_s29 }
 0x38c   :  { %v330_v35 = vpop.xlane.xlu0 %329 }
 0x38d   :  { %3356 = vrcp.f32 %v330_v35 }
 0x390   :  { %v491_v36 = vpop.permute.xlu0 %490  ;;  %v333_v37 = vpop.xlane.xlu1 %332 }
 0x391   :  { %3358 = vrcp.f32 %v333_v37  ;;  %3151 = vmatmul.mubr.msk.f32.vlgmr.msra.gmra.mrb[2].mxu0 %vm161_vm2, %v491_v36 }
 0x392   :  { %3160 = vmatprep.mubr.msk.f32.mxu0 %vm3516_vm1, %v3515_v8 }
 0x394   :  { %v569_v42 = vpop.permute.xlu1 %568 }
 0x397   :  { %v3357_v38 = vpop.eup %3356 }
 0x398   :  { %v336_v39 = vmul.f32 %v3357_v38, %v3353_v29 }
 0x39a   :  { %3141 = vmatmul.mubr.msk.f32.vlgmr.msra.gmra.mrb[4].mxu1 %vm315_vm3, %v336_v39 }
 0x39b   :  { %v3359_v40 = vpop.eup %3358  ;;  %3144 = vmatpush3.msra.mxu1 %v415_v28  ;;  %3145 = vmatprep.mubr.msk.f32.mxu1 %vm3516_vm1, %v3515_v8 }
 0x39c   :  { %v337_v41 = vmul.f32 %v3359_v40, %v3355_v32  ;;  %3153 = vmatprep.subr.mxu1 %v3515_v8 }
 0x39e   :  { %3146 = vmatmul.mubr.msk.f32.vlgmr.msra.gmra.mrb[6].mxu1 %vm315_vm3, %v337_v41 }
 0x39f   :  { %3155 = vmatprep.mubr.msk.f32.mxu1 %vm3516_vm1, %v3515_v8 }
 0x3a2   :  { %3154 = vmatpush3.xpose.msk.msra.mxu1 %vm161_vm2, %v571_v34 }
 0x3a3   :  { %3163 = vmatprep.subr.mxu1 %v3515_v8 }
 0x3a5   :  { %3156 = vmatmul.mubr.msk.f32.vlgmr.msra.gmra.mrb[8].mxu1 %vm161_vm2, %v569_v42 }
 0x3a6   :  { %3165 = vmatprep.mubr.msk.f32.mxu1 %vm3516_vm1, %v3515_v8 }
 0x464   :  { %v564_v43 = vpop.f32.mrb[2].mxu0 }
 0x465   :  { %v3152_v44 = vpop.f32.mrb[3].mxu0  ;;  %v646_v45 = vsel %vm315_vm3, %v564_v43, -inf }
 0x466   :  { %647 = vmax.xlane.f32.xlu1 %v646_v45 }
 0x46d   :  { %v3685_v46 = vpop.f32.mrb[4].mxu1 }
 0x46e   :  { %v3142_v47 = vpop.f32.mrb[5].mxu1 }
 0x471   :  { %v3687_v48 = vpop.f32.mrb[6].mxu1 }
 0x472   :  { %v3147_v49 = vpop.f32.mrb[7].mxu1 }
 0x478   :  { %v642_v50 = vpop.f32.mrb[8].mxu1 }
 0x479   :  { %v3157_v51 = vpop.f32.mrb[9].mxu1  ;;  %v649_v52 = vsel %vm315_vm3, %v642_v50, -inf }
 0x47a   :  { %650 = vmax.xlane.f32.xlu0 %v649_v52 }
 0x490   :  { %744 = vrot.lane.b32.xlu0 %v3632_v9, %s3521_s30 }
 0x494   :  { %820 = vrot.lane.b32.xlu0 %v3641_v12, %s3522_s5 }
 0x4f3   :  { %v648_v53 = vpop.xlane.xlu1 %647 }
 0x4f4   :  { %v652_v54 = vsub.f32 %v564_v43, %v648_v53 }
 0x4f6   :  { %v654_v55 = vmul.f32 1.442695, %v652_v54 }
 0x4f8   :  { %3360 = vpow2.f32 %v654_v55 }
 0x502   :  { %v3361_v56 = vpop.eup %3360 }
 0x503   :  { %v658_v57 = vsel %vm315_vm3, %v3361_v56, 0.0 }
 0x504   :  { %659 = vadd.xlane.f32.xlu1 %v658_v57 }
 0x507   :  { %v651_v58 = vpop.xlane.xlu0 %650 }
 0x508   :  { %v653_v60 = vsub.f32 %v642_v50, %v651_v58 }
 0x50a   :  { %v656_v61 = vmul.f32 1.442695, %v653_v60 }
 0x50b   :  { %v745_v59 = vpop.permute.xlu0 %744 }
 0x50c   :  { %3164 = vmatpush3.msra.mxu1 %v745_v59  ;;  %3362 = vpow2.f32 %v656_v61 }
 0x50d   :  { %3173 = vmatprep.subr.mxu1 %v3515_v8 }
 0x50f   :  { %v821_v5 = vpop.permute.xlu0 %820 }
 0x515   :  { %668 = vrot.lane.b32.xlu1 %v3634_v10, %s3521_s30 }
 0x516   :  { %v3363_v62 = vpop.eup %3362 }
 0x517   :  { %v661_v63 = vsel %vm315_vm3, %v3363_v62, 0.0 }
 0x519   :  { %822 = vrot.lane.b32.xlu1 %v3634_v10, %s3523_s6 }
 0x51d   :  { %900 = vrot.lane.b32.xlu1 %v3632_v9, %s3523_s6 }
 0x541   :  { %662 = vadd.xlane.f32.xlu1 %v661_v63 }
 0x552   :  { %898 = vrot.lane.b32.xlu1 %v3649_v14, %s3522_s5 }
 0x591   :  { %v660_v0 = vpop.xlane.xlu1 %659 }
 0x592   :  { %3364 = vrcp.f32 %v660_v0 }
 0x595   :  { %v669_v1 = vpop.permute.xlu1 %668 }
 0x596   :  { %3159 = vmatpush3.msra.mxu0 %v669_v1 }
 0x597   :  { %3168 = vmatprep.subr.mxu0 %v3515_v8 }
 0x599   :  { %v823_v4 = vpop.permute.xlu1 %822 }
 0x59c   :  { %v3365_v2 = vpop.eup %3364 }
 0x59d   :  { %v666_v3 = vmul.f32 %v3365_v2, %v3361_v56  ;;  %v901_v6 = vpop.permute.xlu1 %900 }
 0x59f   :  { %3161 = vmatmul.mubr.msk.f32.vlgmr.msra.gmra.mrb[4].mxu0 %vm315_vm3, %v666_v3 }
 0x5a0   :  { %3169 = vmatpush3.xpose.msk.msra.mxu0 %vm161_vm2, %v823_v4  ;;  %3170 = vmatprep.mubr.msk.f32.mxu0 %vm3516_vm1, %v3515_v8 }
 0x5a1   :  { %3178 = vmatprep.subr.mxu0 %v3515_v8 }
 0x5a3   :  { %3171 = vmatmul.mubr.msk.f32.vlgmr.msra.gmra.mrb[6].mxu0 %vm161_vm2, %v821_v5 }
 0x5a4   :  { %3180 = vmatprep.mubr.msk.f32.mxu0 %vm3516_vm1, %v3515_v8 }
 0x5ce   :  { %v663_v7 = vpop.xlane.xlu1 %662 }
 0x5cf   :  { %3366 = vrcp.f32 %v663_v7 }
 0x5d2   :  { %v899_v15 = vpop.permute.xlu1 %898 }
 0x5d9   :  { %v3367_v11 = vpop.eup %3366 }
 0x5da   :  { %v667_v13 = vmul.f32 %v3367_v11, %v3363_v62 }
 0x5dc   :  { %3166 = vmatmul.mubr.msk.f32.vlgmr.msra.gmra.mrb[10].mxu1 %vm315_vm3, %v667_v13 }
 0x5dd   :  { %3174 = vmatpush3.xpose.msk.msra.mxu1 %vm161_vm2, %v901_v6  ;;  %3175 = vmatprep.mubr.msk.f32.mxu1 %vm3516_vm1, %v3515_v8 }
 0x5de   :  { %3183 = vmatprep.subr.mxu1 %v3515_v8 }
 0x5e0   :  { %3176 = vmatmul.mubr.msk.f32.vlgmr.msra.gmra.mrb[12].mxu1 %vm161_vm2, %v899_v15 }
 0x5e1   :  { %3185 = vmatprep.mubr.msk.f32.mxu1 %vm3516_vm1, %v3515_v8 }
 0x672   :  { %v3716_v16 = vpop.f32.mrb[4].mxu0 }
 0x673   :  { %v3162_v17 = vpop.f32.mrb[5].mxu0 }
 0x676   :  { %v894_v18 = vpop.f32.mrb[6].mxu0 }
 0x677   :  { %v3172_v19 = vpop.f32.mrb[7].mxu0  ;;  %v976_v20 = vsel %vm315_vm3, %v894_v18, -inf }
 0x678   :  { %977 = vmax.xlane.f32.xlu0 %v976_v20 }
 0x6af   :  { %v3719_v21 = vpop.f32.mrb[10].mxu1 }
 0x6b0   :  { %v3167_v22 = vpop.f32.mrb[11].mxu1 }
 0x6b3   :  { %v972_v23 = vpop.f32.mrb[12].mxu1 }
 0x6b4   :  { %v3177_v24 = vpop.f32.mrb[13].mxu1  ;;  %v979_v25 = vsel %vm315_vm3, %v972_v23, -inf }
 0x6b5   :  { %980 = vmax.xlane.f32.xlu1 %v979_v25 }
 0x6c6   :  { %998 = vrot.lane.b32.xlu1 %v3634_v10, %s3524_s7 }
 0x6ca   :  { %1152 = vrot.lane.b32.xlu1 %v3634_v10, %s3525_s8 }
 0x6ce   :  { %1230 = vrot.lane.b32.xlu1 %v3632_v9, %s3525_s8 }
 0x6d2   :  { %1228 = vrot.lane.b32.xlu1 %v3649_v14, %s3526_s9 }
 0x705   :  { %v978_v26 = vpop.xlane.xlu0 %977 }
 0x706   :  { %v982_v27 = vsub.f32 %v894_v18, %v978_v26 }
 0x708   :  { %v984_v28 = vmul.f32 1.442695, %v982_v27 }
 0x70a   :  { %3368 = vpow2.f32 %v984_v28 }
 0x714   :  { %v3369_v29 = vpop.eup %3368 }
 0x715   :  { %v988_v30 = vsel %vm315_vm3, %v3369_v29, 0.0 }
 0x716   :  { %989 = vadd.xlane.f32.xlu0 %v988_v30 }
 0x72c   :  { %1074 = vrot.lane.b32.xlu0 %v3632_v9, %s3524_s7 }
 0x742   :  { %v981_v31 = vpop.xlane.xlu1 %980 }
 0x743   :  { %v983_v32 = vsub.f32 %v972_v23, %v981_v31 }
 0x745   :  { %v986_v33 = vmul.f32 1.442695, %v983_v32 }
 0x746   :  { %v999_v34 = vpop.permute.xlu1 %998 }
 0x747   :  { %3370 = vpow2.f32 %v986_v33  ;;  %3179 = vmatpush3.msra.mxu0 %v999_v34 }
 0x748   :  { %3188 = vmatprep.subr.mxu0 %v3515_v8 }
 0x74a   :  { %v1153_v41 = vpop.permute.xlu1 %1152 }
 0x74e   :  { %v1231_v45 = vpop.permute.xlu1 %1230 }
 0x751   :  { %v3371_v35 = vpop.eup %3370 }
 0x752   :  { %v991_v36 = vsel %vm315_vm3, %v3371_v35, 0.0  ;;  %v1229_v49 = vpop.permute.xlu1 %1228 }
 0x753   :  { %992 = vadd.xlane.f32.xlu0 %v991_v36 }
 0x769   :  { %1150 = vrot.lane.b32.xlu0 %v3641_v12, %s3526_s9 }
 0x7a3   :  { %v990_v37 = vpop.xlane.xlu0 %989 }
 0x7a4   :  { %3372 = vrcp.f32 %v990_v37 }
 0x7a7   :  { %v1075_v38 = vpop.permute.xlu0 %1074 }
 0x7a8   :  { %3184 = vmatpush3.msra.mxu1 %v1075_v38 }
 0x7a9   :  { %3193 = vmatprep.subr.mxu1 %v3515_v8 }
 0x7ae   :  { %v3373_v39 = vpop.eup %3372 }
 0x7af   :  { %v996_v40 = vmul.f32 %v3373_v39, %v3369_v29 }
 0x7b1   :  { %3181 = vmatmul.mubr.msk.f32.vlgmr.msra.gmra.mrb[8].mxu0 %vm315_vm3, %v996_v40 }
 0x7b2   :  { %3189 = vmatpush3.xpose.msk.msra.mxu0 %vm161_vm2, %v1153_v41  ;;  %3190 = vmatprep.mubr.msk.f32.mxu0 %vm3516_vm1, %v3515_v8 }
 0x7b3   :  { %3198 = vmatprep.subr.mxu0 %v3515_v8 }
 0x7e0   :  { %v993_v42 = vpop.xlane.xlu0 %992 }
 0x7e1   :  { %3374 = vrcp.f32 %v993_v42 }
 0x7e4   :  { %v1151_v43 = vpop.permute.xlu0 %1150 }
 0x7e5   :  { %3191 = vmatmul.mubr.msk.f32.vlgmr.msra.gmra.mrb[10].mxu0 %vm161_vm2, %v1151_v43 }
 0x7e6   :  { %3200 = vmatprep.mubr.msk.f32.mxu0 %vm3516_vm1, %v3515_v8 }
 0x7eb   :  { %v3375_v44 = vpop.eup %3374 }
 0x7ec   :  { %v997_v47 = vmul.f32 %v3375_v44, %v3371_v35 }
 0x7ee   :  { %3186 = vmatmul.mubr.msk.f32.vlgmr.msra.gmra.mrb[14].mxu1 %vm315_vm3, %v997_v47 }
 0x7ef   :  { %3194 = vmatpush3.xpose.msk.msra.mxu1 %vm161_vm2, %v1231_v45  ;;  %3195 = vmatprep.mubr.msk.f32.mxu1 %vm3516_vm1, %v3515_v8 }
 0x7f0   :  { %3203 = vmatprep.subr.mxu1 %v3515_v8 }
 0x7f2   :  { %3196 = vmatmul.mubr.msk.f32.vlgmr.msra.gmra.mrb[16].mxu1 %vm161_vm2, %v1229_v49 }
 0x7f3   :  { %3205 = vmatprep.mubr.msk.f32.mxu1 %vm3516_vm1, %v3515_v8 }
 0x884   :  { %v3748_v50 = vpop.f32.mrb[8].mxu0 }
 0x885   :  { %v3182_v51 = vpop.f32.mrb[9].mxu0 }
 0x8b8   :  { %v1224_v52 = vpop.f32.mrb[10].mxu0 }
 0x8b9   :  { %v3192_v53 = vpop.f32.mrb[11].mxu0  ;;  %v1306_v54 = vsel %vm315_vm3, %v1224_v52, -inf }
 0x8ba   :  { %1307 = vmax.xlane.f32.xlu0 %v1306_v54 }
 0x8c1   :  { %v3751_v55 = vpop.f32.mrb[14].mxu1 }
 0x8c2   :  { %v3187_v56 = vpop.f32.mrb[15].mxu1 }
 0x8c5   :  { %v1302_v57 = vpop.f32.mrb[16].mxu1 }
 0x8c6   :  { %v3197_v58 = vpop.f32.mrb[17].mxu1  ;;  %v1309_v59 = vsel %vm315_vm3, %v1302_v57, -inf }
 0x8c7   :  { %1310 = vmax.xlane.f32.xlu1 %v1309_v59 }
 0x8d8   :  { %1328 = vrot.lane.b32.xlu1 %v3634_v10, %s3527_s10 }
 0x8dc   :  { %1482 = vrot.lane.b32.xlu1 %v3634_v10, %s3528_s11 }
 0x8e0   :  { %1560 = vrot.lane.b32.xlu1 %v3632_v9, %s3528_s11 }
 0x8e4   :  { %1558 = vrot.lane.b32.xlu1 %v3649_v14, %s3529_s12 }
 0x947   :  { %v1308_v60 = vpop.xlane.xlu0 %1307 }
 0x948   :  { %v1312_v61 = vsub.f32 %v1224_v52, %v1308_v60 }
 0x94a   :  { %v1314_v62 = vmul.f32 1.442695, %v1312_v61 }
 0x94c   :  { %3376 = vpow2.f32 %v1314_v62 }
 0x954   :  { %v1311_v63 = vpop.xlane.xlu1 %1310 }
 0x955   :  { %v1313_v3 = vsub.f32 %v1302_v57, %v1311_v63 }
 0x956   :  { %v3377_v0 = vpop.eup %3376 }
 0x957   :  { %v1318_v1 = vsel %vm315_vm3, %v3377_v0, 0.0  ;;  %v1316_v4 = vmul.f32 1.442695, %v1313_v3 }
 0x958   :  { %1319 = vadd.xlane.f32.xlu0 %v1318_v1  ;;  %v1329_v2 = vpop.permute.xlu1 %1328 }
 0x959   :  { %3199 = vmatpush3.msra.mxu0 %v1329_v2  ;;  %3378 = vpow2.f32 %v1316_v4 }
 0x95a   :  { %3208 = vmatprep.subr.mxu0 %v3515_v8 }
 0x95c   :  { %v1483_v17 = vpop.permute.xlu1 %1482 }
 0x960   :  { %v1561_v22 = vpop.permute.xlu1 %1560 }
 0x963   :  { %v3379_v5 = vpop.eup %3378 }
 0x964   :  { %v1321_v6 = vsel %vm315_vm3, %v3379_v5, 0.0  ;;  %v1559_v24 = vpop.permute.xlu1 %1558 }
 0x96e   :  { %1404 = vrot.lane.b32.xlu0 %v3632_v9, %s3527_s10 }
 0x98d   :  { %1322 = vadd.xlane.f32.xlu0 %v1321_v6 }
 0x9a3   :  { %1480 = vrot.lane.b32.xlu0 %v3641_v12, %s3529_s12 }
 0x9e5   :  { %v1320_v7 = vpop.xlane.xlu0 %1319 }
 0x9e6   :  { %3380 = vrcp.f32 %v1320_v7 }
 0x9e9   :  { %v1405_v11 = vpop.permute.xlu0 %1404 }
 0x9ea   :  { %3204 = vmatpush3.msra.mxu1 %v1405_v11 }
 0x9eb   :  { %3213 = vmatprep.subr.mxu1 %v3515_v8 }
 0x9f0   :  { %v3381_v13 = vpop.eup %3380 }
 0x9f1   :  { %v1326_v15 = vmul.f32 %v3381_v13, %v3377_v0 }
 0x9f3   :  { %3201 = vmatmul.mubr.msk.f32.vlgmr.msra.gmra.mrb[12].mxu0 %vm315_vm3, %v1326_v15 }
 0x9f4   :  { %3209 = vmatpush3.xpose.msk.msra.mxu0 %vm161_vm2, %v1483_v17  ;;  %3210 = vmatprep.mubr.msk.f32.mxu0 %vm3516_vm1, %v3515_v8 }
 0x9f5   :  { %3218 = vmatprep.subr.mxu0 %v3515_v8 }
 0xa1a   :  { %v1323_v18 = vpop.xlane.xlu0 %1322 }
 0xa1b   :  { %3382 = vrcp.f32 %v1323_v18 }
 0xa1e   :  { %v1481_v19 = vpop.permute.xlu0 %1480 }
 0xa1f   :  { %3211 = vmatmul.mubr.msk.f32.vlgmr.msra.gmra.mrb[14].mxu0 %vm161_vm2, %v1481_v19 }
 0xa20   :  { %3220 = vmatprep.mubr.msk.f32.mxu0 %vm3516_vm1, %v3515_v8 }
 0xa25   :  { %v3383_v20 = vpop.eup %3382 }
 0xa26   :  { %v1327_v23 = vmul.f32 %v3383_v20, %v3379_v5 }
 0xa28   :  { %3206 = vmatmul.mubr.msk.f32.vlgmr.msra.gmra.mrb[18].mxu1 %vm315_vm3, %v1327_v23 }
 0xa29   :  { %3214 = vmatpush3.xpose.msk.msra.mxu1 %vm161_vm2, %v1561_v22  ;;  %3215 = vmatprep.mubr.msk.f32.mxu1 %vm3516_vm1, %v3515_v8 }
 0xa2a   :  { %3223 = vmatprep.subr.mxu1 %v3515_v8 }
 0xa2c   :  { %3216 = vmatmul.mubr.msk.f32.vlgmr.msra.gmra.mrb[20].mxu1 %vm161_vm2, %v1559_v24 }
 0xa2d   :  { %3225 = vmatprep.mubr.msk.f32.mxu1 %vm3516_vm1, %v3515_v8 }
 0xac6   :  { %v3780_v25 = vpop.f32.mrb[12].mxu0 }
 0xac7   :  { %v3202_v26 = vpop.f32.mrb[13].mxu0 }
 0xaf2   :  { %v1554_v27 = vpop.f32.mrb[14].mxu0 }
 0xaf3   :  { %v3212_v28 = vpop.f32.mrb[15].mxu0  ;;  %v1636_v29 = vsel %vm315_vm3, %v1554_v27, -inf }
 0xaf4   :  { %1637 = vmax.xlane.f32.xlu0 %v1636_v29 }
 0xafb   :  { %v3783_v30 = vpop.f32.mrb[18].mxu1 }
 0xafc   :  { %v3207_v31 = vpop.f32.mrb[19].mxu1 }
 0xaff   :  { %v1632_v32 = vpop.f32.mrb[20].mxu1 }
 0xb00   :  { %v3217_v33 = vpop.f32.mrb[21].mxu1  ;;  %v1639_v34 = vsel %vm315_vm3, %v1632_v32, -inf }
 0xb01   :  { %1640 = vmax.xlane.f32.xlu1 %v1639_v34 }
 0xb12   :  { %1658 = vrot.lane.b32.xlu1 %v3634_v10, %s3530_s1 }
 0xb16   :  { %1812 = vrot.lane.b32.xlu1 %v3634_v10, %s3531_s13 }
 0xb1a   :  { %1890 = vrot.lane.b32.xlu1 %v3632_v9, %s3531_s13 }
 0xb1e   :  { %1888 = vrot.lane.b32.xlu1 %v3649_v14, %s3532_s14 }
 0xb81   :  { %v1638_v35 = vpop.xlane.xlu0 %1637 }
 0xb82   :  { %v1642_v36 = vsub.f32 %v1554_v27, %v1638_v35 }
 0xb84   :  { %v1644_v37 = vmul.f32 1.442695, %v1642_v36 }
 0xb86   :  { %3384 = vpow2.f32 %v1644_v37 }
 0xb8e   :  { %v1641_v38 = vpop.xlane.xlu1 %1640 }
 0xb8f   :  { %v1643_v42 = vsub.f32 %v1632_v32, %v1641_v38 }
 0xb90   :  { %v3385_v39 = vpop.eup %3384 }
 0xb91   :  { %v1648_v40 = vsel %vm315_vm3, %v3385_v39, 0.0  ;;  %v1646_v43 = vmul.f32 1.442695, %v1643_v42 }
 0xb92   :  { %1649 = vadd.xlane.f32.xlu0 %v1648_v40  ;;  %v1659_v41 = vpop.permute.xlu1 %1658 }
 0xb93   :  { %3219 = vmatpush3.msra.mxu0 %v1659_v41  ;;  %3386 = vpow2.f32 %v1646_v43 }
 0xb94   :  { %3228 = vmatprep.subr.mxu0 %v3515_v8 }
 0xb96   :  { %v1813_v53 = vpop.permute.xlu1 %1812 }
 0xb9a   :  { %v1891_v58 = vpop.permute.xlu1 %1890 }
 0xb9d   :  { %v3387_v44 = vpop.eup %3386 }
 0xb9e   :  { %v1651_v45 = vsel %vm315_vm3, %v3387_v44, 0.0  ;;  %v1889_v60 = vpop.permute.xlu1 %1888 }
 0xba8   :  { %1734 = vrot.lane.b32.xlu0 %v3632_v9, %s3530_s1 }
 0xbc7   :  { %1652 = vadd.xlane.f32.xlu0 %v1651_v45 }
 0xbdd   :  { %1810 = vrot.lane.b32.xlu0 %v3641_v12, %s3532_s14 }
 0xc1f   :  { %v1650_v47 = vpop.xlane.xlu0 %1649 }
 0xc20   :  { %3388 = vrcp.f32 %v1650_v47 }
 0xc23   :  { %v1735_v49 = vpop.permute.xlu0 %1734 }
 0xc24   :  { %3224 = vmatpush3.msra.mxu1 %v1735_v49 }
 0xc25   :  { %3233 = vmatprep.subr.mxu1 %v3515_v8 }
 0xc2a   :  { %v3389_v51 = vpop.eup %3388 }
 0xc2b   :  { %v1656_v52 = vmul.f32 %v3389_v51, %v3385_v39 }
 0xc2d   :  { %3221 = vmatmul.mubr.msk.f32.vlgmr.msra.gmra.mrb[16].mxu0 %vm315_vm3, %v1656_v52 }
 0xc2e   :  { %3229 = vmatpush3.xpose.msk.msra.mxu0 %vm161_vm2, %v1813_v53  ;;  %3230 = vmatprep.mubr.msk.f32.mxu0 %vm3516_vm1, %v3515_v8 }
 0xc2f   :  { %3238 = vmatprep.subr.mxu0 %v3515_v8 }
 0xc54   :  { %v1653_v54 = vpop.xlane.xlu0 %1652 }
 0xc55   :  { %3390 = vrcp.f32 %v1653_v54 }
 0xc58   :  { %v1811_v56 = vpop.permute.xlu0 %1810 }
 0xc59   :  { %3231 = vmatmul.mubr.msk.f32.vlgmr.msra.gmra.mrb[18].mxu0 %vm161_vm2, %v1811_v56 }
 0xc5a   :  { %3240 = vmatprep.mubr.msk.f32.mxu0 %vm3516_vm1, %v3515_v8 }
 0xc5f   :  { %v3391_v57 = vpop.eup %3390 }
 0xc60   :  { %v1657_v59 = vmul.f32 %v3391_v57, %v3387_v44 }
 0xc62   :  { %3226 = vmatmul.mubr.msk.f32.vlgmr.msra.gmra.mrb[22].mxu1 %vm315_vm3, %v1657_v59 }
 0xc63   :  { %3234 = vmatpush3.xpose.msk.msra.mxu1 %vm161_vm2, %v1891_v58  ;;  %3235 = vmatprep.mubr.msk.f32.mxu1 %vm3516_vm1, %v3515_v8 }
 0xc64   :  { %3243 = vmatprep.subr.mxu1 %v3515_v8 }
 0xc66   :  { %3236 = vmatmul.mubr.msk.f32.vlgmr.msra.gmra.mrb[24].mxu1 %vm161_vm2, %v1889_v60 }
 0xc67   :  { %3245 = vmatprep.mubr.msk.f32.mxu1 %vm3516_vm1, %v3515_v8 }
 0xd00   :  { %v3812_v61 = vpop.f32.mrb[16].mxu0 }
 0xd01   :  { %v3222_v62 = vpop.f32.mrb[17].mxu0 }
 0xd2c   :  { %v1884_v63 = vpop.f32.mrb[18].mxu0 }
 0xd2d   :  { %v3232_v0 = vpop.f32.mrb[19].mxu0  ;;  %v1966_v1 = vsel %vm315_vm3, %v1884_v63, -inf }
 0xd2e   :  { %1967 = vmax.xlane.f32.xlu0 %v1966_v1 }
 0xd35   :  { %v3815_v2 = vpop.f32.mrb[22].mxu1 }
 0xd36   :  { %v3227_v3 = vpop.f32.mrb[23].mxu1 }
 0xd39   :  { %v1962_v4 = vpop.f32.mrb[24].mxu1 }
 0xd3a   :  { %v3237_v5 = vpop.f32.mrb[25].mxu1  ;;  %v1969_v6 = vsel %vm315_vm3, %v1962_v4, -inf }
 0xd3b   :  { %1970 = vmax.xlane.f32.xlu1 %v1969_v6 }
 0xd4c   :  { %1988 = vrot.lane.b32.xlu1 %v3634_v10, %s3533_s15 }
 0xd50   :  { %2142 = vrot.lane.b32.xlu1 %v3634_v10, %s3534_s16 }
 0xd54   :  { %2220 = vrot.lane.b32.xlu1 %v3632_v9, %s3534_s16 }
 0xd58   :  { %2218 = vrot.lane.b32.xlu1 %v3649_v14, %s3535_s17 }
 0xdbb   :  { %v1968_v7 = vpop.xlane.xlu0 %1967 }
 0xdbc   :  { %v1972_v11 = vsub.f32 %v1884_v63, %v1968_v7 }
 0xdbe   :  { %v1974_v13 = vmul.f32 1.442695, %v1972_v11 }
 0xdc0   :  { %3392 = vpow2.f32 %v1974_v13 }
 0xdc8   :  { %v1971_v15 = vpop.xlane.xlu1 %1970 }
 0xdc9   :  { %v1973_v20 = vsub.f32 %v1962_v4, %v1971_v15 }
 0xdca   :  { %v3393_v17 = vpop.eup %3392 }
 0xdcb   :  { %v1978_v18 = vsel %vm315_vm3, %v3393_v17, 0.0  ;;  %v1976_v22 = vmul.f32 1.442695, %v1973_v20 }
 0xdcc   :  { %1979 = vadd.xlane.f32.xlu0 %v1978_v18  ;;  %v1989_v19 = vpop.permute.xlu1 %1988 }
 0xdcd   :  { %3239 = vmatpush3.msra.mxu0 %v1989_v19  ;;  %3394 = vpow2.f32 %v1976_v22 }
 0xdce   :  { %3248 = vmatprep.subr.mxu0 %v3515_v8 }
 0xdd0   :  { %v2143_v31 = vpop.permute.xlu1 %2142 }
 0xdd4   :  { %v2221_v35 = vpop.permute.xlu1 %2220 }
 0xdd7   :  { %v3395_v23 = vpop.eup %3394 }
 0xdd8   :  { %v1981_v24 = vsel %vm315_vm3, %v3395_v23, 0.0  ;;  %v2219_v37 = vpop.permute.xlu1 %2218 }
 0xde2   :  { %2064 = vrot.lane.b32.xlu0 %v3632_v9, %s3533_s15 }
 0xe01   :  { %1982 = vadd.xlane.f32.xlu0 %v1981_v24 }
 0xe17   :  { %2140 = vrot.lane.b32.xlu0 %v3641_v12, %s3535_s17 }
 0xe59   :  { %v1980_v26 = vpop.xlane.xlu0 %1979 }
 0xe5a   :  { %3396 = vrcp.f32 %v1980_v26 }
 0xe5d   :  { %v2065_v27 = vpop.permute.xlu0 %2064 }
 0xe5e   :  { %3244 = vmatpush3.msra.mxu1 %v2065_v27 }
 0xe5f   :  { %3253 = vmatprep.subr.mxu1 %v3515_v8 }
 0xe64   :  { %v3397_v28 = vpop.eup %3396 }
 0xe65   :  { %v1986_v29 = vmul.f32 %v3397_v28, %v3393_v17 }
 0xe67   :  { %3241 = vmatmul.mubr.msk.f32.vlgmr.msra.gmra.mrb[20].mxu0 %vm315_vm3, %v1986_v29 }
 0xe68   :  { %3249 = vmatpush3.xpose.msk.msra.mxu0 %vm161_vm2, %v2143_v31  ;;  %3250 = vmatprep.mubr.msk.f32.mxu0 %vm3516_vm1, %v3515_v8 }
 0xe69   :  { %3258 = vmatprep.subr.mxu0 %v3515_v8 }
 0xe8e   :  { %v1983_v32 = vpop.xlane.xlu0 %1982 }
 0xe8f   :  { %3398 = vrcp.f32 %v1983_v32 }
 0xe92   :  { %v2141_v33 = vpop.permute.xlu0 %2140 }
 0xe93   :  { %3251 = vmatmul.mubr.msk.f32.vlgmr.msra.gmra.mrb[22].mxu0 %vm161_vm2, %v2141_v33 }
 0xe94   :  { %3260 = vmatprep.mubr.msk.f32.mxu0 %vm3516_vm1, %v3515_v8 }
 0xe99   :  { %v3399_v34 = vpop.eup %3398 }
 0xe9a   :  { %v1987_v36 = vmul.f32 %v3399_v34, %v3395_v23 }
 0xe9c   :  { %3246 = vmatmul.mubr.msk.f32.vlgmr.msra.gmra.mrb[26].mxu1 %vm315_vm3, %v1987_v36 }
 0xe9d   :  { %3254 = vmatpush3.xpose.msk.msra.mxu1 %vm161_vm2, %v2221_v35  ;;  %3255 = vmatprep.mubr.msk.f32.mxu1 %vm3516_vm1, %v3515_v8 }
 0xe9e   :  { %3263 = vmatprep.subr.mxu1 %v3515_v8 }
 0xea0   :  { %3256 = vmatmul.mubr.msk.f32.vlgmr.msra.gmra.mrb[28].mxu1 %vm161_vm2, %v2219_v37 }
 0xea1   :  { %3265 = vmatprep.mubr.msk.f32.mxu1 %vm3516_vm1, %v3515_v8 }
 0xf3a   :  { %v3844_v38 = vpop.f32.mrb[20].mxu0 }
 0xf3b   :  { %v3242_v39 = vpop.f32.mrb[21].mxu0 }
 0xf66   :  { %v2214_v40 = vpop.f32.mrb[22].mxu0 }
 0xf67   :  { %v3252_v41 = vpop.f32.mrb[23].mxu0  ;;  %v2296_v42 = vsel %vm315_vm3, %v2214_v40, -inf }
 0xf68   :  { %2297 = vmax.xlane.f32.xlu0 %v2296_v42 }
 0xf6f   :  { %v3847_v43 = vpop.f32.mrb[26].mxu1 }
 0xf70   :  { %v3247_v44 = vpop.f32.mrb[27].mxu1 }
 0xf71   :  { %v2988_v44 = vld [vmem:[%s3937_s3] ss:$0 sm:$0xff]  ;;  %s3546_s3 = smov [#allocation9]  }
 0xf72   :  { %70 = vst.msk [vmem:[#allocation2 + $0x8] sm:$0xff] %vm68_vm0, %v2988_v44  ;;  %69 = vst.msk [vmem:[#allocation2] sm:$0xff] %vm68_vm0, %v2988_v44  ;;  %s2975_s30 = sshll.u32 %s3546_s3, 4  ;;  %s2976_s30 = int_to_ptr.vmem [resolvable:$true] %s2975_s30 }
 0xf73   :  { %v2292_v45 = vpop.f32.mrb[28].mxu1  ;;  %s3482_s5 = scalar_lea.vmem %s2976_s30, 256  ;;  %p3487_p11 = scmp.lt.s32.totalorder %s2976_s30, %s2976_s30 }
 0xf74   :  { %v3257_v47 = vpop.f32.mrb[29].mxu1  ;;  %v2299_v49 = vsel %vm315_vm3, %v2292_v45, -inf  ;;  %p3483_p10 = scmp.ne.s32.totalorder %s2976_s30, %s3482_s5  ;;  %p3488_p12 = scmp.lt.s32.totalorder %s3482_s5, %s3482_s5 }
 0xf75   :  { %2300 = vmax.xlane.f32.xlu1 %v2299_v49 }
 0xf76   :  { %p3489_p13 = por %p3488_p12, %p3487_p11 }
 0xf78   :  { %p3490_p0 = pnand %p3489_p13, %p3483_p10 }
 0xf86   :  { %2318 = vrot.lane.b32.xlu1 %v3634_v10, %s3536_s19 }
 0xf8a   :  { %2472 = vrot.lane.b32.xlu1 %v3634_v10, %s3537_s20 }
 0xf8e   :  { %2550 = vrot.lane.b32.xlu1 %v3632_v9, %s3537_s20 }
 0xf92   :  { %2548 = vrot.lane.b32.xlu1 %v3649_v14, %s3538_s21 }
 0xff5   :  { %v2298_v51 = vpop.xlane.xlu0 %2297 }
 0xff6   :  { %v2302_v52 = vsub.f32 %v2214_v40, %v2298_v51 }
 0xff8   :  { %v2304_v53 = vmul.f32 1.442695, %v2302_v52 }
 0xffa   :  { %3400 = vpow2.f32 %v2304_v53 }
0x1002   :  { %v2301_v54 = vpop.xlane.xlu1 %2300 }
0x1003   :  { %v2303_v59 = vsub.f32 %v2292_v45, %v2301_v54 }
0x1004   :  { %v3401_v56 = vpop.eup %3400 }
0x1005   :  { %v2308_v57 = vsel %vm315_vm3, %v3401_v56, 0.0  ;;  %v2306_v60 = vmul.f32 1.442695, %v2303_v59 }
0x1006   :  { %2309 = vadd.xlane.f32.xlu0 %v2308_v57  ;;  %v2319_v58 = vpop.permute.xlu1 %2318 }
0x1007   :  { %3259 = vmatpush3.msra.mxu0 %v2319_v58  ;;  %3402 = vpow2.f32 %v2306_v60 }
0x1008   :  { %3268 = vmatprep.subr.mxu0 %v3515_v8 }
0x100a   :  { %v2473_v4 = vpop.permute.xlu1 %2472 }
0x100e   :  { %v2551_v7 = vpop.permute.xlu1 %2550 }
0x1011   :  { %v3403_v62 = vpop.eup %3402 }
0x1012   :  { %v2311_v14 = vsel %vm315_vm3, %v3403_v62, 0.0  ;;  %v2549_v13 = vpop.permute.xlu1 %2548 }
0x101c   :  { %2394 = vrot.lane.b32.xlu0 %v3632_v9, %s3536_s19 }
0x103b   :  { %2312 = vadd.xlane.f32.xlu0 %v2311_v14 }
0x1051   :  { %2470 = vrot.lane.b32.xlu0 %v3641_v12, %s3538_s21 }
0x1093   :  { %v2310_v63 = vpop.xlane.xlu0 %2309 }
0x1094   :  { %3404 = vrcp.f32 %v2310_v63 }
0x1097   :  { %v2395_v0 = vpop.permute.xlu0 %2394 }
0x1098   :  { %3264 = vmatpush3.msra.mxu1 %v2395_v0 }
0x1099   :  { %3273 = vmatprep.subr.mxu1 %v3515_v8 }
0x109e   :  { %v3405_v1 = vpop.eup %3404 }
0x109f   :  { %v2316_v3 = vmul.f32 %v3405_v1, %v3401_v56 }
0x10a1   :  { %3261 = vmatmul.mubr.msk.f32.vlgmr.msra.gmra.mrb[24].mxu0 %vm315_vm3, %v2316_v3 }
0x10a2   :  { %3269 = vmatpush3.xpose.msk.msra.mxu0 %vm161_vm2, %v2473_v4  ;;  %3270 = vmatprep.mubr.msk.f32.mxu0 %vm3516_vm1, %v3515_v8 }
0x10a3   :  { %3278 = vmatprep.subr.mxu0 %v3515_v8 }
0x10c8   :  { %v2313_v5 = vpop.xlane.xlu0 %2312 }
0x10c9   :  { %3406 = vrcp.f32 %v2313_v5 }
0x10cc   :  { %v2471_v12 = vpop.permute.xlu0 %2470 }
0x10cd   :  { %3271 = vmatmul.mubr.msk.f32.vlgmr.msra.gmra.mrb[26].mxu0 %vm161_vm2, %v2471_v12 }
0x10ce   :  { %3280 = vmatprep.mubr.msk.f32.mxu0 %vm3516_vm1, %v3515_v8 }
0x10d3   :  { %v3407_v6 = vpop.eup %3406 }
0x10d4   :  { %v2317_v11 = vmul.f32 %v3407_v6, %v3403_v62 }
0x10d6   :  { %3266 = vmatmul.mubr.msk.f32.vlgmr.msra.gmra.mrb[30].mxu1 %vm315_vm3, %v2317_v11 }
0x10d7   :  { %3274 = vmatpush3.xpose.msk.msra.mxu1 %vm161_vm2, %v2551_v7  ;;  %3275 = vmatprep.mubr.msk.f32.mxu1 %vm3516_vm1, %v3515_v8 }
0x10d8   :  { %3283 = vmatprep.subr.mxu1 %v3515_v8 }
0x10da   :  { %3276 = vmatmul.mubr.msk.f32.vlgmr.msra.gmra.mrb[32].mxu1 %vm161_vm2, %v2549_v13 }
0x10db   :  { %3285 = vmatprep.mubr.msk.f32.mxu1 %vm3516_vm1, %v3515_v8 }
0x1174   :  { %v2390_v15 = vpop.f32.mrb[24].mxu0 }
0x1175   :  { %v3262_v17 = vpop.f32.mrb[25].mxu0 }
0x11a0   :  { %v2544_v18 = vpop.f32.mrb[26].mxu0 }
0x11a1   :  { %v3272_v19 = vpop.f32.mrb[27].mxu0  ;;  %v2626_v20 = vsel %vm315_vm3, %v2544_v18, -inf }
0x11a2   :  { %2627 = vmax.xlane.f32.xlu0 %v2626_v20  ;;  %v2876_v20 = vld [vmem:[#allocation2 + $0x8] sm:$0xff] }
0x11a9   :  { %v2466_v22 = vpop.f32.mrb[30].mxu1 }
0x11aa   :  { %v3267_v23 = vpop.f32.mrb[31].mxu1 }
0x11ad   :  { %v2622_v24 = vpop.f32.mrb[32].mxu1 }
0x11ae   :  { %v3277_v26 = vpop.f32.mrb[33].mxu1  ;;  %v2629_v27 = vsel %vm315_vm3, %v2622_v24, -inf }
0x11af   :  { %2630 = vmax.xlane.f32.xlu1 %v2629_v27 }
0x11c0   :  { %2648 = vrot.lane.b32.xlu1 %v3634_v10, %s3539_s22 }
0x11c4   :  { %2802 = vrot.lane.b32.xlu1 %v3716_v16, %s3540_s23 }
0x11c8   :  { %2804 = vrot.lane.b32.xlu1 %v3719_v21, %s3540_s23 }
0x11cc   :  { %2812 = vrot.lane.b32.xlu1 %v3751_v55, %s3513_s28 }
0x11d0   :  { %2820 = vrot.lane.b32.xlu1 %v3783_v30, %s3541_s24 }
0x11d4   :  { %2828 = vrot.lane.b32.xlu1 %v3815_v2, %s3542_s0 }
0x11d8   :  { %2836 = vrot.lane.b32.xlu1 %v3847_v43, %s3543_s18 }
0x11dc   :  { %2844 = vrot.lane.b32.xlu1 %v2466_v22, %s3544_s2  ;;  %v2875_v22 = vld [vmem:[#allocation2] sm:$0xff] }
0x122f   :  { %v2628_v8 = vpop.xlane.xlu0 %2627 }
0x1230   :  { %v2632_v10 = vsub.f32 %v2544_v18, %v2628_v8 }
0x1232   :  { %v2634_v28 = vmul.f32 1.442695, %v2632_v10 }
0x1234   :  { %3408 = vpow2.f32 %v2634_v28 }
0x123c   :  { %v2631_v16 = vpop.xlane.xlu1 %2630 }
0x123d   :  { %v2633_v21 = vsub.f32 %v2622_v24, %v2631_v16 }
0x123e   :  { %v3409_v29 = vpop.eup %3408 }
0x123f   :  { %v2636_v31 = vmul.f32 1.442695, %v2633_v21  ;;  %v2638_v55 = vsel %vm315_vm3, %v3409_v29, 0.0 }
0x1240   :  { %2639 = vadd.xlane.f32.xlu0 %v2638_v55  ;;  %v2649_v30 = vpop.permute.xlu1 %2648 }
0x1241   :  { %3410 = vpow2.f32 %v2636_v31  ;;  %3279 = vmatpush3.msra.mxu0 %v2649_v30 }
0x1244   :  { %v2803_v51 = vpop.permute.xlu1 %2802 }
0x1245   :  { %v2856_v59 = vsel %vm161_vm2, %v3685_v46, %v2803_v51 }
0x1248   :  { %v2805_v53 = vpop.permute.xlu1 %2804 }
0x1249   :  { %v2857_v12 = vsel %vm161_vm2, %v3687_v48, %v2805_v53 }
0x124b   :  { %v3411_v2 = vpop.eup %3410 }
0x124c   :  { %v2641_v32 = vsel %vm315_vm3, %v3411_v2, 0.0  ;;  %v2813_v56 = vpop.permute.xlu1 %2812 }
0x124d   :  { %2642 = vadd.xlane.f32.xlu0 %v2641_v32  ;;  %v2859_v6 = vsel %vm315_vm3, %v2857_v12, %v2813_v56 }
0x1250   :  { %v2821_v58 = vpop.permute.xlu1 %2820 }
0x1251   :  { %v2862_v11 = vsel %vm2860_vm4, %v2859_v6, %v2821_v58 }
0x1254   :  { %v2829_v14 = vpop.permute.xlu1 %2828 }
0x1255   :  { %v2865_v13 = vsel %vm2863_vm5, %v2862_v11, %v2829_v14 }
0x1258   :  { %v2837_v46 = vpop.permute.xlu1 %2836 }
0x125c   :  { %v2845_v7 = vpop.permute.xlu1 %2844 }
0x1263   :  { %2724 = vrot.lane.b32.xlu0 %v3632_v9, %s3539_s22 }
0x1267   :  { %2810 = vrot.lane.b32.xlu0 %v3748_v50, %s3513_s28  ;;  %v2877_v50 = vld [vmem:[#allocation8] sm:$0xff] }
0x126b   :  { %2818 = vrot.lane.b32.xlu0 %v3780_v25, %s3541_s24  ;;  %v2878_v25 = vld [vmem:[#allocation8 + $0x8] sm:$0xff] }
0x126c   :  { %v3307_v40 = vpack.c.bf16 %v2878_v25, %v2877_v50 }
0x126e   :  { %3308 = vmatprep.subr.bf16.mxu0 %v3307_v40 }
0x126f   :  { %2826 = vrot.lane.b32.xlu0 %v3812_v61, %s3542_s0  ;;  %v2879_v61 = vld [vmem:[#allocation8 + $0x10] sm:$0xff] }
0x1273   :  { %2834 = vrot.lane.b32.xlu0 %v3844_v38, %s3543_s18  ;;  %v2880_v38 = vld [vmem:[#allocation8 + $0x18] sm:$0xff] }
0x1274   :  { %v3311_v41 = vpack.c.bf16 %v2880_v38, %v2879_v61 }
0x1277   :  { %2842 = vrot.lane.b32.xlu0 %v2390_v15, %s3544_s2  ;;  %v2868_v15 = vsel %vm2866_vm6, %v2865_v13, %v2837_v46 }
0x1278   :  { %v2871_v17 = vsel %vm2869_vm8, %v2868_v15, %v2845_v7 }
0x12cd   :  { %v2640_v33 = vpop.xlane.xlu0 %2639 }
0x12ce   :  { %3412 = vrcp.f32 %v2640_v33 }
0x12d8   :  { %v3413_v34 = vpop.eup %3412 }
0x12d9   :  { %v2646_v35 = vmul.f32 %v3413_v34, %v3409_v29 }
0x12da   :  { %v2643_v36 = vpop.xlane.xlu0 %2642 }
0x12db   :  { %3414 = vrcp.f32 %v2643_v36  ;;  %3281 = vmatmul.mubr.msk.f32.vlgmr.msra.gmra.mrb[28].mxu0 %vm315_vm3, %v2646_v35 }
0x12dc   :  { %3310 = vmatpush3.bf16.msra.mxu0 %v3307_v40 }
0x12dd   :  { %3312 = vmatprep.subr.bf16.mxu0 %v3311_v41 }
0x12de   :  { %v2725_v37 = vpop.permute.xlu0 %2724 }
0x12df   :  { %3284 = vmatpush3.msra.mxu1 %v2725_v37 }
0x12e0   :  { %3314 = vmatpush3.bf16.msra.mxu0 %v3311_v41 }
0x12e2   :  { %v2811_v49 = vpop.permute.xlu0 %2810 }
0x12e3   :  { %v2858_v60 = vsel %vm315_vm3, %v2856_v59, %v2811_v49 }
0x12e5   :  { %v3415_v9 = vpop.eup %3414 }
0x12e6   :  { %v2647_v39 = vmul.f32 %v3415_v9, %v3411_v2  ;;  %v2819_v52 = vpop.permute.xlu0 %2818 }
0x12e7   :  { %v2861_v63 = vsel %vm2860_vm4, %v2858_v60, %v2819_v52 }
0x12e8   :  { %3286 = vmatmul.mubr.msk.f32.vlgmr.msra.gmra.mrb[34].mxu1 %vm315_vm3, %v2647_v39 }
0x12ea   :  { %v2827_v54 = vpop.permute.xlu0 %2826 }
0x12eb   :  { %v2864_v0 = vsel %vm2863_vm5, %v2861_v63, %v2827_v54 }
0x12ee   :  { %v2835_v57 = vpop.permute.xlu0 %2834 }
0x12ef   :  { %v2867_v1 = vsel %vm2866_vm6, %v2864_v0, %v2835_v57 }
0x12f2   :  { %v2843_v62 = vpop.permute.xlu0 %2842 }
0x12f3   :  { %v2870_v3 = vsel %vm2869_vm8, %v2867_v1, %v2843_v62 }
0x13ae   :  { %v2720_v42 = vpop.f32.mrb[28].mxu0 }
0x13af   :  { %2850 = vrot.lane.b32.xlu0 %v2720_v42, %s3545_s25  ;;  %v3282_v43 = vpop.f32.mrb[29].mxu0 }
0x13bb   :  { %v2796_v45 = vpop.f32.mrb[34].mxu1 }
0x13bc   :  { %2852 = vrot.lane.b32.xlu1 %v2796_v45, %s3545_s25  ;;  %v3287_v47 = vpop.f32.mrb[35].mxu1 }
0x1421   :  { %v2851_v4 = vpop.permute.xlu0 %2850 }
0x1422   :  { %v2873_v5 = vsel %vm2872_vm7, %v2870_v3, %v2851_v4 }
0x1423   :  { %3296 = vmatprep.mubr.msk.f32.mxu0 %vm68_vm0, %v2873_v5 }
0x142e   :  { %v2853_v18 = vpop.permute.xlu1 %2852 }
0x142f   :  { %v2874_v19 = vsel %vm2872_vm7, %v2871_v17, %v2853_v18 }
0x1430   :  { %3297 = vmatmul.mubr.msk.f32.vlgmr.msra.gmra.mrb[30].mxu0 %vm68_vm0, %v2874_v19 }
0x1503   :  { %v3298_v23 = vpop.f32.mrb[30].mxu0 }
0x1504   :  { %v2963_v24 = vadd.f32 %v3298_v23, %v2876_v20  ;;  %v2953_v26 = vpop.f32.mrb[31].mxu0 }
0x1505   :  { %v2962_v48 = vadd.f32 %v2953_v26, %v2875_v22 }
0x1506   :  { %2965 = vst.msk [vmem:[#allocation2 + $0x8] sm:$0xff] %vm68_vm0, %v2963_v24 }
0x1507   :  { %2964 = vst.msk [vmem:[#allocation2] sm:$0xff] %vm68_vm0, %v2962_v48 }
0x150d   :  { %v2967_v27 = vld [vmem:[#allocation2 + $0x8] sm:$0xff] }
0x150e   :  { %v2966_v8 = vld [vmem:[#allocation2] sm:$0xff]  ;;  %2969 = vst.msk [vmem:[#allocation9 + $0x8] sm:$0xff] %vm68_vm0, %v2967_v27 }
0x150f   :  { %2968 = vst.msk [vmem:[#allocation9] sm:$0xff] %vm68_vm0, %v2966_v8 }
0x1510   :  { %3493 = shalt.err (!%p3490_p0)
}
0x1511   :  { %s3494_s8 = scalar_lea.hbm %s3938_s4, 256 }
0x1512   :  { %p3495_p1 = scmp.ne.s32.totalorder %s3938_s4, %s3494_s8  ;;  %p3498_p2 = scmp.lt.u32.totalorder %s3494_s8, %s3938_s4 }
0x1514   :  { %p3500_p3 = pnand %p3498_p2, %p3495_p1 }
0x1516   :  { %3503 = shalt.err (!%p3500_p3)
}
0x1517   :  { %2981 = dma.vmem_to_hbm [thread:$0]  %s2976_s30, 256, %s3938_s4, [#allocation5], %s3512_s27, %s3512_s27, %s3513_s28  }
0x1518   :  { %3508 = dma.done.wait [#allocation5], 256  }
0x1519   :  { %3509 = vsyncadd [#allocation5], 4294967040 }
0x151a   :  { %2985 = vsyncpa [#allocation4], 1 }
0x151b   :  { %2986 = vsyncpa [#allocation7], 1 }
0x151c   :  { %2987 = vsyncpa [#allocation5], 1 }

</bundles_post_ra>
